<compile_context>
chip_gen: v7x
topology: tpu7x:2x2x1
jax: 0.10.0
libtpu: 0.0.40
codegen_flags: <defaults>
</compile_context>

<pallas_src>
import functools

import jax
import jax.numpy as jnp
from jax.experimental import pallas as pl
from jax.experimental.pallas import tpu as pltpu


# ----------------------------------------------------------------------------
# Pallas kernel: implicit-GEMM conv + folded BN shift + ReLU.
# ----------------------------------------------------------------------------
def _convblock_kernel(xa_ref, xb_ref, w_ref, shift_ref, o_ref, xs_ref,
                      *, offs, tm, halo):
    # xa_ref    : (tm,   Cinp)       main row block of the flat padded input
    # xb_ref    : (halo, Cinp)       halo rows immediately after the block
    # w_ref     : (k*k, Cinp, tn)    BN-scaled conv weights, one tap per idx
    # shift_ref : (1, tn)            folded conv-bias / BN shift
    # o_ref     : (tm, tn)           output block (lane-dense)
    # xs_ref    : (tm+halo, Cinp)    VMEM scratch: main block + halo stitched
    xs_ref[pl.ds(0, tm), :] = xa_ref[...]
    xs_ref[pl.ds(tm, halo), :] = xb_ref[...]

    acc = jnp.zeros(o_ref.shape, jnp.float32)
    for t, off in enumerate(offs):          # static unroll over k*k taps
        acc = acc + jnp.dot(xs_ref[pl.ds(off, tm), :], w_ref[t],
                            preferred_element_type=jnp.float32)
    o_ref[...] = jnp.maximum(acc + shift_ref[...], 0.0).astype(o_ref.dtype)


# ----------------------------------------------------------------------------
# Wrapper: layout prep (no im2col), weight folding, pallas_call.
# ----------------------------------------------------------------------------
@functools.partial(jax.jit, static_argnames=("kernel_size", "dilation"))
def conv_block_forward(x, weight, bias, gamma, beta, run_mean, run_var,
                       *, kernel_size=3, dilation=1, eps=1e-5):
    """ConvBlock forward.  x: NCHW float32.  weight: (Cout, Cin, kh, kw)."""
    n, cin, h, w = x.shape
    cout = weight.shape[0]
    k = kernel_size
    d = dilation
    p = dilation                       # matches nn.Conv2d(..., padding=dilation)
    ho = h + 2 * p - d * (k - 1)
    wo = w + 2 * p - d * (k - 1)

    # NCHW -> NHWC with extended zero padding: p on top/left, p + d*(k-1) on
    # bottom/right, so every tap read of every "virtual" output position of an
    # image stays inside that image's own rows of the flattened array.
    hpp = h + 2 * p + d * (k - 1)
    wpp = w + 2 * p + d * (k - 1)
    cinp = int(pl.cdiv(cin, 8)) * 8    # sublane-friendly contraction dim
    x_nhwc = jnp.transpose(x, (0, 2, 3, 1))
    xpe = jnp.pad(
        x_nhwc,
        ((0, 0), (p, p + d * (k - 1)), (p, p + d * (k - 1)), (0, cinp - cin)))
    m_tot = n * hpp * wpp
    x2 = xpe.reshape(m_tot, cinp)      # row q = (n, h, w); stride along W = 1

    # Row-tile / halo sizing.  Tap (i, j) reads row  q + i*d*wpp + j*d, so a
    # tile of tm output rows needs at most max_off extra rows past its end.
    tm = 512
    max_off = d * (k - 1) * wpp + d * (k - 1)
    halo = 8
    while halo < max_off:
        halo *= 2
    if halo > tm:                      # very wide images: keep halo | tm
        tm = halo
    m_pad = int(pl.cdiv(m_tot, tm)) * tm
    rows = m_pad + halo                # covers the last tile's halo block
    x2e = jnp.pad(x2, ((0, rows - m_tot), (0, 0)))

    # Lane-dense output channels, tiled along Cout for large-channel configs.
    coutp = int(pl.cdiv(cout, 128)) * 128
    if coutp <= 1024:
        tn = coutp
    else:
        tn = 512
        coutp = int(pl.cdiv(coutp, tn)) * tn

    # Fold conv bias + inference BatchNorm into weight scale / shift.
    scale = gamma / jnp.sqrt(run_var + eps)                    # (cout,)
    shift = bias * scale + beta - run_mean * scale             # (cout,)
    # weight (Cout, Cin, kh, kw) -> (k*k, Cinp, CoutP), scaled per out channel.
    w_taps = jnp.transpose(weight, (2, 3, 1, 0)).reshape(k * k, cin, cout)
    w_taps = w_taps * scale[None, None, :]
    w_taps = jnp.pad(w_taps, ((0, 0), (0, cinp - cin), (0, coutp - cout)))
    shift_p = jnp.pad(shift, (0, coutp - cout)).reshape(1, coutp)

    offs = tuple(i * d * wpp + j * d for i in range(k) for j in range(k))
    grid = (m_pad // tm, coutp // tn)  # Cout is INNER: input block stays put
    halo_per_tile = tm // halo         # halo-block units per main tile

    kernel = functools.partial(_convblock_kernel, offs=offs, tm=tm, halo=halo)

    out_flat = pl.pallas_call(
        kernel,
        out_shape=jax.ShapeDtypeStruct((m_pad, coutp), jnp.float32),
        grid_spec=pltpu.PrefetchScalarGridSpec(
            num_scalar_prefetch=0,
            grid=grid,
            in_specs=[
                pl.BlockSpec((tm, cinp), lambda r, c: (r, 0)),
                pl.BlockSpec((halo, cinp),
                             lambda r, c: ((r + 1) * halo_per_tile, 0)),
                pl.BlockSpec((k * k, cinp, tn), lambda r, c: (0, 0, c)),
                pl.BlockSpec((1, tn), lambda r, c: (0, c)),
            ],
            out_specs=pl.BlockSpec((tm, tn), lambda r, c: (r, c)),
            scratch_shapes=[pltpu.VMEM((tm + halo, cinp), jnp.float32)],
        ),
        compiler_params=pltpu.CompilerParams(
            dimension_semantics=("parallel", "parallel"),
            vmem_limit_bytes=32 * 1024 * 1024),
    )(x2e, x2e, w_taps, shift_p)

    # (m_pad, CoutP) -> valid rows -> (N, Hpp, Wpp, CoutP) -> crop -> NCHW.
    y = out_flat[:m_tot].reshape(n, hpp, wpp, coutp)[:, :ho, :wo, :cout]
    return jnp.transpose(y, (0, 3, 1, 2))


# ----------------------------------------------------------------------------
# Pure-JAX reference for correctness checking.
# ----------------------------------------------------------------------------
def conv_block_reference(x, weight, bias, gamma, beta, run_mean, run_var,
                         *, kernel_size=3, dilation=1, eps=1e-5):
    padding = dilation
    y = jax.lax.conv_general_dilated(
        x, weight,
        window_strides=(1, 1),
        padding=[(padding, padding), (padding, padding)],
        rhs_dilation=(dilation, dilation),
        dimension_numbers=("NCHW", "OIHW", "NCHW"))
    y = y + bias.reshape(1, -1, 1, 1)
    y = (y - run_mean.reshape(1, -1, 1, 1)) / jnp.sqrt(
        run_var.reshape(1, -1, 1, 1) + eps)
    y = y * gamma.reshape(1, -1, 1, 1) + beta.reshape(1, -1, 1, 1)
    return jnp.maximum(y, 0.0)


if __name__ == "__main__":
    # ConvBlock(in_channels=4, out_channels=8, kernel_size=3, dilation=1,
    #           use_depthwise=False)  -- the default (non-depthwise) path.
    N, CIN, H, W = 2, 4, 16, 16
    COUT, K = 8, 3

    key = jax.random.PRNGKey(0)
    kx, kw, kb, kg, kbt, krm, krv = jax.random.split(key, 7)

    x = jax.random.normal(kx, (N, CIN, H, W), dtype=jnp.float32)

    fan_in = CIN * K * K
    bound = 1.0 / jnp.sqrt(fan_in)
    weight = jax.random.uniform(kw, (COUT, CIN, K, K), jnp.float32,
                                -bound, bound)
    bias = jax.random.uniform(kb, (COUT,), jnp.float32, -bound, bound)

    # Deterministic BatchNorm parameters / running stats (inference mode).
    gamma = 1.0 + 0.1 * jax.random.normal(kg, (COUT,), jnp.float32)
    beta = 0.1 * jax.random.normal(kbt, (COUT,), jnp.float32)
    run_mean = 0.05 * jax.random.normal(krm, (COUT,), jnp.float32)
    run_var = 1.0 + 0.1 * jax.random.uniform(krv, (COUT,), jnp.float32)

    out = conv_block_forward(x, weight, bias, gamma, beta, run_mean, run_var,
                             kernel_size=K, dilation=1)
    jax.block_until_ready(out)

    ref = conv_block_reference(x, weight, bias, gamma, beta, run_mean, run_var,
                               kernel_size=K, dilation=1)
    assert out.shape == (N, COUT, H, W)
    assert jnp.allclose(out, ref, atol=1e-4, rtol=1e-4)

    print("KERNEL_OK")
</pallas_src>

<mosaic_0001>
module attributes {stable_mosaic.version = 11 : i64} {
  func.func @_convblock_kernel(%arg0: i32, %arg1: i32, %arg2: memref<512x8xf32, #tpu.memory_space<vmem>>, %arg3: memref<64x8xf32, #tpu.memory_space<vmem>>, %arg4: memref<9x8x128xf32, #tpu.memory_space<vmem>>, %arg5: memref<1x128xf32, #tpu.memory_space<vmem>>, %arg6: memref<512x128xf32, #tpu.memory_space<vmem>>, %arg7: memref<576x8xf32, #tpu.memory_space<vmem>>) attributes {dimension_semantics = [#tpu.dimension_semantics<parallel>, #tpu.dimension_semantics<parallel>], iteration_bounds = array<i64: 2, 1>, scalar_prefetch = 0 : i64, scratch_operands = 1 : i64, tpu.core_type = #tpu.core_type<tc>, window_params = [{transform_indices = @transform_0, window_bounds = array<i64: 512, 8>}, {transform_indices = @transform_1, window_bounds = array<i64: 64, 8>}, {transform_indices = @transform_2, window_bounds = array<i64: 9, 8, 128>}, {transform_indices = @transform_3, window_bounds = array<i64: 1, 128>}, {transform_indices = @transform_4, window_bounds = array<i64: 512, 128>}]} {
    %c0 = arith.constant 0 : index
    %c0_0 = arith.constant 0 : index
    %0 = vector.load %arg2[%c0, %c0_0] : memref<512x8xf32, #tpu.memory_space<vmem>>, vector<512x8xf32>
    %c0_1 = arith.constant 0 : index
    %c0_2 = arith.constant 0 : index
    %1 = vector.load %arg7[%c0_1, %c0_2] : memref<576x8xf32, #tpu.memory_space<vmem>>, vector<512x8xf32>
    tpu.vector_store %arg7[%c0_1, %c0_2], %0 {strides = array<i32>} : memref<576x8xf32, #tpu.memory_space<vmem>>, vector<512x8xf32>,
    %c0_3 = arith.constant 0 : index
    %c0_4 = arith.constant 0 : index
    %2 = vector.load %arg3[%c0_3, %c0_4] : memref<64x8xf32, #tpu.memory_space<vmem>>, vector<64x8xf32>
    %c512 = arith.constant 512 : index
    %c0_5 = arith.constant 0 : index
    %3 = vector.load %arg7[%c512, %c0_5] : memref<576x8xf32, #tpu.memory_space<vmem>>, vector<64x8xf32>
    tpu.vector_store %arg7[%c512, %c0_5], %2 {strides = array<i32>} : memref<576x8xf32, #tpu.memory_space<vmem>>, vector<64x8xf32>,
    %cst = arith.constant 0.000000e+00 : f32
    %4 = vector.broadcast %cst : f32 to vector<512x128xf32>
    %c0_6 = arith.constant 0 : index
    %c0_7 = arith.constant 0 : index
    %5 = vector.load %arg7[%c0_6, %c0_7] : memref<576x8xf32, #tpu.memory_space<vmem>>, vector<512x8xf32>
    %c0_8 = arith.constant 0 : index
    %c0_9 = arith.constant 0 : index
    %c0_10 = arith.constant 0 : index
    %6 = vector.load %arg4[%c0_8, %c0_9, %c0_10] : memref<9x8x128xf32, #tpu.memory_space<vmem>>, vector<1x8x128xf32>
    %7 = vector.shape_cast %6 : vector<1x8x128xf32> to vector<8x128xf32>
    %cst_11 = arith.constant dense<0.000000e+00> : vector<512x128xf32>
    %8 = tpu.matmul %5, %7, %cst_11 {dimension_numbers = #tpu.dot_dimension_numbers<[1], [0], [0], [1], [0, 0, 1, 1], [], []>} : vector<512x8xf32>, vector<8x128xf32>, vector<512x128xf32> -> vector<512x128xf32>
    %9 = arith.addf %4, %8 : vector<512x128xf32>
    %c1 = arith.constant 1 : index
    %c0_12 = arith.constant 0 : index
    %10 = vector.load %arg7[%c1, %c0_12] : memref<576x8xf32, #tpu.memory_space<vmem>>, vector<512x8xf32>
    %c1_13 = arith.constant 1 : index
    %c0_14 = arith.constant 0 : index
    %c0_15 = arith.constant 0 : index
    %11 = vector.load %arg4[%c1_13, %c0_14, %c0_15] : memref<9x8x128xf32, #tpu.memory_space<vmem>>, vector<1x8x128xf32>
    %12 = vector.shape_cast %11 : vector<1x8x128xf32> to vector<8x128xf32>
    %cst_16 = arith.constant dense<0.000000e+00> : vector<512x128xf32>
    %13 = tpu.matmul %10, %12, %cst_16 {dimension_numbers = #tpu.dot_dimension_numbers<[1], [0], [0], [1], [0, 0, 1, 1], [], []>} : vector<512x8xf32>, vector<8x128xf32>, vector<512x128xf32> -> vector<512x128xf32>
    %14 = arith.addf %9, %13 : vector<512x128xf32>
    %c2 = arith.constant 2 : index
    %c0_17 = arith.constant 0 : index
    %15 = vector.load %arg7[%c2, %c0_17] : memref<576x8xf32, #tpu.memory_space<vmem>>, vector<512x8xf32>
    %c2_18 = arith.constant 2 : index
    %c0_19 = arith.constant 0 : index
    %c0_20 = arith.constant 0 : index
    %16 = vector.load %arg4[%c2_18, %c0_19, %c0_20] : memref<9x8x128xf32, #tpu.memory_space<vmem>>, vector<1x8x128xf32>
    %17 = vector.shape_cast %16 : vector<1x8x128xf32> to vector<8x128xf32>
    %cst_21 = arith.constant dense<0.000000e+00> : vector<512x128xf32>
    %18 = tpu.matmul %15, %17, %cst_21 {dimension_numbers = #tpu.dot_dimension_numbers<[1], [0], [0], [1], [0, 0, 1, 1], [], []>} : vector<512x8xf32>, vector<8x128xf32>, vector<512x128xf32> -> vector<512x128xf32>
    %19 = arith.addf %14, %18 : vector<512x128xf32>
    %c20 = arith.constant 20 : index
    %c0_22 = arith.constant 0 : index
    %20 = vector.load %arg7[%c20, %c0_22] : memref<576x8xf32, #tpu.memory_space<vmem>>, vector<512x8xf32>
    %c3 = arith.constant 3 : index
    %c0_23 = arith.constant 0 : index
    %c0_24 = arith.constant 0 : index
    %21 = vector.load %arg4[%c3, %c0_23, %c0_24] : memref<9x8x128xf32, #tpu.memory_space<vmem>>, vector<1x8x128xf32>
    %22 = vector.shape_cast %21 : vector<1x8x128xf32> to vector<8x128xf32>
    %cst_25 = arith.constant dense<0.000000e+00> : vector<512x128xf32>
    %23 = tpu.matmul %20, %22, %cst_25 {dimension_numbers = #tpu.dot_dimension_numbers<[1], [0], [0], [1], [0, 0, 1, 1], [], []>} : vector<512x8xf32>, vector<8x128xf32>, vector<512x128xf32> -> vector<512x128xf32>
    %24 = arith.addf %19, %23 : vector<512x128xf32>
    %c21 = arith.constant 21 : index
    %c0_26 = arith.constant 0 : index
    %25 = vector.load %arg7[%c21, %c0_26] : memref<576x8xf32, #tpu.memory_space<vmem>>, vector<512x8xf32>
    %c4 = arith.constant 4 : index
    %c0_27 = arith.constant 0 : index
    %c0_28 = arith.constant 0 : index
    %26 = vector.load %arg4[%c4, %c0_27, %c0_28] : memref<9x8x128xf32, #tpu.memory_space<vmem>>, vector<1x8x128xf32>
    %27 = vector.shape_cast %26 : vector<1x8x128xf32> to vector<8x128xf32>
    %cst_29 = arith.constant dense<0.000000e+00> : vector<512x128xf32>
    %28 = tpu.matmul %25, %27, %cst_29 {dimension_numbers = #tpu.dot_dimension_numbers<[1], [0], [0], [1], [0, 0, 1, 1], [], []>} : vector<512x8xf32>, vector<8x128xf32>, vector<512x128xf32> -> vector<512x128xf32>
    %29 = arith.addf %24, %28 : vector<512x128xf32>
    %c22 = arith.constant 22 : index
    %c0_30 = arith.constant 0 : index
    %30 = vector.load %arg7[%c22, %c0_30] : memref<576x8xf32, #tpu.memory_space<vmem>>, vector<512x8xf32>
    %c5 = arith.constant 5 : index
    %c0_31 = arith.constant 0 : index
    %c0_32 = arith.constant 0 : index
    %31 = vector.load %arg4[%c5, %c0_31, %c0_32] : memref<9x8x128xf32, #tpu.memory_space<vmem>>, vector<1x8x128xf32>
    %32 = vector.shape_cast %31 : vector<1x8x128xf32> to vector<8x128xf32>
    %cst_33 = arith.constant dense<0.000000e+00> : vector<512x128xf32>
    %33 = tpu.matmul %30, %32, %cst_33 {dimension_numbers = #tpu.dot_dimension_numbers<[1], [0], [0], [1], [0, 0, 1, 1], [], []>} : vector<512x8xf32>, vector<8x128xf32>, vector<512x128xf32> -> vector<512x128xf32>
    %34 = arith.addf %29, %33 : vector<512x128xf32>
    %c40 = arith.constant 40 : index
    %c0_34 = arith.constant 0 : index
    %35 = vector.load %arg7[%c40, %c0_34] : memref<576x8xf32, #tpu.memory_space<vmem>>, vector<512x8xf32>
    %c6 = arith.constant 6 : index
    %c0_35 = arith.constant 0 : index
    %c0_36 = arith.constant 0 : index
    %36 = vector.load %arg4[%c6, %c0_35, %c0_36] : memref<9x8x128xf32, #tpu.memory_space<vmem>>, vector<1x8x128xf32>
    %37 = vector.shape_cast %36 : vector<1x8x128xf32> to vector<8x128xf32>
    %cst_37 = arith.constant dense<0.000000e+00> : vector<512x128xf32>
    %38 = tpu.matmul %35, %37, %cst_37 {dimension_numbers = #tpu.dot_dimension_numbers<[1], [0], [0], [1], [0, 0, 1, 1], [], []>} : vector<512x8xf32>, vector<8x128xf32>, vector<512x128xf32> -> vector<512x128xf32>
    %39 = arith.addf %34, %38 : vector<512x128xf32>
    %c41 = arith.constant 41 : index
    %c0_38 = arith.constant 0 : index
    %40 = vector.load %arg7[%c41, %c0_38] : memref<576x8xf32, #tpu.memory_space<vmem>>, vector<512x8xf32>
    %c7 = arith.constant 7 : index
    %c0_39 = arith.constant 0 : index
    %c0_40 = arith.constant 0 : index
    %41 = vector.load %arg4[%c7, %c0_39, %c0_40] : memref<9x8x128xf32, #tpu.memory_space<vmem>>, vector<1x8x128xf32>
    %42 = vector.shape_cast %41 : vector<1x8x128xf32> to vector<8x128xf32>
    %cst_41 = arith.constant dense<0.000000e+00> : vector<512x128xf32>
    %43 = tpu.matmul %40, %42, %cst_41 {dimension_numbers = #tpu.dot_dimension_numbers<[1], [0], [0], [1], [0, 0, 1, 1], [], []>} : vector<512x8xf32>, vector<8x128xf32>, vector<512x128xf32> -> vector<512x128xf32>
    %44 = arith.addf %39, %43 : vector<512x128xf32>
    %c42 = arith.constant 42 : index
    %c0_42 = arith.constant 0 : index
    %45 = vector.load %arg7[%c42, %c0_42] : memref<576x8xf32, #tpu.memory_space<vmem>>, vector<512x8xf32>
    %c8 = arith.constant 8 : index
    %c0_43 = arith.constant 0 : index
    %c0_44 = arith.constant 0 : index
    %46 = vector.load %arg4[%c8, %c0_43, %c0_44] : memref<9x8x128xf32, #tpu.memory_space<vmem>>, vector<1x8x128xf32>
    %47 = vector.shape_cast %46 : vector<1x8x128xf32> to vector<8x128xf32>
    %cst_45 = arith.constant dense<0.000000e+00> : vector<512x128xf32>
    %48 = tpu.matmul %45, %47, %cst_45 {dimension_numbers = #tpu.dot_dimension_numbers<[1], [0], [0], [1], [0, 0, 1, 1], [], []>} : vector<512x8xf32>, vector<8x128xf32>, vector<512x128xf32> -> vector<512x128xf32>
    %49 = arith.addf %44, %48 : vector<512x128xf32>
    %c0_46 = arith.constant 0 : index
    %c0_47 = arith.constant 0 : index
    %50 = vector.load %arg5[%c0_46, %c0_47] : memref<1x128xf32, #tpu.memory_space<vmem>>, vector<1x128xf32>
    %51 = vector.broadcast %50 : vector<1x128xf32> to vector<512x128xf32>
    %52 = arith.addf %49, %51 : vector<512x128xf32>
    %cst_48 = arith.constant 0.000000e+00 : f32
    %53 = vector.broadcast %cst_48 : f32 to vector<512x128xf32>
    %54 = arith.maximumf %52, %53 : vector<512x128xf32>
    %c0_49 = arith.constant 0 : index
    %c0_50 = arith.constant 0 : index
    %55 = vector.load %arg6[%c0_49, %c0_50] : memref<512x128xf32, #tpu.memory_space<vmem>>, vector<512x128xf32>
    tpu.vector_store %arg6[%c0_49, %c0_50], %54 {strides = array<i32>} : memref<512x128xf32, #tpu.memory_space<vmem>>, vector<512x128xf32>,
    return
  }
  func.func @transform_0(%arg0: i32, %arg1: i32) -> (i32, i32) {
    %c0_i32 = arith.constant 0 : i32
    %c0_i32_0 = arith.constant 0 : i32
    return %arg0, %c0_i32 : i32, i32
  }
  func.func @transform_1(%arg0: i32, %arg1: i32) -> (i32, i32) {
    %c1_i32 = arith.constant 1 : i32
    %0 = arith.addi %arg0, %c1_i32 : i32
    %c8_i32 = arith.constant 8 : i32
    %1 = arith.muli %0, %c8_i32 : i32
    %c0_i32 = arith.constant 0 : i32
    %c0_i32_0 = arith.constant 0 : i32
    return %1, %c0_i32 : i32, i32
  }
  func.func @transform_2(%arg0: i32, %arg1: i32) -> (i32, i32, i32) {
    %c0_i32 = arith.constant 0 : i32
    %c0_i32_0 = arith.constant 0 : i32
    %c0_i32_1 = arith.constant 0 : i32
    return %c0_i32, %c0_i32_0, %arg1 : i32, i32, i32
  }
  func.func @transform_3(%arg0: i32, %arg1: i32) -> (i32, i32) {
    %c0_i32 = arith.constant 0 : i32
    %c0_i32_0 = arith.constant 0 : i32
    return %c0_i32, %arg1 : i32, i32
  }
  func.func @transform_4(%arg0: i32, %arg1: i32) -> (i32, i32) {
    %c0_i32 = arith.constant 0 : i32
    return %arg0, %arg1 : i32, i32
  }
}

</mosaic_0001>

<bundles_post_ra>
// kernel: conv_block_forward.1
= control target key start
LH: loop header
LB: loop body
LE: loop exit
PB: predicated region body
PF: predicated region fallthrough
CT: control target
= control target key end

     0   :  { %s9667_s15 = smov 0   ;;  %s9669_s16 = smov 0   ;;  %s11181_s0 = inlined_call_operand.vmem [shape: f32[1088,8], index: 0, kind: input, shape index: {}, may-alias: {0,1}]   ;;  %s11182_s1 = inlined_call_operand.vmem [shape: f32[1088,8], index: 1, kind: input, shape index: {}, may-alias: {0,1}]   ;;  %s11183_s2 = inlined_call_operand.vmem [shape: f32[9,8,128], index: 2, kind: input, shape index: {}]   ;;  %s11184_s3 = inlined_call_operand.vmem [shape: f32[1,128], index: 3, kind: input, shape index: {}]   ;;  %s11185_s4 = inlined_call_operand.vmem [shape: f32[1024,128], index: 4, kind: output, shape index: {}]  }
   0x1   :  { %s9671_s17 = smov 0  }
   0x2 LB: > { %s26_s18 = sadd.s32 1, %s9636_s16  ;;  %p7008_p0 = scmp.ge.s32.totalorder %s9640_s17, 1  ;;  %s9640_s17 = sphi %s9671_s17, %s14_s17   ;;  %s9636_s16 = sphi %s9669_s16, %s11203_s16   ;;  %s9632_s15 = sphi %s9667_s15, %s11202_s15  }
   0x3   : > { %p28_p1 = scmp.ge.s32.totalorder %s26_s18, 2  ;;  %p221_p2 = scmp.lt.s32.totalorder %s9640_s17, 3 }
   0x5   : > { %s11205_s18 = smov (%p28_p1, %s26_s18), 0  ;;  %p222_p3 = pnand %p7008_p0, %p221_p2 }
   0x7   : > { %225 = sbr.rel (%p222_p3) target bundleno = 827 (0x33b), region = 36 }
   0xe   : > { %v7016_v0 = vld [vmem:[%s11183_s2 + $0x8] sm:$0xff]  ;;  %v7275_v1 = vld [vmem:[%s11183_s2 + $0x20] sm:$0xff]  ;;  %s9691_s23 = sshll.u32 %s9632_s15, 6  ;;  %vm372_vm0 = vcmask 64512   ;;  %v9768_v35 = vld [vmem:[%s11183_s2 + $0x30] sm:$0xff] }
   0xf   : > { %v9696_v2 = vld [vmem:[%s11183_s2] sm:$0xff]  ;;  %8197 = vmatprep.subr.mxu1 %v7016_v0  ;;  %8589 = vmatprep.subr.mxu0 %v7275_v1  ;;  %p273_p4 = scmp.lt.s32.totalorder %s9691_s23, 135  ;;  %v9702_v3 = vld [vmem:[%s11183_s2 + $0x28] sm:$0xff]  ;;  %s7611_s9 = sadd.s32 64, %s9691_s23 }
  0x10   : > { %8198 = vmatpush3.msra.mxu1 %v7016_v0  ;;  %8590 = vmatpush3.msra.mxu0 %v7275_v1  ;;  %p9868_p5 = scmp.lt.s32.totalorder %s7611_s9, 135  ;;  %p300_p6 = scmp.lt.s32.totalorder %s9691_s23, 127 }
  0x11   : > { %s274_s28 = scalar_select %p273_p4, %s9691_s23, 135  ;;  %8295 = vmatprep.subr.mxu1 %v9696_v2  ;;  %8687 = vmatprep.subr.mxu0 %v9702_v3 }
  0x12   : > { %s11207_s9 = smov (!%p9868_p5, %s7611_s9), 135  ;;  %s11209_s23 = smov (!%p300_p6, %s9691_s23), 127 }
  0x13   : > { %s7010_s29 = sshll.u32 %s274_s28, 3  ;;  %s7013_s11 = sshll.u32 %s11207_s9, 3 }
  0x14   : > { %s9710_s6 = scalar_lea.vmem %s11181_s0, %s7010_s29  ;;  %s9908_s14 = scalar_lea.vmem %s11182_s1, %s7013_s11 }
  0x15   : > { %v308_v4 = vld [vmem:[%s9710_s6] sm:$0xff]  ;;  %v309_v5 = vld [vmem:[%s9710_s6 + $0x8] sm:$0xff]  ;;  %v310_v6 = vld [vmem:[%s9710_s6 + $0x10] sm:$0xff]  ;;  %s7015_s5 = sshll.u32 %s11209_s23, 3 }
  0x16   : > { %373 = vst.msk [vmem:[#allocation2] sm:$0xff] %vm372_vm0, %v308_v4  ;;  %374 = vst.msk [vmem:[#allocation2 + $0x8] sm:$0xff] %vm372_vm0, %v309_v5  ;;  %v311_v7 = vld [vmem:[%s9710_s6 + $0x18] sm:$0xff]  ;;  %v312_v8 = vld [vmem:[%s9710_s6 + $0x20] sm:$0xff]  ;;  %s11019_s8 = scalar_lea.vmem %s11185_s4, %s7015_s5 }
  0x17   : > { %375 = vst.msk [vmem:[#allocation2 + $0x10] sm:$0xff] %vm372_vm0, %v310_v6  ;;  %v313_v9 = vld [vmem:[%s9710_s6 + $0x28] sm:$0xff]  ;;  %376 = vst.msk [vmem:[#allocation2 + $0x18] sm:$0xff] %vm372_vm0, %v311_v7  ;;  %v314_v10 = vld [vmem:[%s9710_s6 + $0x30] sm:$0xff] }
  0x18   : > { %377 = vst.msk [vmem:[#allocation2 + $0x20] sm:$0xff] %vm372_vm0, %v312_v8  ;;  %378 = vst.msk [vmem:[#allocation2 + $0x28] sm:$0xff] %vm372_vm0, %v313_v9  ;;  %v315_v11 = vld [vmem:[%s9710_s6 + $0x38] sm:$0xff]  ;;  %v316_v12 = vld [vmem:[%s9710_s6 + $0x40] sm:$0xff] }
  0x19   : > { %379 = vst.msk [vmem:[#allocation2 + $0x30] sm:$0xff] %vm372_vm0, %v314_v10  ;;  %380 = vst.msk [vmem:[#allocation2 + $0x38] sm:$0xff] %vm372_vm0, %v315_v11  ;;  %v317_v13 = vld [vmem:[%s9710_s6 + $0x48] sm:$0xff]  ;;  %v318_v14 = vld [vmem:[%s9710_s6 + $0x50] sm:$0xff] }
  0x1a   : > { %381 = vst.msk [vmem:[#allocation2 + $0x40] sm:$0xff] %vm372_vm0, %v316_v12  ;;  %v319_v15 = vld [vmem:[%s9710_s6 + $0x58] sm:$0xff]  ;;  %382 = vst.msk [vmem:[#allocation2 + $0x48] sm:$0xff] %vm372_vm0, %v317_v13  ;;  %v320_v16 = vld [vmem:[%s9710_s6 + $0x60] sm:$0xff] }
  0x1b   : > { %383 = vst.msk [vmem:[#allocation2 + $0x50] sm:$0xff] %vm372_vm0, %v318_v14  ;;  %384 = vst.msk [vmem:[#allocation2 + $0x58] sm:$0xff] %vm372_vm0, %v319_v15  ;;  %v321_v17 = vld [vmem:[%s9710_s6 + $0x68] sm:$0xff]  ;;  %v322_v18 = vld [vmem:[%s9710_s6 + $0x70] sm:$0xff] }
  0x1c   : > { %385 = vst.msk [vmem:[#allocation2 + $0x60] sm:$0xff] %vm372_vm0, %v320_v16  ;;  %386 = vst.msk [vmem:[#allocation2 + $0x68] sm:$0xff] %vm372_vm0, %v321_v17  ;;  %v323_v19 = vld [vmem:[%s9710_s6 + $0x78] sm:$0xff]  ;;  %v324_v20 = vld [vmem:[%s9710_s6 + $0x80] sm:$0xff] }
  0x1d   : > { %387 = vst.msk [vmem:[#allocation2 + $0x70] sm:$0xff] %vm372_vm0, %v322_v18  ;;  %v325_v21 = vld [vmem:[%s9710_s6 + $0x88] sm:$0xff]  ;;  %388 = vst.msk [vmem:[#allocation2 + $0x78] sm:$0xff] %vm372_vm0, %v323_v19  ;;  %v326_v22 = vld [vmem:[%s9710_s6 + $0x90] sm:$0xff] }
  0x1e   : > { %389 = vst.msk [vmem:[#allocation2 + $0x80] sm:$0xff] %vm372_vm0, %v324_v20  ;;  %390 = vst.msk [vmem:[#allocation2 + $0x88] sm:$0xff] %vm372_vm0, %v325_v21  ;;  %v327_v23 = vld [vmem:[%s9710_s6 + $0x98] sm:$0xff]  ;;  %v328_v24 = vld [vmem:[%s9710_s6 + $0xa0] sm:$0xff] }
  0x1f   : > { %391 = vst.msk [vmem:[#allocation2 + $0x90] sm:$0xff] %vm372_vm0, %v326_v22  ;;  %392 = vst.msk [vmem:[#allocation2 + $0x98] sm:$0xff] %vm372_vm0, %v327_v23  ;;  %v329_v25 = vld [vmem:[%s9710_s6 + $0xa8] sm:$0xff]  ;;  %v330_v26 = vld [vmem:[%s9710_s6 + $0xb0] sm:$0xff] }
  0x20   : > { %393 = vst.msk [vmem:[#allocation2 + $0xa0] sm:$0xff] %vm372_vm0, %v328_v24  ;;  %v331_v27 = vld [vmem:[%s9710_s6 + $0xb8] sm:$0xff]  ;;  %v518_v28 = vld [vmem:[#allocation2 + $0x1] sm:$0xff]  ;;  %v519_v29 = vld [vmem:[#allocation2 + $0x9] sm:$0xff] }
  0x21   : > { %394 = vst.msk [vmem:[#allocation2 + $0xa8] sm:$0xff] %vm372_vm0, %v329_v25  ;;  %395 = vst.msk [vmem:[#allocation2 + $0xb0] sm:$0xff] %vm372_vm0, %v330_v26  ;;  %v332_v30 = vld [vmem:[%s9710_s6 + $0xc0] sm:$0xff]  ;;  %8199 = vmatprep.mubr.msk.f32.mxu1 %vm372_vm0, %v518_v28  ;;  %v3152_v31 = vld [vmem:[#allocation2 + $0x15] sm:$0xff] }
  0x22   : > { %396 = vst.msk [vmem:[#allocation2 + $0xb8] sm:$0xff] %vm372_vm0, %v331_v27  ;;  %v3153_v32 = vld [vmem:[#allocation2 + $0x1d] sm:$0xff]  ;;  %v520_v33 = vld [vmem:[#allocation2 + $0x11] sm:$0xff]  ;;  %397 = vst.msk [vmem:[#allocation2 + $0xc0] sm:$0xff] %vm372_vm0, %v332_v30  ;;  %8591 = vmatprep.mubr.msk.f32.mxu0 %vm372_vm0, %v3152_v31  ;;  %8200 = vmatmul.mubr.msk.f32.vlgmr.msra.gmra.mrb[0].mxu1 %vm372_vm0, %v519_v29 }
  0x23   : > { %v3154_v34 = vld [vmem:[#allocation2 + $0x25] sm:$0xff]  ;;  %8296 = vmatpush3.msra.mxu1 %v9696_v2  ;;  %8592 = vmatmul.mubr.msk.f32.vlgmr.msra.gmra.mrb[0].mxu0 %vm372_vm0, %v3153_v32  ;;  %v521_v36 = vld [vmem:[#allocation2 + $0x19] sm:$0xff]  ;;  %v3155_v37 = vld [vmem:[#allocation2 + $0x2d] sm:$0xff] }
  0x24   : > { %8688 = vmatpush3.msra.mxu0 %v9702_v3  ;;  %8202 = vmatprep.mubr.msk.f32.mxu1 %vm372_vm0, %v520_v33  ;;  %v522_v38 = vld [vmem:[#allocation2 + $0x21] sm:$0xff]  ;;  %v3156_v39 = vld [vmem:[#allocation2 + $0x35] sm:$0xff]  ;;  %v523_v40 = vld [vmem:[#allocation2 + $0x29] sm:$0xff] }
  0x25   : > { %8594 = vmatprep.mubr.msk.f32.mxu0 %vm372_vm0, %v3154_v34  ;;  %8785 = vmatprep.subr.mxu0 %v9768_v35  ;;  %v3157_v41 = vld [vmem:[#allocation2 + $0x3d] sm:$0xff]  ;;  %v524_v42 = vld [vmem:[#allocation2 + $0x31] sm:$0xff]  ;;  %v3158_v43 = vld [vmem:[#allocation2 + $0x45] sm:$0xff] }
  0x26   : > { %8203 = vmatmul.mubr.msk.f32.gmra.mrb[2].mxu1 %vm372_vm0, %v521_v36  ;;  %v525_v44 = vld [vmem:[#allocation2 + $0x39] sm:$0xff]  ;;  %v3159_v45 = vld [vmem:[#allocation2 + $0x4d] sm:$0xff]  ;;  %v526_v46 = vld [vmem:[#allocation2 + $0x41] sm:$0xff] }
  0x27   : > { %8595 = vmatmul.mubr.msk.f32.gmra.mrb[2].mxu0 %vm372_vm0, %v3155_v37  ;;  %8205 = vmatprep.mubr.msk.f32.mxu1 %vm372_vm0, %v522_v38  ;;  %v3160_v47 = vld [vmem:[#allocation2 + $0x55] sm:$0xff]  ;;  %v527_v48 = vld [vmem:[#allocation2 + $0x49] sm:$0xff]  ;;  %v3161_v49 = vld [vmem:[#allocation2 + $0x5d] sm:$0xff] }
  0x28   : > { %8597 = vmatprep.mubr.msk.f32.mxu0 %vm372_vm0, %v3156_v39  ;;  %v528_v50 = vld [vmem:[#allocation2 + $0x51] sm:$0xff]  ;;  %v3162_v51 = vld [vmem:[#allocation2 + $0x65] sm:$0xff]  ;;  %v529_v62 = vld [vmem:[#allocation2 + $0x59] sm:$0xff] }
  0x29   : > { %v333_v52 = vld [vmem:[%s9710_s6 + $0xc8] sm:$0xff]  ;;  %v334_v53 = vld [vmem:[%s9710_s6 + $0xd0] sm:$0xff]  ;;  %v335_v54 = vld [vmem:[%s9710_s6 + $0xd8] sm:$0xff] }
  0x2a   : > { %8206 = vmatmul.mubr.msk.f32.gmra.mrb[4].mxu1 %vm372_vm0, %v523_v40  ;;  %398 = vst.msk [vmem:[#allocation2 + $0xc8] sm:$0xff] %vm372_vm0, %v333_v52  ;;  %v336_v55 = vld [vmem:[%s9710_s6 + $0xe0] sm:$0xff]  ;;  %399 = vst.msk [vmem:[#allocation2 + $0xd0] sm:$0xff] %vm372_vm0, %v334_v53  ;;  %v337_v56 = vld [vmem:[%s9710_s6 + $0xe8] sm:$0xff] }
  0x2b   : > { %8598 = vmatmul.mubr.msk.f32.gmra.mrb[4].mxu0 %vm372_vm0, %v3157_v41  ;;  %8208 = vmatprep.mubr.msk.f32.mxu1 %vm372_vm0, %v524_v42  ;;  %400 = vst.msk [vmem:[#allocation2 + $0xd8] sm:$0xff] %vm372_vm0, %v335_v54  ;;  %401 = vst.msk [vmem:[#allocation2 + $0xe0] sm:$0xff] %vm372_vm0, %v336_v55  ;;  %v338_v57 = vld [vmem:[%s9710_s6 + $0xf0] sm:$0xff]  ;;  %v339_v58 = vld [vmem:[%s9710_s6 + $0xf8] sm:$0xff] }
  0x2c   : > { %8600 = vmatprep.mubr.msk.f32.mxu0 %vm372_vm0, %v3158_v43  ;;  %402 = vst.msk [vmem:[#allocation2 + $0xe8] sm:$0xff] %vm372_vm0, %v337_v56  ;;  %403 = vst.msk [vmem:[#allocation2 + $0xf0] sm:$0xff] %vm372_vm0, %v338_v57  ;;  %v340_v59 = vld [vmem:[%s9710_s6 + $0x100] sm:$0xff]  ;;  %v341_v60 = vld [vmem:[%s9710_s6 + $0x108] sm:$0xff] }
  0x2d   : > { %404 = vst.msk [vmem:[#allocation2 + $0xf8] sm:$0xff] %vm372_vm0, %v339_v58  ;;  %v342_v61 = vld [vmem:[%s9710_s6 + $0x110] sm:$0xff]  ;;  %405 = vst.msk [vmem:[#allocation2 + $0x100] sm:$0xff] %vm372_vm0, %v340_v59  ;;  %v343_v63 = vld [vmem:[%s9710_s6 + $0x118] sm:$0xff] }
  0x2e   : > { %8209 = vmatmul.mubr.msk.f32.gmra.mrb[6].mxu1 %vm372_vm0, %v525_v44  ;;  %406 = vst.msk [vmem:[#allocation2 + $0x108] sm:$0xff] %vm372_vm0, %v341_v60  ;;  %407 = vst.msk [vmem:[#allocation2 + $0x110] sm:$0xff] %vm372_vm0, %v342_v61  ;;  %v3163_v0 = vld [vmem:[#allocation2 + $0x6d] sm:$0xff]  ;;  %v530_v1 = vld [vmem:[#allocation2 + $0x61] sm:$0xff] }
  0x2f   : > { %8601 = vmatmul.mubr.msk.f32.gmra.mrb[6].mxu0 %vm372_vm0, %v3159_v45  ;;  %8211 = vmatprep.mubr.msk.f32.mxu1 %vm372_vm0, %v526_v46  ;;  %408 = vst.msk [vmem:[#allocation2 + $0x118] sm:$0xff] %vm372_vm0, %v343_v63  ;;  %v344_v2 = vld [vmem:[%s9710_s6 + $0x120] sm:$0xff]  ;;  %v3164_v3 = vld [vmem:[#allocation2 + $0x75] sm:$0xff]  ;;  %v345_v4 = vld [vmem:[%s9710_s6 + $0x128] sm:$0xff] }
  0x30   : > { %8603 = vmatprep.mubr.msk.f32.mxu0 %vm372_vm0, %v3160_v47  ;;  %409 = vst.msk [vmem:[#allocation2 + $0x120] sm:$0xff] %vm372_vm0, %v344_v2  ;;  %v346_v5 = vld [vmem:[%s9710_s6 + $0x130] sm:$0xff]  ;;  %410 = vst.msk [vmem:[#allocation2 + $0x128] sm:$0xff] %vm372_vm0, %v345_v4  ;;  %v347_v6 = vld [vmem:[%s9710_s6 + $0x138] sm:$0xff] }
  0x31   : > { %411 = vst.msk [vmem:[#allocation2 + $0x130] sm:$0xff] %vm372_vm0, %v346_v5  ;;  %v531_v7 = vld [vmem:[#allocation2 + $0x69] sm:$0xff]  ;;  %412 = vst.msk [vmem:[#allocation2 + $0x138] sm:$0xff] %vm372_vm0, %v347_v6  ;;  %v348_v8 = vld [vmem:[%s9710_s6 + $0x140] sm:$0xff] }
  0x32   : > { %8212 = vmatmul.mubr.msk.f32.gmra.mrb[8].mxu1 %vm372_vm0, %v527_v48  ;;  %v3165_v9 = vld [vmem:[#allocation2 + $0x7d] sm:$0xff]  ;;  %v532_v10 = vld [vmem:[#allocation2 + $0x71] sm:$0xff]  ;;  %413 = vst.msk [vmem:[#allocation2 + $0x140] sm:$0xff] %vm372_vm0, %v348_v8  ;;  %v3166_v11 = vld [vmem:[#allocation2 + $0x85] sm:$0xff] }
  0x33   : > { %8604 = vmatmul.mubr.msk.f32.gmra.mrb[8].mxu0 %vm372_vm0, %v3161_v49  ;;  %8214 = vmatprep.mubr.msk.f32.mxu1 %vm372_vm0, %v528_v50  ;;  %v533_v12 = vld [vmem:[#allocation2 + $0x79] sm:$0xff]  ;;  %v3167_v13 = vld [vmem:[#allocation2 + $0x8d] sm:$0xff]  ;;  %v534_v14 = vld [vmem:[#allocation2 + $0x81] sm:$0xff] }
  0x34   : > { %8606 = vmatprep.mubr.msk.f32.mxu0 %vm372_vm0, %v3162_v51  ;;  %v3168_v15 = vld [vmem:[#allocation2 + $0x95] sm:$0xff]  ;;  %v535_v16 = vld [vmem:[#allocation2 + $0x89] sm:$0xff]  ;;  %v3169_v17 = vld [vmem:[#allocation2 + $0x9d] sm:$0xff] }
  0x35   : > { %v536_v18 = vld [vmem:[#allocation2 + $0x91] sm:$0xff]  ;;  %v349_v19 = vld [vmem:[%s9710_s6 + $0x148] sm:$0xff]  ;;  %v352_v23 = vld [vmem:[%s9710_s6 + $0x160] sm:$0xff] }
  0x36   : > { %8215 = vmatmul.mubr.msk.f32.gmra.mrb[10].mxu1 %vm372_vm0, %v529_v62  ;;  %v3170_v20 = vld [vmem:[#allocation2 + $0xa5] sm:$0xff]  ;;  %414 = vst.msk [vmem:[#allocation2 + $0x148] sm:$0xff] %vm372_vm0, %v349_v19  ;;  %v350_v21 = vld [vmem:[%s9710_s6 + $0x150] sm:$0xff]  ;;  %v351_v22 = vld [vmem:[%s9710_s6 + $0x158] sm:$0xff] }
  0x37   : > { %8607 = vmatmul.mubr.msk.f32.gmra.mrb[10].mxu0 %vm372_vm0, %v3163_v0  ;;  %8217 = vmatprep.mubr.msk.f32.mxu1 %vm372_vm0, %v530_v1  ;;  %415 = vst.msk [vmem:[#allocation2 + $0x150] sm:$0xff] %vm372_vm0, %v350_v21  ;;  %416 = vst.msk [vmem:[#allocation2 + $0x158] sm:$0xff] %vm372_vm0, %v351_v22  ;;  %v537_v24 = vld [vmem:[#allocation2 + $0x99] sm:$0xff]  ;;  %v353_v25 = vld [vmem:[%s9710_s6 + $0x168] sm:$0xff] }
  0x38   : > { %8609 = vmatprep.mubr.msk.f32.mxu0 %vm372_vm0, %v3164_v3  ;;  %417 = vst.msk [vmem:[#allocation2 + $0x160] sm:$0xff] %vm372_vm0, %v352_v23  ;;  %v354_v26 = vld [vmem:[%s9710_s6 + $0x170] sm:$0xff]  ;;  %v538_v28 = vld [vmem:[#allocation2 + $0xa1] sm:$0xff]  ;;  %418 = vst.msk [vmem:[#allocation2 + $0x168] sm:$0xff] %vm372_vm0, %v353_v25 }
  0x39   : > { %v3171_v27 = vld [vmem:[#allocation2 + $0xad] sm:$0xff]  ;;  %419 = vst.msk [vmem:[#allocation2 + $0x170] sm:$0xff] %vm372_vm0, %v354_v26  ;;  %v355_v29 = vld [vmem:[%s9710_s6 + $0x178] sm:$0xff]  ;;  %v356_v31 = vld [vmem:[%s9710_s6 + $0x180] sm:$0xff] }
  0x3a   : > { %8218 = vmatmul.mubr.msk.f32.gmra.mrb[12].mxu1 %vm372_vm0, %v531_v7  ;;  %v3172_v30 = vld [vmem:[#allocation2 + $0xb5] sm:$0xff]  ;;  %420 = vst.msk [vmem:[#allocation2 + $0x178] sm:$0xff] %vm372_vm0, %v355_v29  ;;  %v357_v32 = vld [vmem:[%s9710_s6 + $0x188] sm:$0xff]  ;;  %421 = vst.msk [vmem:[#allocation2 + $0x180] sm:$0xff] %vm372_vm0, %v356_v31 }
  0x3b   : > { %8610 = vmatmul.mubr.msk.f32.gmra.mrb[12].mxu0 %vm372_vm0, %v3165_v9  ;;  %8220 = vmatprep.mubr.msk.f32.mxu1 %vm372_vm0, %v532_v10  ;;  %422 = vst.msk [vmem:[#allocation2 + $0x188] sm:$0xff] %vm372_vm0, %v357_v32  ;;  %v358_v33 = vld [vmem:[%s9710_s6 + $0x190] sm:$0xff]  ;;  %v359_v36 = vld [vmem:[%s9710_s6 + $0x198] sm:$0xff]  ;;  %v360_v37 = vld [vmem:[%s9710_s6 + $0x1a0] sm:$0xff] }
  0x3c   : > { %8612 = vmatprep.mubr.msk.f32.mxu0 %vm372_vm0, %v3166_v11  ;;  %v539_v34 = vld [vmem:[#allocation2 + $0xa9] sm:$0xff]  ;;  %423 = vst.msk [vmem:[#allocation2 + $0x190] sm:$0xff] %vm372_vm0, %v358_v33  ;;  %v3173_v38 = vld [vmem:[#allocation2 + $0xbd] sm:$0xff]  ;;  %v540_v39 = vld [vmem:[#allocation2 + $0xb1] sm:$0xff] }
  0x3d   : > { %424 = vst.msk [vmem:[#allocation2 + $0x198] sm:$0xff] %vm372_vm0, %v359_v36  ;;  %425 = vst.msk [vmem:[#allocation2 + $0x1a0] sm:$0xff] %vm372_vm0, %v360_v37  ;;  %v361_v40 = vld [vmem:[%s9710_s6 + $0x1a8] sm:$0xff]  ;;  %v362_v42 = vld [vmem:[%s9710_s6 + $0x1b0] sm:$0xff] }
  0x3e   : > { %8221 = vmatmul.mubr.msk.f32.gmra.mrb[14].mxu1 %vm372_vm0, %v533_v12  ;;  %v3174_v41 = vld [vmem:[#allocation2 + $0xc5] sm:$0xff]  ;;  %426 = vst.msk [vmem:[#allocation2 + $0x1a8] sm:$0xff] %vm372_vm0, %v361_v40  ;;  %v541_v43 = vld [vmem:[#allocation2 + $0xb9] sm:$0xff]  ;;  %427 = vst.msk [vmem:[#allocation2 + $0x1b0] sm:$0xff] %vm372_vm0, %v362_v42 }
  0x3f   : > { %8613 = vmatmul.mubr.msk.f32.gmra.mrb[14].mxu0 %vm372_vm0, %v3167_v13  ;;  %8223 = vmatprep.mubr.msk.f32.mxu1 %vm372_vm0, %v534_v14  ;;  %v363_v44 = vld [vmem:[%s9710_s6 + $0x1b8] sm:$0xff]  ;;  %v3175_v45 = vld [vmem:[#allocation2 + $0xcd] sm:$0xff]  ;;  %v542_v46 = vld [vmem:[#allocation2 + $0xc1] sm:$0xff] }
  0x40   : > { %8615 = vmatprep.mubr.msk.f32.mxu0 %vm372_vm0, %v3168_v15  ;;  %428 = vst.msk [vmem:[#allocation2 + $0x1b8] sm:$0xff] %vm372_vm0, %v363_v44  ;;  %v364_v47 = vld [vmem:[%s9710_s6 + $0x1c0] sm:$0xff]  ;;  %v3176_v48 = vld [vmem:[#allocation2 + $0xd5] sm:$0xff]  ;;  %v365_v49 = vld [vmem:[%s9710_s6 + $0x1c8] sm:$0xff] }
  0x41   : > { %429 = vst.msk [vmem:[#allocation2 + $0x1c0] sm:$0xff] %vm372_vm0, %v364_v47  ;;  %v543_v50 = vld [vmem:[#allocation2 + $0xc9] sm:$0xff]  ;;  %430 = vst.msk [vmem:[#allocation2 + $0x1c8] sm:$0xff] %vm372_vm0, %v365_v49  ;;  %v3177_v52 = vld [vmem:[#allocation2 + $0xdd] sm:$0xff] }
  0x42   : > { %8224 = vmatmul.mubr.msk.f32.gmra.mrb[16].mxu1 %vm372_vm0, %v535_v16  ;;  %v366_v51 = vld [vmem:[%s9710_s6 + $0x1d0] sm:$0xff]  ;;  %v367_v54 = vld [vmem:[%s9710_s6 + $0x1d8] sm:$0xff]  ;;  %v3178_v55 = vld [vmem:[#allocation2 + $0xe5] sm:$0xff] }
  0x43   : > { %8616 = vmatmul.mubr.msk.f32.gmra.mrb[16].mxu0 %vm372_vm0, %v3169_v17  ;;  %8226 = vmatprep.mubr.msk.f32.mxu1 %vm372_vm0, %v536_v18  ;;  %v544_v53 = vld [vmem:[#allocation2 + $0xd1] sm:$0xff]  ;;  %431 = vst.msk [vmem:[#allocation2 + $0x1d0] sm:$0xff] %vm372_vm0, %v366_v51  ;;  %432 = vst.msk [vmem:[#allocation2 + $0x1d8] sm:$0xff] %vm372_vm0, %v367_v54  ;;  %v368_v56 = vld [vmem:[%s9710_s6 + $0x1e0] sm:$0xff] }
  0x44   : > { %8618 = vmatprep.mubr.msk.f32.mxu0 %vm372_vm0, %v3170_v20  ;;  %433 = vst.msk [vmem:[#allocation2 + $0x1e0] sm:$0xff] %vm372_vm0, %v368_v56  ;;  %v369_v57 = vld [vmem:[%s9710_s6 + $0x1e8] sm:$0xff]  ;;  %v545_v58 = vld [vmem:[#allocation2 + $0xd9] sm:$0xff]  ;;  %v370_v60 = vld [vmem:[%s9710_s6 + $0x1f0] sm:$0xff] }
  0x45   : > { %v3179_v59 = vld [vmem:[#allocation2 + $0xed] sm:$0xff]  ;;  %434 = vst.msk [vmem:[#allocation2 + $0x1e8] sm:$0xff] %vm372_vm0, %v369_v57  ;;  %v546_v61 = vld [vmem:[#allocation2 + $0xe1] sm:$0xff]  ;;  %v3180_v62 = vld [vmem:[#allocation2 + $0xf5] sm:$0xff] }
  0x46   : > { %8227 = vmatmul.mubr.msk.f32.gmra.mrb[18].mxu1 %vm372_vm0, %v537_v24  ;;  %435 = vst.msk [vmem:[#allocation2 + $0x1f0] sm:$0xff] %vm372_vm0, %v370_v60  ;;  %v371_v63 = vld [vmem:[%s9710_s6 + $0x1f8] sm:$0xff]  ;;  %v437_v0 = vld [vmem:[%s9908_s14] sm:$0xff]  ;;  %v547_v1 = vld [vmem:[#allocation2 + $0xe9] sm:$0xff] }
  0x47   : > { %8619 = vmatmul.mubr.msk.f32.gmra.mrb[18].mxu0 %vm372_vm0, %v3171_v27  ;;  %8229 = vmatprep.mubr.msk.f32.mxu1 %vm372_vm0, %v538_v28  ;;  %436 = vst.msk [vmem:[#allocation2 + $0x1f8] sm:$0xff] %vm372_vm0, %v371_v63  ;;  %445 = vst.msk [vmem:[#allocation2 + $0x200] sm:$0xff] %vm372_vm0, %v437_v0  ;;  %v9926_v2 = vld [vmem:[%s11183_s2 + $0x10] sm:$0xff]  ;;  %v3181_v3 = vld [vmem:[#allocation2 + $0xfd] sm:$0xff] }
  0x48   : > { %8621 = vmatprep.mubr.msk.f32.mxu0 %vm372_vm0, %v3172_v30  ;;  %v548_v4 = vld [vmem:[#allocation2 + $0xf1] sm:$0xff]  ;;  %8393 = vmatprep.subr.mxu1 %v9926_v2  ;;  %v3182_v5 = vld [vmem:[#allocation2 + $0x105] sm:$0xff]  ;;  %v549_v6 = vld [vmem:[#allocation2 + $0xf9] sm:$0xff] }
  0x49   : > { %v3183_v7 = vld [vmem:[#allocation2 + $0x10d] sm:$0xff]  ;;  %v550_v8 = vld [vmem:[#allocation2 + $0x101] sm:$0xff]  ;;  %v3859_v9 = vld [vmem:[#allocation2 + $0x16] sm:$0xff] }
  0x4a   : > { %8230 = vmatmul.mubr.msk.f32.gmra.mrb[20].mxu1 %vm372_vm0, %v539_v34  ;;  %v551_v10 = vld [vmem:[#allocation2 + $0x109] sm:$0xff]  ;;  %v3860_v11 = vld [vmem:[#allocation2 + $0x1e] sm:$0xff]  ;;  %v552_v12 = vld [vmem:[#allocation2 + $0x111] sm:$0xff] }
  0x4b   : > { %8622 = vmatmul.mubr.msk.f32.gmra.mrb[20].mxu0 %vm372_vm0, %v3173_v38  ;;  %8232 = vmatprep.mubr.msk.f32.mxu1 %vm372_vm0, %v540_v39  ;;  %v3861_v13 = vld [vmem:[#allocation2 + $0x26] sm:$0xff]  ;;  %v553_v14 = vld [vmem:[#allocation2 + $0x119] sm:$0xff]  ;;  %v3862_v15 = vld [vmem:[#allocation2 + $0x2e] sm:$0xff] }
  0x4c   : > { %8624 = vmatprep.mubr.msk.f32.mxu0 %vm372_vm0, %v3174_v41  ;;  %v554_v16 = vld [vmem:[#allocation2 + $0x121] sm:$0xff]  ;;  %v3863_v17 = vld [vmem:[#allocation2 + $0x36] sm:$0xff]  ;;  %v555_v18 = vld [vmem:[#allocation2 + $0x129] sm:$0xff] }
  0x4d   : > { %v3864_v19 = vld [vmem:[#allocation2 + $0x3e] sm:$0xff]  ;;  %v556_v20 = vld [vmem:[#allocation2 + $0x131] sm:$0xff]  ;;  %v3865_v21 = vld [vmem:[#allocation2 + $0x46] sm:$0xff] }
  0x4e   : > { %8233 = vmatmul.mubr.msk.f32.gmra.mrb[22].mxu1 %vm372_vm0, %v541_v43  ;;  %v3866_v22 = vld [vmem:[#allocation2 + $0x4e] sm:$0xff]  ;;  %v558_v23 = vld [vmem:[#allocation2 + $0x141] sm:$0xff]  ;;  %v3867_v24 = vld [vmem:[#allocation2 + $0x56] sm:$0xff] }
  0x4f   : > { %8625 = vmatmul.mubr.msk.f32.gmra.mrb[22].mxu0 %vm372_vm0, %v3175_v45  ;;  %8235 = vmatprep.mubr.msk.f32.mxu1 %vm372_vm0, %v542_v46  ;;  %v438_v25 = vld [vmem:[%s9908_s14 + $0x8] sm:$0xff]  ;;  %v439_v26 = vld [vmem:[%s9908_s14 + $0x10] sm:$0xff]  ;;  %v9961_v28 = vld [vmem:[%s11183_s2 + $0x38] sm:$0xff] }
  0x50   : > { %8627 = vmatprep.mubr.msk.f32.mxu0 %vm372_vm0, %v3176_v48  ;;  %446 = vst.msk [vmem:[#allocation2 + $0x208] sm:$0xff] %vm372_vm0, %v438_v25  ;;  %v559_v27 = vld [vmem:[#allocation2 + $0x149] sm:$0xff]  ;;  %447 = vst.msk [vmem:[#allocation2 + $0x210] sm:$0xff] %vm372_vm0, %v439_v26  ;;  %v3868_v29 = vld [vmem:[#allocation2 + $0x5e] sm:$0xff] }
  0x51   : > { %v560_v30 = vld [vmem:[#allocation2 + $0x151] sm:$0xff]  ;;  %v3869_v31 = vld [vmem:[#allocation2 + $0x66] sm:$0xff]  ;;  %v561_v32 = vld [vmem:[#allocation2 + $0x159] sm:$0xff] }
  0x52   : > { %8236 = vmatmul.mubr.msk.f32.gmra.mrb[24].mxu1 %vm372_vm0, %v543_v50  ;;  %v3870_v33 = vld [vmem:[#allocation2 + $0x6e] sm:$0xff]  ;;  %v562_v34 = vld [vmem:[#allocation2 + $0x161] sm:$0xff]  ;;  %v3871_v36 = vld [vmem:[#allocation2 + $0x76] sm:$0xff] }
  0x53   : > { %8628 = vmatmul.mubr.msk.f32.gmra.mrb[24].mxu0 %vm372_vm0, %v3177_v52  ;;  %8238 = vmatprep.mubr.msk.f32.mxu1 %vm372_vm0, %v544_v53  ;;  %v563_v37 = vld [vmem:[#allocation2 + $0x169] sm:$0xff]  ;;  %v3872_v38 = vld [vmem:[#allocation2 + $0x7e] sm:$0xff]  ;;  %v564_v39 = vld [vmem:[#allocation2 + $0x171] sm:$0xff] }
  0x54   : > { %8630 = vmatprep.mubr.msk.f32.mxu0 %vm372_vm0, %v3178_v55  ;;  %v3873_v40 = vld [vmem:[#allocation2 + $0x86] sm:$0xff]  ;;  %v565_v41 = vld [vmem:[#allocation2 + $0x179] sm:$0xff]  ;;  %v3874_v42 = vld [vmem:[#allocation2 + $0x8e] sm:$0xff] }
  0x55   : > { %v566_v43 = vld [vmem:[#allocation2 + $0x181] sm:$0xff]  ;;  %v3875_v44 = vld [vmem:[#allocation2 + $0x96] sm:$0xff]  ;;  %v567_v45 = vld [vmem:[#allocation2 + $0x189] sm:$0xff] }
  0x56   : > { %8239 = vmatmul.mubr.msk.f32.gmra.mrb[26].mxu1 %vm372_vm0, %v545_v58  ;;  %v3876_v46 = vld [vmem:[#allocation2 + $0x9e] sm:$0xff]  ;;  %v568_v47 = vld [vmem:[#allocation2 + $0x191] sm:$0xff]  ;;  %v3877_v48 = vld [vmem:[#allocation2 + $0xa6] sm:$0xff] }
  0x57   : > { %8631 = vmatmul.mubr.msk.f32.gmra.mrb[26].mxu0 %vm372_vm0, %v3179_v59  ;;  %8241 = vmatprep.mubr.msk.f32.mxu1 %vm372_vm0, %v546_v61  ;;  %v569_v49 = vld [vmem:[#allocation2 + $0x199] sm:$0xff]  ;;  %v3878_v50 = vld [vmem:[#allocation2 + $0xae] sm:$0xff]  ;;  %v570_v51 = vld [vmem:[#allocation2 + $0x1a1] sm:$0xff] }
  0x58   : > { %8633 = vmatprep.mubr.msk.f32.mxu0 %vm372_vm0, %v3180_v62  ;;  %v3879_v52 = vld [vmem:[#allocation2 + $0xb6] sm:$0xff]  ;;  %v571_v53 = vld [vmem:[#allocation2 + $0x1a9] sm:$0xff]  ;;  %v3880_v54 = vld [vmem:[#allocation2 + $0xbe] sm:$0xff] }
  0x59   : > { %v572_v55 = vld [vmem:[#allocation2 + $0x1b1] sm:$0xff]  ;;  %v3881_v56 = vld [vmem:[#allocation2 + $0xc6] sm:$0xff]  ;;  %v573_v57 = vld [vmem:[#allocation2 + $0x1b9] sm:$0xff] }
  0x5a   : > { %8242 = vmatmul.mubr.msk.f32.gmra.mrb[28].mxu1 %vm372_vm0, %v547_v1  ;;  %v3882_v58 = vld [vmem:[#allocation2 + $0xce] sm:$0xff]  ;;  %v574_v59 = vld [vmem:[#allocation2 + $0x1c1] sm:$0xff]  ;;  %v3883_v60 = vld [vmem:[#allocation2 + $0xd6] sm:$0xff] }
  0x5b   : > { %8634 = vmatmul.mubr.msk.f32.gmra.mrb[28].mxu0 %vm372_vm0, %v3181_v3  ;;  %8244 = vmatprep.mubr.msk.f32.mxu1 %vm372_vm0, %v548_v4  ;;  %v575_v61 = vld [vmem:[#allocation2 + $0x1c9] sm:$0xff]  ;;  %v3884_v62 = vld [vmem:[#allocation2 + $0xde] sm:$0xff]  ;;  %v576_v63 = vld [vmem:[#allocation2 + $0x1d1] sm:$0xff] }
  0x5c   : > { %8636 = vmatprep.mubr.msk.f32.mxu0 %vm372_vm0, %v3182_v5  ;;  %v3885_v0 = vld [vmem:[#allocation2 + $0xe6] sm:$0xff]  ;;  %v577_v1 = vld [vmem:[#allocation2 + $0x1d9] sm:$0xff]  ;;  %v3886_v3 = vld [vmem:[#allocation2 + $0xee] sm:$0xff] }
  0x5d   : > { %v578_v4 = vld [vmem:[#allocation2 + $0x1e1] sm:$0xff]  ;;  %v3887_v5 = vld [vmem:[#allocation2 + $0xf6] sm:$0xff]  ;;  %v3898_v26 = vld [vmem:[#allocation2 + $0x14e] sm:$0xff] }
  0x5e   : > { %8245 = vmatmul.mubr.msk.f32.gmra.mrb[30].mxu1 %vm372_vm0, %v549_v6  ;;  %v579_v6 = vld [vmem:[#allocation2 + $0x1e9] sm:$0xff]  ;;  %v10037_v25 = vld [vmem:[#allocation2 + $0x38] sm:$0xff] }
  0x5f   : > { %8637 = vmatmul.mubr.msk.f32.gmra.mrb[30].mxu0 %vm372_vm0, %v3183_v7  ;;  %8247 = vmatprep.mubr.msk.f32.mxu1 %vm372_vm0, %v550_v8  ;;  %v3888_v7 = vld [vmem:[#allocation2 + $0xfe] sm:$0xff]  ;;  %v580_v8 = vld [vmem:[#allocation2 + $0x1f1] sm:$0xff] }
  0x60   : > { %8689 = vmatprep.mubr.msk.f32.mxu0 %vm372_vm0, %v3859_v9  ;;  %v3889_v9 = vld [vmem:[#allocation2 + $0x106] sm:$0xff] }
  0x62   : > { %8248 = vmatmul.mubr.msk.f32.gmra.mrb[32].mxu1 %vm372_vm0, %v551_v10  ;;  %v581_v10 = vld [vmem:[#allocation2 + $0x1f9] sm:$0xff] }
  0x63   : > { %8690 = vmatmul.mubr.msk.f32.vlgmr.msra.gmra.mrb[0].mxu0 %vm372_vm0, %v3860_v11  ;;  %8250 = vmatprep.mubr.msk.f32.mxu1 %vm372_vm0, %v552_v12  ;;  %v3890_v11 = vld [vmem:[#allocation2 + $0x10e] sm:$0xff]  ;;  %v453_v12 = vld [vmem:[#allocation2] sm:$0xff] }
  0x64   : > { %8786 = vmatpush3.msra.mxu0 %v9768_v35  ;;  %8692 = vmatprep.mubr.msk.f32.mxu0 %vm372_vm0, %v3861_v13  ;;  %v557_v35 = vld [vmem:[#allocation2 + $0x139] sm:$0xff] }
  0x65   : > { %8883 = vmatprep.subr.mxu0 %v9961_v28  ;;  %v3891_v13 = vld [vmem:[#allocation2 + $0x116] sm:$0xff] }
  0x66   : > { %8251 = vmatmul.mubr.msk.f32.gmra.mrb[34].mxu1 %vm372_vm0, %v553_v14  ;;  %v454_v14 = vld [vmem:[#allocation2 + $0x8] sm:$0xff] }
  0x67   : > { %8693 = vmatmul.mubr.msk.f32.gmra.mrb[2].mxu0 %vm372_vm0, %v3862_v15  ;;  %8253 = vmatprep.mubr.msk.f32.mxu1 %vm372_vm0, %v554_v16  ;;  %v3892_v15 = vld [vmem:[#allocation2 + $0x11e] sm:$0xff]  ;;  %v455_v16 = vld [vmem:[#allocation2 + $0x10] sm:$0xff] }
  0x68   : > { %8695 = vmatprep.mubr.msk.f32.mxu0 %vm372_vm0, %v3863_v17  ;;  %v3893_v17 = vld [vmem:[#allocation2 + $0x126] sm:$0xff] }
  0x6a   : > { %8254 = vmatmul.mubr.msk.f32.gmra.mrb[36].mxu1 %vm372_vm0, %v555_v18  ;;  %v10017_v18 = vld [vmem:[%s11183_s2 + $0x18] sm:$0xff] }
  0x6b   : > { %8696 = vmatmul.mubr.msk.f32.gmra.mrb[4].mxu0 %vm372_vm0, %v3864_v19  ;;  %8256 = vmatprep.mubr.msk.f32.mxu1 %vm372_vm0, %v556_v20  ;;  %v456_v19 = vld [vmem:[#allocation2 + $0x18] sm:$0xff]  ;;  %v3894_v20 = vld [vmem:[#allocation2 + $0x12e] sm:$0xff] }
  0x6c   : > { %8698 = vmatprep.mubr.msk.f32.mxu0 %vm372_vm0, %v3865_v21  ;;  %v457_v21 = vld [vmem:[#allocation2 + $0x20] sm:$0xff] }
  0x6e   : > { %8257 = vmatmul.mubr.msk.f32.gmra.mrb[38].mxu1 %vm372_vm0, %v557_v35  ;;  %v3895_v35 = vld [vmem:[#allocation2 + $0x136] sm:$0xff] }
  0x6f   : > { %8699 = vmatmul.mubr.msk.f32.gmra.mrb[6].mxu0 %vm372_vm0, %v3866_v22  ;;  %8259 = vmatprep.mubr.msk.f32.mxu1 %vm372_vm0, %v558_v23  ;;  %v10027_v22 = vld [vmem:[#allocation2 + $0x28] sm:$0xff]  ;;  %v10030_v23 = vld [vmem:[#allocation2 + $0x30] sm:$0xff] }
  0x70   : > { %8701 = vmatprep.mubr.msk.f32.mxu0 %vm372_vm0, %v3867_v24  ;;  %v3897_v24 = vld [vmem:[#allocation2 + $0x146] sm:$0xff] }
  0x72   : > { %8260 = vmatmul.mubr.msk.f32.gmra.mrb[40].mxu1 %vm372_vm0, %v559_v27  ;;  %v10040_v27 = vld [vmem:[#allocation2 + $0x40] sm:$0xff] }
  0x73   : > { %8702 = vmatmul.mubr.msk.f32.gmra.mrb[8].mxu0 %vm372_vm0, %v3868_v29  ;;  %8262 = vmatprep.mubr.msk.f32.mxu1 %vm372_vm0, %v560_v30  ;;  %v3899_v29 = vld [vmem:[#allocation2 + $0x156] sm:$0xff]  ;;  %v10047_v30 = vld [vmem:[#allocation2 + $0x48] sm:$0xff] }
  0x74   : > { %8704 = vmatprep.mubr.msk.f32.mxu0 %vm372_vm0, %v3869_v31  ;;  %v3900_v31 = vld [vmem:[#allocation2 + $0x15e] sm:$0xff] }
  0x76   : > { %8263 = vmatmul.mubr.msk.f32.gmra.mrb[42].mxu1 %vm372_vm0, %v561_v32  ;;  %v10050_v32 = vld [vmem:[#allocation2 + $0x50] sm:$0xff] }
  0x77   : > { %8705 = vmatmul.mubr.msk.f32.gmra.mrb[10].mxu0 %vm372_vm0, %v3870_v33  ;;  %8265 = vmatprep.mubr.msk.f32.mxu1 %vm372_vm0, %v562_v34  ;;  %v3901_v33 = vld [vmem:[#allocation2 + $0x166] sm:$0xff]  ;;  %v10057_v34 = vld [vmem:[#allocation2 + $0x58] sm:$0xff] }
  0x78   : > { %8707 = vmatprep.mubr.msk.f32.mxu0 %vm372_vm0, %v3871_v36  ;;  %v3902_v36 = vld [vmem:[#allocation2 + $0x16e] sm:$0xff] }
  0x7a   : > { %8266 = vmatmul.mubr.msk.f32.gmra.mrb[44].mxu1 %vm372_vm0, %v563_v37  ;;  %v10060_v37 = vld [vmem:[#allocation2 + $0x60] sm:$0xff] }
  0x7b   : > { %8708 = vmatmul.mubr.msk.f32.gmra.mrb[12].mxu0 %vm372_vm0, %v3872_v38  ;;  %8268 = vmatprep.mubr.msk.f32.mxu1 %vm372_vm0, %v564_v39  ;;  %v3903_v38 = vld [vmem:[#allocation2 + $0x176] sm:$0xff]  ;;  %v10067_v39 = vld [vmem:[#allocation2 + $0x68] sm:$0xff] }
  0x7c   : > { %8710 = vmatprep.mubr.msk.f32.mxu0 %vm372_vm0, %v3873_v40  ;;  %v3904_v40 = vld [vmem:[#allocation2 + $0x17e] sm:$0xff] }
  0x7e   : > { %8269 = vmatmul.mubr.msk.f32.gmra.mrb[46].mxu1 %vm372_vm0, %v565_v41  ;;  %v10070_v41 = vld [vmem:[#allocation2 + $0x70] sm:$0xff] }
  0x7f   : > { %8711 = vmatmul.mubr.msk.f32.gmra.mrb[14].mxu0 %vm372_vm0, %v3874_v42  ;;  %8271 = vmatprep.mubr.msk.f32.mxu1 %vm372_vm0, %v566_v43  ;;  %v3905_v42 = vld [vmem:[#allocation2 + $0x186] sm:$0xff]  ;;  %v10077_v43 = vld [vmem:[#allocation2 + $0x78] sm:$0xff] }
  0x80   : > { %8713 = vmatprep.mubr.msk.f32.mxu0 %vm372_vm0, %v3875_v44  ;;  %v3906_v44 = vld [vmem:[#allocation2 + $0x18e] sm:$0xff] }
  0x82   : > { %8272 = vmatmul.mubr.msk.f32.gmra.mrb[48].mxu1 %vm372_vm0, %v567_v45  ;;  %v10080_v45 = vld [vmem:[#allocation2 + $0x80] sm:$0xff] }
  0x83   : > { %8714 = vmatmul.mubr.msk.f32.gmra.mrb[16].mxu0 %vm372_vm0, %v3876_v46  ;;  %8274 = vmatprep.mubr.msk.f32.mxu1 %vm372_vm0, %v568_v47  ;;  %v3907_v46 = vld [vmem:[#allocation2 + $0x196] sm:$0xff]  ;;  %v10087_v47 = vld [vmem:[#allocation2 + $0x88] sm:$0xff] }
  0x84   : > { %8716 = vmatprep.mubr.msk.f32.mxu0 %vm372_vm0, %v3877_v48  ;;  %v3908_v48 = vld [vmem:[#allocation2 + $0x19e] sm:$0xff] }
  0x86   : > { %8275 = vmatmul.mubr.msk.f32.gmra.mrb[50].mxu1 %vm372_vm0, %v569_v49  ;;  %v10090_v49 = vld [vmem:[#allocation2 + $0x90] sm:$0xff] }
  0x87   : > { %8717 = vmatmul.mubr.msk.f32.gmra.mrb[18].mxu0 %vm372_vm0, %v3878_v50  ;;  %8277 = vmatprep.mubr.msk.f32.mxu1 %vm372_vm0, %v570_v51  ;;  %v3909_v50 = vld [vmem:[#allocation2 + $0x1a6] sm:$0xff]  ;;  %v10097_v51 = vld [vmem:[#allocation2 + $0x98] sm:$0xff] }
  0x88   : > { %8719 = vmatprep.mubr.msk.f32.mxu0 %vm372_vm0, %v3879_v52  ;;  %v3910_v52 = vld [vmem:[#allocation2 + $0x1ae] sm:$0xff] }
  0x8a   : > { %8278 = vmatmul.mubr.msk.f32.gmra.mrb[52].mxu1 %vm372_vm0, %v571_v53  ;;  %v10100_v53 = vld [vmem:[#allocation2 + $0xa0] sm:$0xff] }
  0x8b   : > { %8720 = vmatmul.mubr.msk.f32.gmra.mrb[20].mxu0 %vm372_vm0, %v3880_v54  ;;  %8280 = vmatprep.mubr.msk.f32.mxu1 %vm372_vm0, %v572_v55  ;;  %v3911_v54 = vld [vmem:[#allocation2 + $0x1b6] sm:$0xff]  ;;  %v10107_v55 = vld [vmem:[#allocation2 + $0xa8] sm:$0xff] }
  0x8c   : > { %8722 = vmatprep.mubr.msk.f32.mxu0 %vm372_vm0, %v3881_v56  ;;  %v3912_v56 = vld [vmem:[#allocation2 + $0x1be] sm:$0xff] }
  0x8e   : > { %8281 = vmatmul.mubr.msk.f32.gmra.mrb[54].mxu1 %vm372_vm0, %v573_v57  ;;  %v10110_v57 = vld [vmem:[#allocation2 + $0xb0] sm:$0xff] }
  0x8f   : > { %8723 = vmatmul.mubr.msk.f32.gmra.mrb[22].mxu0 %vm372_vm0, %v3882_v58  ;;  %8283 = vmatprep.mubr.msk.f32.mxu1 %vm372_vm0, %v574_v59  ;;  %v3913_v58 = vld [vmem:[#allocation2 + $0x1c6] sm:$0xff]  ;;  %v10117_v59 = vld [vmem:[#allocation2 + $0xb8] sm:$0xff] }
  0x90   : > { %8725 = vmatprep.mubr.msk.f32.mxu0 %vm372_vm0, %v3883_v60  ;;  %v3914_v60 = vld [vmem:[#allocation2 + $0x1ce] sm:$0xff] }
  0x92   : > { %8284 = vmatmul.mubr.msk.f32.gmra.mrb[56].mxu1 %vm372_vm0, %v575_v61  ;;  %v10120_v61 = vld [vmem:[#allocation2 + $0xc0] sm:$0xff] }
  0x93   : > { %8726 = vmatmul.mubr.msk.f32.gmra.mrb[24].mxu0 %vm372_vm0, %v3884_v62  ;;  %8286 = vmatprep.mubr.msk.f32.mxu1 %vm372_vm0, %v576_v63  ;;  %v3915_v62 = vld [vmem:[#allocation2 + $0x1d6] sm:$0xff]  ;;  %v10127_v63 = vld [vmem:[#allocation2 + $0xc8] sm:$0xff] }
  0x94   : > { %8728 = vmatprep.mubr.msk.f32.mxu0 %vm372_vm0, %v3885_v0  ;;  %v3916_v0 = vld [vmem:[#allocation2 + $0x1de] sm:$0xff] }
  0x96   : > { %8287 = vmatmul.mubr.msk.f32.gmra.mrb[58].mxu1 %vm372_vm0, %v577_v1  ;;  %v10130_v1 = vld [vmem:[#allocation2 + $0xd0] sm:$0xff] }
  0x97   : > { %8729 = vmatmul.mubr.msk.f32.gmra.mrb[26].mxu0 %vm372_vm0, %v3886_v3  ;;  %8289 = vmatprep.mubr.msk.f32.mxu1 %vm372_vm0, %v578_v4  ;;  %v3917_v3 = vld [vmem:[#allocation2 + $0x1e6] sm:$0xff]  ;;  %v10137_v4 = vld [vmem:[#allocation2 + $0xd8] sm:$0xff] }
  0x98   : > { %8731 = vmatprep.mubr.msk.f32.mxu0 %vm372_vm0, %v3887_v5  ;;  %v3918_v5 = vld [vmem:[#allocation2 + $0x1ee] sm:$0xff] }
  0x9a   : > { %8290 = vmatmul.mubr.msk.f32.gmra.mrb[60].mxu1 %vm372_vm0, %v579_v6  ;;  %v10140_v6 = vld [vmem:[#allocation2 + $0xe0] sm:$0xff] }
  0x9b   : > { %8732 = vmatmul.mubr.msk.f32.gmra.mrb[28].mxu0 %vm372_vm0, %v3888_v7  ;;  %8292 = vmatprep.mubr.msk.f32.mxu1 %vm372_vm0, %v580_v8  ;;  %v3919_v7 = vld [vmem:[#allocation2 + $0x1f6] sm:$0xff] }
  0x9c   : > { %8734 = vmatprep.mubr.msk.f32.mxu0 %vm372_vm0, %v3889_v9  ;;  %v440_v8 = vld [vmem:[%s9908_s14 + $0x18] sm:$0xff]  ;;  %v441_v9 = vld [vmem:[%s9908_s14 + $0x20] sm:$0xff] }
  0x9d   : > { %448 = vst.msk [vmem:[#allocation2 + $0x218] sm:$0xff] %vm372_vm0, %v440_v8  ;;  %449 = vst.msk [vmem:[#allocation2 + $0x220] sm:$0xff] %vm372_vm0, %v441_v9  ;;  %v10486_v8 = vld [vmem:[#allocation2 + $0xb2] sm:$0xff]  ;;  %v10494_v9 = vld [vmem:[#allocation2 + $0xba] sm:$0xff] }
  0x9e   : > { %8293 = vmatmul.mubr.msk.f32.gmra.mrb[62].mxu1 %vm372_vm0, %v581_v10  ;;  %v10150_v10 = vld [vmem:[#allocation2 + $0xe8] sm:$0xff] }
  0x9f   : > { %8735 = vmatmul.mubr.msk.f32.gmra.mrb[30].mxu0 %vm372_vm0, %v3890_v11  ;;  %8297 = vmatprep.mubr.msk.f32.mxu1 %vm372_vm0, %v453_v12  ;;  %v3920_v11 = vld [vmem:[#allocation2 + $0x1fe] sm:$0xff]  ;;  %v10154_v12 = vld [vmem:[#allocation2 + $0xf0] sm:$0xff] }
  0xa0   : > { %8737 = vmatprep.mubr.msk.f32.mxu0 %vm372_vm0, %v3891_v13  ;;  %v3921_v13 = vld [vmem:[#allocation2 + $0x206] sm:$0xff] }
  0xa2   : > { %8298 = vmatmul.mubr.msk.f32.vlgmr.msra.gmra.mrb[0].mxu1 %vm372_vm0, %v454_v14  ;;  %v10161_v14 = vld [vmem:[#allocation2 + $0xf8] sm:$0xff] }
  0xa3   : > { %8394 = vmatpush3.msra.mxu1 %v9926_v2  ;;  %8738 = vmatmul.mubr.msk.f32.gmra.mrb[32].mxu0 %vm372_vm0, %v3892_v15  ;;  %v3896_v2 = vld [vmem:[#allocation2 + $0x13e] sm:$0xff]  ;;  %v3922_v15 = vld [vmem:[#allocation2 + $0x20e] sm:$0xff] }
  0xa4   : > { %8300 = vmatprep.mubr.msk.f32.mxu1 %vm372_vm0, %v455_v16  ;;  %8740 = vmatprep.mubr.msk.f32.mxu0 %vm372_vm0, %v3893_v17  ;;  %v10164_v16 = vld [vmem:[#allocation2 + $0x100] sm:$0xff]  ;;  %v10171_v17 = vld [vmem:[#allocation2 + $0x108] sm:$0xff] }
  0xa5   : > { %8491 = vmatprep.subr.mxu1 %v10017_v18 }
  0xa6   : > { %8301 = vmatmul.mubr.msk.f32.gmra.mrb[2].mxu1 %vm372_vm0, %v456_v19  ;;  %v10175_v19 = vld [vmem:[#allocation2 + $0x110] sm:$0xff] }
  0xa7   : > { %8741 = vmatmul.mubr.msk.f32.gmra.mrb[34].mxu0 %vm372_vm0, %v3894_v20  ;;  %8303 = vmatprep.mubr.msk.f32.mxu1 %vm372_vm0, %v457_v21  ;;  %v10182_v20 = vld [vmem:[%s11183_s2 + $0x40] sm:$0xff]  ;;  %v10188_v21 = vld [vmem:[#allocation2 + $0x118] sm:$0xff] }
  0xa8   : > { %8743 = vmatprep.mubr.msk.f32.mxu0 %vm372_vm0, %v3895_v35  ;;  %v10193_v35 = vld [vmem:[#allocation2 + $0x120] sm:$0xff] }
  0xaa   : > { %8304 = vmatmul.mubr.msk.f32.gmra.mrb[4].mxu1 %vm372_vm0, %v10027_v22 }
  0xab   : > { %8744 = vmatmul.mubr.msk.f32.gmra.mrb[36].mxu0 %vm372_vm0, %v3896_v2  ;;  %8306 = vmatprep.mubr.msk.f32.mxu1 %vm372_vm0, %v10030_v23  ;;  %v10214_v2 = vld [vmem:[#allocation2 + $0x138] sm:$0xff] }
  0xac   : > { %8746 = vmatprep.mubr.msk.f32.mxu0 %vm372_vm0, %v3897_v24  ;;  %v10226_v24 = vld [vmem:[#allocation2 + $0x148] sm:$0xff] }
  0xae   : > { %8307 = vmatmul.mubr.msk.f32.gmra.mrb[6].mxu1 %vm372_vm0, %v10037_v25 }
  0xaf   : > { %8747 = vmatmul.mubr.msk.f32.gmra.mrb[38].mxu0 %vm372_vm0, %v3898_v26  ;;  %8309 = vmatprep.mubr.msk.f32.mxu1 %vm372_vm0, %v10040_v27  ;;  %v10238_v26 = vld [vmem:[#allocation2 + $0x158] sm:$0xff] }
  0xb0   : > { %8749 = vmatprep.mubr.msk.f32.mxu0 %vm372_vm0, %v3899_v29  ;;  %v10250_v29 = vld [vmem:[#allocation2 + $0x168] sm:$0xff] }
  0xb2   : > { %8310 = vmatmul.mubr.msk.f32.gmra.mrb[8].mxu1 %vm372_vm0, %v10047_v30 }
  0xb3   : > { %8750 = vmatmul.mubr.msk.f32.gmra.mrb[40].mxu0 %vm372_vm0, %v3900_v31  ;;  %8312 = vmatprep.mubr.msk.f32.mxu1 %vm372_vm0, %v10050_v32  ;;  %v10262_v31 = vld [vmem:[#allocation2 + $0x178] sm:$0xff] }
  0xb4   : > { %8752 = vmatprep.mubr.msk.f32.mxu0 %vm372_vm0, %v3901_v33  ;;  %v10274_v33 = vld [vmem:[#allocation2 + $0x188] sm:$0xff] }
  0xb6   : > { %8313 = vmatmul.mubr.msk.f32.gmra.mrb[10].mxu1 %vm372_vm0, %v10057_v34 }
  0xb7   : > { %8753 = vmatmul.mubr.msk.f32.gmra.mrb[42].mxu0 %vm372_vm0, %v3902_v36  ;;  %8315 = vmatprep.mubr.msk.f32.mxu1 %vm372_vm0, %v10060_v37  ;;  %v10286_v36 = vld [vmem:[#allocation2 + $0x198] sm:$0xff] }
  0xb8   : > { %8755 = vmatprep.mubr.msk.f32.mxu0 %vm372_vm0, %v3903_v38  ;;  %v10298_v38 = vld [vmem:[#allocation2 + $0x1a8] sm:$0xff] }
  0xba   : > { %8316 = vmatmul.mubr.msk.f32.gmra.mrb[12].mxu1 %vm372_vm0, %v10067_v39 }
  0xbb   : > { %8756 = vmatmul.mubr.msk.f32.gmra.mrb[44].mxu0 %vm372_vm0, %v3904_v40  ;;  %8318 = vmatprep.mubr.msk.f32.mxu1 %vm372_vm0, %v10070_v41  ;;  %v10310_v40 = vld [vmem:[#allocation2 + $0x1b8] sm:$0xff] }
  0xbc   : > { %8758 = vmatprep.mubr.msk.f32.mxu0 %vm372_vm0, %v3905_v42  ;;  %v10322_v42 = vld [vmem:[#allocation2 + $0x1c8] sm:$0xff] }
  0xbe   : > { %8319 = vmatmul.mubr.msk.f32.gmra.mrb[14].mxu1 %vm372_vm0, %v10077_v43 }
  0xbf   : > { %8759 = vmatmul.mubr.msk.f32.gmra.mrb[46].mxu0 %vm372_vm0, %v3906_v44  ;;  %8321 = vmatprep.mubr.msk.f32.mxu1 %vm372_vm0, %v10080_v45  ;;  %v10334_v44 = vld [vmem:[#allocation2 + $0x1d8] sm:$0xff] }
  0xc0   : > { %8761 = vmatprep.mubr.msk.f32.mxu0 %vm372_vm0, %v3907_v46  ;;  %v10346_v46 = vld [vmem:[#allocation2 + $0x1e8] sm:$0xff] }
  0xc2   : > { %8322 = vmatmul.mubr.msk.f32.gmra.mrb[16].mxu1 %vm372_vm0, %v10087_v47 }
  0xc3   : > { %8762 = vmatmul.mubr.msk.f32.gmra.mrb[48].mxu0 %vm372_vm0, %v3908_v48  ;;  %8324 = vmatprep.mubr.msk.f32.mxu1 %vm372_vm0, %v10090_v49  ;;  %v10358_v48 = vld [vmem:[#allocation2 + $0x1f8] sm:$0xff] }
  0xc4   : > { %8764 = vmatprep.mubr.msk.f32.mxu0 %vm372_vm0, %v3909_v50  ;;  %v1739_v50 = vld [vmem:[#allocation2 + $0xa] sm:$0xff] }
  0xc6   : > { %8325 = vmatmul.mubr.msk.f32.gmra.mrb[18].mxu1 %vm372_vm0, %v10097_v51 }
  0xc7   : > { %8765 = vmatmul.mubr.msk.f32.gmra.mrb[50].mxu0 %vm372_vm0, %v3910_v52  ;;  %8327 = vmatprep.mubr.msk.f32.mxu1 %vm372_vm0, %v10100_v53  ;;  %v1741_v52 = vld [vmem:[#allocation2 + $0x1a] sm:$0xff] }
  0xc8   : > { %8767 = vmatprep.mubr.msk.f32.mxu0 %vm372_vm0, %v3911_v54  ;;  %v10379_v54 = vld [vmem:[%s11183_s2 + $0x20] sm:$0xff] }
  0xca   : > { %8328 = vmatmul.mubr.msk.f32.gmra.mrb[20].mxu1 %vm372_vm0, %v10107_v55 }
  0xcb   : > { %8768 = vmatmul.mubr.msk.f32.gmra.mrb[52].mxu0 %vm372_vm0, %v3912_v56  ;;  %8330 = vmatprep.mubr.msk.f32.mxu1 %vm372_vm0, %v10110_v57  ;;  %v10398_v56 = vld [vmem:[#allocation2 + $0x3a] sm:$0xff] }
  0xcc   : > { %8770 = vmatprep.mubr.msk.f32.mxu0 %vm372_vm0, %v3913_v58  ;;  %v10410_v58 = vld [vmem:[#allocation2 + $0x4a] sm:$0xff] }
  0xce   : > { %8331 = vmatmul.mubr.msk.f32.gmra.mrb[22].mxu1 %vm372_vm0, %v10117_v59 }
  0xcf   : > { %8771 = vmatmul.mubr.msk.f32.gmra.mrb[54].mxu0 %vm372_vm0, %v3914_v60  ;;  %8333 = vmatprep.mubr.msk.f32.mxu1 %vm372_vm0, %v10120_v61  ;;  %v10422_v60 = vld [vmem:[#allocation2 + $0x5a] sm:$0xff] }
  0xd0   : > { %8773 = vmatprep.mubr.msk.f32.mxu0 %vm372_vm0, %v3915_v62  ;;  %v10434_v62 = vld [vmem:[#allocation2 + $0x6a] sm:$0xff] }
  0xd2   : > { %8334 = vmatmul.mubr.msk.f32.gmra.mrb[24].mxu1 %vm372_vm0, %v10127_v63 }
  0xd3   : > { %8774 = vmatmul.mubr.msk.f32.gmra.mrb[56].mxu0 %vm372_vm0, %v3916_v0  ;;  %8336 = vmatprep.mubr.msk.f32.mxu1 %vm372_vm0, %v10130_v1  ;;  %v10446_v0 = vld [vmem:[#allocation2 + $0x7a] sm:$0xff] }
  0xd4   : > { %8776 = vmatprep.mubr.msk.f32.mxu0 %vm372_vm0, %v3917_v3  ;;  %v10458_v3 = vld [vmem:[#allocation2 + $0x8a] sm:$0xff] }
  0xd6   : > { %8337 = vmatmul.mubr.msk.f32.gmra.mrb[26].mxu1 %vm372_vm0, %v10137_v4 }
  0xd7   : > { %8777 = vmatmul.mubr.msk.f32.gmra.mrb[58].mxu0 %vm372_vm0, %v3918_v5  ;;  %8339 = vmatprep.mubr.msk.f32.mxu1 %vm372_vm0, %v10140_v6  ;;  %v10470_v5 = vld [vmem:[#allocation2 + $0x9a] sm:$0xff] }
  0xd8   : > { %8779 = vmatprep.mubr.msk.f32.mxu0 %vm372_vm0, %v3919_v7  ;;  %v10482_v7 = vld [vmem:[#allocation2 + $0xaa] sm:$0xff] }
  0xda   : > { %8340 = vmatmul.mubr.msk.f32.gmra.mrb[28].mxu1 %vm372_vm0, %v10150_v10 }
  0xdb   : > { %8780 = vmatmul.mubr.msk.f32.gmra.mrb[60].mxu0 %vm372_vm0, %v3920_v11  ;;  %8342 = vmatprep.mubr.msk.f32.mxu1 %vm372_vm0, %v10154_v12  ;;  %v10506_v11 = vld [vmem:[#allocation2 + $0xca] sm:$0xff] }
  0xdc   : > { %8782 = vmatprep.mubr.msk.f32.mxu0 %vm372_vm0, %v3921_v13  ;;  %v10518_v13 = vld [vmem:[#allocation2 + $0xda] sm:$0xff] }
  0xde   : > { %8343 = vmatmul.mubr.msk.f32.gmra.mrb[30].mxu1 %vm372_vm0, %v10161_v14 }
  0xdf   : > { %8783 = vmatmul.mubr.msk.f32.gmra.mrb[62].mxu0 %vm372_vm0, %v3922_v15  ;;  %8345 = vmatprep.mubr.msk.f32.mxu1 %vm372_vm0, %v10164_v16  ;;  %v10522_v15 = vld [vmem:[#allocation2 + $0xe2] sm:$0xff] }
  0xe0   : > { %8787 = vmatprep.mubr.msk.f32.mxu0 %vm372_vm0, %v10027_v22  ;;  %v10202_v22 = vld [vmem:[#allocation2 + $0x128] sm:$0xff] }
  0xe2   : > { %8346 = vmatmul.mubr.msk.f32.gmra.mrb[32].mxu1 %vm372_vm0, %v10171_v17 }
  0xe3   : > { %8788 = vmatmul.mubr.msk.f32.vlgmr.msra.gmra.mrb[0].mxu0 %vm372_vm0, %v10030_v23  ;;  %8348 = vmatprep.mubr.msk.f32.mxu1 %vm372_vm0, %v10175_v19  ;;  %v10218_v23 = vld [vmem:[#allocation2 + $0x140] sm:$0xff] }
  0xe4   : > { %8884 = vmatpush3.msra.mxu0 %v9961_v28  ;;  %8790 = vmatprep.mubr.msk.f32.mxu0 %vm372_vm0, %v10037_v25  ;;  %v10206_v28 = vld [vmem:[#allocation2 + $0x130] sm:$0xff] }
  0xe5   : > { %8981 = vmatprep.subr.mxu0 %v10182_v20  ;;  %v10230_v25 = vld [vmem:[#allocation2 + $0x150] sm:$0xff] }
  0xe6   : > { %8349 = vmatmul.mubr.msk.f32.gmra.mrb[34].mxu1 %vm372_vm0, %v10188_v21 }
  0xe7   : > { %8791 = vmatmul.mubr.msk.f32.gmra.mrb[2].mxu0 %vm372_vm0, %v10040_v27  ;;  %8351 = vmatprep.mubr.msk.f32.mxu1 %vm372_vm0, %v10193_v35  ;;  %v10242_v27 = vld [vmem:[#allocation2 + $0x160] sm:$0xff] }
  0xe8   : > { %8793 = vmatprep.mubr.msk.f32.mxu0 %vm372_vm0, %v10047_v30  ;;  %v10254_v30 = vld [vmem:[#allocation2 + $0x170] sm:$0xff] }
  0xea   : > { %8352 = vmatmul.mubr.msk.f32.gmra.mrb[36].mxu1 %vm372_vm0, %v10202_v22 }
  0xeb   : > { %8794 = vmatmul.mubr.msk.f32.gmra.mrb[4].mxu0 %vm372_vm0, %v10050_v32  ;;  %8354 = vmatprep.mubr.msk.f32.mxu1 %vm372_vm0, %v10206_v28  ;;  %v10266_v32 = vld [vmem:[#allocation2 + $0x180] sm:$0xff] }
  0xec   : > { %8796 = vmatprep.mubr.msk.f32.mxu0 %vm372_vm0, %v10057_v34  ;;  %v10278_v34 = vld [vmem:[#allocation2 + $0x190] sm:$0xff] }
  0xee   : > { %8355 = vmatmul.mubr.msk.f32.gmra.mrb[38].mxu1 %vm372_vm0, %v10214_v2 }
  0xef   : > { %8797 = vmatmul.mubr.msk.f32.gmra.mrb[6].mxu0 %vm372_vm0, %v10060_v37  ;;  %8357 = vmatprep.mubr.msk.f32.mxu1 %vm372_vm0, %v10218_v23  ;;  %v10290_v37 = vld [vmem:[#allocation2 + $0x1a0] sm:$0xff] }
  0xf0   : > { %8799 = vmatprep.mubr.msk.f32.mxu0 %vm372_vm0, %v10067_v39  ;;  %v10302_v39 = vld [vmem:[#allocation2 + $0x1b0] sm:$0xff] }
  0xf2   : > { %8358 = vmatmul.mubr.msk.f32.gmra.mrb[40].mxu1 %vm372_vm0, %v10226_v24 }
  0xf3   : > { %8800 = vmatmul.mubr.msk.f32.gmra.mrb[8].mxu0 %vm372_vm0, %v10070_v41  ;;  %8360 = vmatprep.mubr.msk.f32.mxu1 %vm372_vm0, %v10230_v25  ;;  %v10314_v41 = vld [vmem:[#allocation2 + $0x1c0] sm:$0xff] }
  0xf4   : > { %8802 = vmatprep.mubr.msk.f32.mxu0 %vm372_vm0, %v10077_v43  ;;  %v10326_v43 = vld [vmem:[#allocation2 + $0x1d0] sm:$0xff] }
  0xf6   : > { %8361 = vmatmul.mubr.msk.f32.gmra.mrb[42].mxu1 %vm372_vm0, %v10238_v26 }
  0xf7   : > { %8803 = vmatmul.mubr.msk.f32.gmra.mrb[10].mxu0 %vm372_vm0, %v10080_v45  ;;  %8363 = vmatprep.mubr.msk.f32.mxu1 %vm372_vm0, %v10242_v27  ;;  %v10338_v45 = vld [vmem:[#allocation2 + $0x1e0] sm:$0xff] }
  0xf8   : > { %8805 = vmatprep.mubr.msk.f32.mxu0 %vm372_vm0, %v10087_v47  ;;  %v10350_v47 = vld [vmem:[#allocation2 + $0x1f0] sm:$0xff] }
  0xfa   : > { %8364 = vmatmul.mubr.msk.f32.gmra.mrb[44].mxu1 %vm372_vm0, %v10250_v29 }
  0xfb   : > { %8806 = vmatmul.mubr.msk.f32.gmra.mrb[12].mxu0 %vm372_vm0, %v10090_v49  ;;  %8366 = vmatprep.mubr.msk.f32.mxu1 %vm372_vm0, %v10254_v30  ;;  %v1738_v49 = vld [vmem:[#allocation2 + $0x2] sm:$0xff] }
  0xfc   : > { %8808 = vmatprep.mubr.msk.f32.mxu0 %vm372_vm0, %v10097_v51  ;;  %v1740_v51 = vld [vmem:[#allocation2 + $0x12] sm:$0xff] }
  0xfe   : > { %8367 = vmatmul.mubr.msk.f32.gmra.mrb[46].mxu1 %vm372_vm0, %v10262_v31 }
  0xff   : > { %8809 = vmatmul.mubr.msk.f32.gmra.mrb[14].mxu0 %vm372_vm0, %v10100_v53  ;;  %8369 = vmatprep.mubr.msk.f32.mxu1 %vm372_vm0, %v10266_v32  ;;  %v1742_v53 = vld [vmem:[#allocation2 + $0x22] sm:$0xff] }
 0x100   : > { %8811 = vmatprep.mubr.msk.f32.mxu0 %vm372_vm0, %v10107_v55  ;;  %v10390_v55 = vld [vmem:[#allocation2 + $0x32] sm:$0xff] }
 0x102   : > { %8370 = vmatmul.mubr.msk.f32.gmra.mrb[48].mxu1 %vm372_vm0, %v10274_v33 }
 0x103   : > { %8812 = vmatmul.mubr.msk.f32.gmra.mrb[16].mxu0 %vm372_vm0, %v10110_v57  ;;  %8372 = vmatprep.mubr.msk.f32.mxu1 %vm372_vm0, %v10278_v34  ;;  %v10402_v57 = vld [vmem:[#allocation2 + $0x42] sm:$0xff] }
 0x104   : > { %8814 = vmatprep.mubr.msk.f32.mxu0 %vm372_vm0, %v10117_v59  ;;  %v10414_v59 = vld [vmem:[#allocation2 + $0x52] sm:$0xff] }
 0x106   : > { %8373 = vmatmul.mubr.msk.f32.gmra.mrb[50].mxu1 %vm372_vm0, %v10286_v36 }
 0x107   : > { %8815 = vmatmul.mubr.msk.f32.gmra.mrb[18].mxu0 %vm372_vm0, %v10120_v61  ;;  %8375 = vmatprep.mubr.msk.f32.mxu1 %vm372_vm0, %v10290_v37  ;;  %v10426_v61 = vld [vmem:[#allocation2 + $0x62] sm:$0xff] }
 0x108   : > { %8817 = vmatprep.mubr.msk.f32.mxu0 %vm372_vm0, %v10127_v63  ;;  %v10438_v63 = vld [vmem:[#allocation2 + $0x72] sm:$0xff] }
 0x10a   : > { %8376 = vmatmul.mubr.msk.f32.gmra.mrb[52].mxu1 %vm372_vm0, %v10298_v38 }
 0x10b   : > { %8818 = vmatmul.mubr.msk.f32.gmra.mrb[20].mxu0 %vm372_vm0, %v10130_v1  ;;  %8378 = vmatprep.mubr.msk.f32.mxu1 %vm372_vm0, %v10302_v39  ;;  %v10450_v1 = vld [vmem:[#allocation2 + $0x82] sm:$0xff] }
 0x10c   : > { %8820 = vmatprep.mubr.msk.f32.mxu0 %vm372_vm0, %v10137_v4  ;;  %v10462_v4 = vld [vmem:[#allocation2 + $0x92] sm:$0xff] }
 0x10e   : > { %8379 = vmatmul.mubr.msk.f32.gmra.mrb[54].mxu1 %vm372_vm0, %v10310_v40 }
 0x10f   : > { %8821 = vmatmul.mubr.msk.f32.gmra.mrb[22].mxu0 %vm372_vm0, %v10140_v6  ;;  %8381 = vmatprep.mubr.msk.f32.mxu1 %vm372_vm0, %v10314_v41  ;;  %v10474_v6 = vld [vmem:[#allocation2 + $0xa2] sm:$0xff] }
 0x110   : > { %8823 = vmatprep.mubr.msk.f32.mxu0 %vm372_vm0, %v10150_v10  ;;  %v10498_v10 = vld [vmem:[#allocation2 + $0xc2] sm:$0xff] }
 0x112   : > { %8382 = vmatmul.mubr.msk.f32.gmra.mrb[56].mxu1 %vm372_vm0, %v10322_v42 }
 0x113   : > { %8824 = vmatmul.mubr.msk.f32.gmra.mrb[24].mxu0 %vm372_vm0, %v10154_v12  ;;  %8384 = vmatprep.mubr.msk.f32.mxu1 %vm372_vm0, %v10326_v43  ;;  %v10510_v12 = vld [vmem:[#allocation2 + $0xd2] sm:$0xff] }
 0x114   : > { %8826 = vmatprep.mubr.msk.f32.mxu0 %vm372_vm0, %v10161_v14  ;;  %v4625_v14 = vld [vmem:[#allocation2 + $0x200] sm:$0xff] }
 0x116   : > { %8385 = vmatmul.mubr.msk.f32.gmra.mrb[58].mxu1 %vm372_vm0, %v10334_v44 }
 0x117   : > { %8827 = vmatmul.mubr.msk.f32.gmra.mrb[26].mxu0 %vm372_vm0, %v10164_v16  ;;  %8387 = vmatprep.mubr.msk.f32.mxu1 %vm372_vm0, %v10338_v45  ;;  %v4626_v16 = vld [vmem:[#allocation2 + $0x208] sm:$0xff] }
 0x118   : > { %8829 = vmatprep.mubr.msk.f32.mxu0 %vm372_vm0, %v10171_v17  ;;  %v442_v17 = vld [vmem:[%s9908_s14 + $0x28] sm:$0xff] }
 0x119   : > { %450 = vst.msk [vmem:[#allocation2 + $0x228] sm:$0xff] %vm372_vm0, %v442_v17  ;;  %v10625_v17 = vld [vmem:[#allocation2 + $0x182] sm:$0xff] }
 0x11a   : > { %8388 = vmatmul.mubr.msk.f32.gmra.mrb[60].mxu1 %vm372_vm0, %v10346_v46 }
 0x11b   : > { %8830 = vmatmul.mubr.msk.f32.gmra.mrb[28].mxu0 %vm372_vm0, %v10175_v19  ;;  %8390 = vmatprep.mubr.msk.f32.mxu1 %vm372_vm0, %v10350_v47  ;;  %v10530_v19 = vld [vmem:[#allocation2 + $0xea] sm:$0xff] }
 0x11c   : > { %8832 = vmatprep.mubr.msk.f32.mxu0 %vm372_vm0, %v10188_v21  ;;  %v4627_v21 = vld [vmem:[#allocation2 + $0x210] sm:$0xff] }
 0x11e   : > { %8391 = vmatmul.mubr.msk.f32.gmra.mrb[62].mxu1 %vm372_vm0, %v10358_v48 }
 0x11f   : > { %8833 = vmatmul.mubr.msk.f32.gmra.mrb[30].mxu0 %vm372_vm0, %v10193_v35  ;;  %8395 = vmatprep.mubr.msk.f32.mxu1 %vm372_vm0, %v1738_v49  ;;  %v10534_v35 = vld [vmem:[#allocation2 + $0xf2] sm:$0xff]  ;;  %v5285_v49 = vld [vmem:[#allocation2 + $0x89] sm:$0xff] }
 0x120   : > { %8835 = vmatprep.mubr.msk.f32.mxu0 %vm372_vm0, %v10202_v22  ;;  %v4628_v22 = vld [vmem:[#allocation2 + $0x218] sm:$0xff] }
 0x122   : > { %8396 = vmatmul.mubr.msk.f32.vlgmr.msra.gmra.mrb[0].mxu1 %vm372_vm0, %v1739_v50  ;;  %v10612_v50 = vld [vmem:[#allocation2 + $0x16a] sm:$0xff] }
 0x123   : > { %8492 = vmatpush3.msra.mxu1 %v10017_v18  ;;  %8836 = vmatmul.mubr.msk.f32.gmra.mrb[32].mxu0 %vm372_vm0, %v10206_v28  ;;  %v10386_v18 = vld [vmem:[#allocation2 + $0x2a] sm:$0xff]  ;;  %v10541_v28 = vld [vmem:[#allocation2 + $0xfa] sm:$0xff] }
 0x124   : > { %8398 = vmatprep.mubr.msk.f32.mxu1 %vm372_vm0, %v1740_v51  ;;  %8838 = vmatprep.mubr.msk.f32.mxu0 %vm372_vm0, %v10214_v2  ;;  %v4629_v2 = vld [vmem:[#allocation2 + $0x220] sm:$0xff]  ;;  %v5286_v51 = vld [vmem:[#allocation2 + $0x91] sm:$0xff] }
 0x125   : > { %9079 = vmatprep.subr.mxu1 %v10379_v54 }
 0x126   : > { %8399 = vmatmul.mubr.msk.f32.gmra.mrb[2].mxu1 %vm372_vm0, %v1741_v52  ;;  %v10615_v52 = vld [vmem:[#allocation2 + $0x172] sm:$0xff] }
 0x127   : > { %8839 = vmatmul.mubr.msk.f32.gmra.mrb[34].mxu0 %vm372_vm0, %v10218_v23  ;;  %8401 = vmatprep.mubr.msk.f32.mxu1 %vm372_vm0, %v1742_v53  ;;  %v10544_v23 = vld [vmem:[#allocation2 + $0x102] sm:$0xff]  ;;  %v5287_v53 = vld [vmem:[#allocation2 + $0x99] sm:$0xff] }
 0x128   : > { %8841 = vmatprep.mubr.msk.f32.mxu0 %vm372_vm0, %v10226_v24  ;;  %v5273_v24 = vld [vmem:[#allocation2 + $0x29] sm:$0xff] }
 0x12a   : > { %8402 = vmatmul.mubr.msk.f32.gmra.mrb[4].mxu1 %vm372_vm0, %v10386_v18 }
 0x12b   : > { %8842 = vmatmul.mubr.msk.f32.gmra.mrb[36].mxu0 %vm372_vm0, %v10230_v25  ;;  %8404 = vmatprep.mubr.msk.f32.mxu1 %vm372_vm0, %v10390_v55  ;;  %v10551_v25 = vld [vmem:[#allocation2 + $0x10a] sm:$0xff] }
 0x12c   : > { %8844 = vmatprep.mubr.msk.f32.mxu0 %vm372_vm0, %v10238_v26  ;;  %v5274_v26 = vld [vmem:[#allocation2 + $0x31] sm:$0xff] }
 0x12e   : > { %8405 = vmatmul.mubr.msk.f32.gmra.mrb[6].mxu1 %vm372_vm0, %v10398_v56 }
 0x12f   : > { %8845 = vmatmul.mubr.msk.f32.gmra.mrb[38].mxu0 %vm372_vm0, %v10242_v27  ;;  %8407 = vmatprep.mubr.msk.f32.mxu1 %vm372_vm0, %v10402_v57  ;;  %v10554_v27 = vld [vmem:[#allocation2 + $0x112] sm:$0xff] }
 0x130   : > { %8847 = vmatprep.mubr.msk.f32.mxu0 %vm372_vm0, %v10250_v29  ;;  %v5275_v29 = vld [vmem:[#allocation2 + $0x39] sm:$0xff] }
 0x132   : > { %8408 = vmatmul.mubr.msk.f32.gmra.mrb[8].mxu1 %vm372_vm0, %v10410_v58 }
 0x133   : > { %8848 = vmatmul.mubr.msk.f32.gmra.mrb[40].mxu0 %vm372_vm0, %v10254_v30  ;;  %8410 = vmatprep.mubr.msk.f32.mxu1 %vm372_vm0, %v10414_v59  ;;  %v10561_v30 = vld [vmem:[#allocation2 + $0x11a] sm:$0xff] }
 0x134   : > { %8850 = vmatprep.mubr.msk.f32.mxu0 %vm372_vm0, %v10262_v31  ;;  %v5276_v31 = vld [vmem:[#allocation2 + $0x41] sm:$0xff] }
 0x136   : > { %8411 = vmatmul.mubr.msk.f32.gmra.mrb[10].mxu1 %vm372_vm0, %v10422_v60 }
 0x137   : > { %8851 = vmatmul.mubr.msk.f32.gmra.mrb[42].mxu0 %vm372_vm0, %v10266_v32  ;;  %8413 = vmatprep.mubr.msk.f32.mxu1 %vm372_vm0, %v10426_v61  ;;  %v10565_v32 = vld [vmem:[#allocation2 + $0x122] sm:$0xff] }
 0x138   : > { %8853 = vmatprep.mubr.msk.f32.mxu0 %vm372_vm0, %v10274_v33  ;;  %v5277_v33 = vld [vmem:[#allocation2 + $0x49] sm:$0xff] }
 0x13a   : > { %8414 = vmatmul.mubr.msk.f32.gmra.mrb[12].mxu1 %vm372_vm0, %v10434_v62 }
 0x13b   : > { %8854 = vmatmul.mubr.msk.f32.gmra.mrb[44].mxu0 %vm372_vm0, %v10278_v34  ;;  %8416 = vmatprep.mubr.msk.f32.mxu1 %vm372_vm0, %v10438_v63  ;;  %v10572_v34 = vld [vmem:[#allocation2 + $0x12a] sm:$0xff] }
 0x13c   : > { %8856 = vmatprep.mubr.msk.f32.mxu0 %vm372_vm0, %v10286_v36  ;;  %v5278_v36 = vld [vmem:[#allocation2 + $0x51] sm:$0xff] }
 0x13e   : > { %8417 = vmatmul.mubr.msk.f32.gmra.mrb[14].mxu1 %vm372_vm0, %v10446_v0 }
 0x13f   : > { %8857 = vmatmul.mubr.msk.f32.gmra.mrb[46].mxu0 %vm372_vm0, %v10290_v37  ;;  %8419 = vmatprep.mubr.msk.f32.mxu1 %vm372_vm0, %v10450_v1  ;;  %v5279_v37 = vld [vmem:[#allocation2 + $0x59] sm:$0xff] }
 0x140   : > { %8859 = vmatprep.mubr.msk.f32.mxu0 %vm372_vm0, %v10298_v38  ;;  %v10582_v38 = vld [vmem:[#allocation2 + $0x13a] sm:$0xff] }
 0x142   : > { %8420 = vmatmul.mubr.msk.f32.gmra.mrb[16].mxu1 %vm372_vm0, %v10458_v3 }
 0x143   : > { %8860 = vmatmul.mubr.msk.f32.gmra.mrb[48].mxu0 %vm372_vm0, %v10302_v39  ;;  %8422 = vmatprep.mubr.msk.f32.mxu1 %vm372_vm0, %v10462_v4  ;;  %v5280_v39 = vld [vmem:[#allocation2 + $0x61] sm:$0xff] }
 0x144   : > { %8862 = vmatprep.mubr.msk.f32.mxu0 %vm372_vm0, %v10310_v40  ;;  %v10585_v40 = vld [vmem:[#allocation2 + $0x142] sm:$0xff] }
 0x146   : > { %8423 = vmatmul.mubr.msk.f32.gmra.mrb[18].mxu1 %vm372_vm0, %v10470_v5 }
 0x147   : > { %8863 = vmatmul.mubr.msk.f32.gmra.mrb[50].mxu0 %vm372_vm0, %v10314_v41  ;;  %8425 = vmatprep.mubr.msk.f32.mxu1 %vm372_vm0, %v10474_v6  ;;  %v5281_v41 = vld [vmem:[#allocation2 + $0x69] sm:$0xff] }
 0x148   : > { %8865 = vmatprep.mubr.msk.f32.mxu0 %vm372_vm0, %v10322_v42  ;;  %v10592_v42 = vld [vmem:[#allocation2 + $0x14a] sm:$0xff] }
 0x14a   : > { %8426 = vmatmul.mubr.msk.f32.gmra.mrb[20].mxu1 %vm372_vm0, %v10482_v7 }
 0x14b   : > { %8866 = vmatmul.mubr.msk.f32.gmra.mrb[52].mxu0 %vm372_vm0, %v10326_v43  ;;  %8428 = vmatprep.mubr.msk.f32.mxu1 %vm372_vm0, %v10486_v8  ;;  %v5282_v43 = vld [vmem:[#allocation2 + $0x71] sm:$0xff] }
 0x14c   : > { %8868 = vmatprep.mubr.msk.f32.mxu0 %vm372_vm0, %v10334_v44  ;;  %v10595_v44 = vld [vmem:[#allocation2 + $0x152] sm:$0xff] }
 0x14e   : > { %8429 = vmatmul.mubr.msk.f32.gmra.mrb[22].mxu1 %vm372_vm0, %v10494_v9 }
 0x14f   : > { %8869 = vmatmul.mubr.msk.f32.gmra.mrb[54].mxu0 %vm372_vm0, %v10338_v45  ;;  %8431 = vmatprep.mubr.msk.f32.mxu1 %vm372_vm0, %v10498_v10  ;;  %v5283_v45 = vld [vmem:[#allocation2 + $0x79] sm:$0xff] }
 0x150   : > { %8871 = vmatprep.mubr.msk.f32.mxu0 %vm372_vm0, %v10346_v46  ;;  %v10602_v46 = vld [vmem:[#allocation2 + $0x15a] sm:$0xff] }
 0x152   : > { %8432 = vmatmul.mubr.msk.f32.gmra.mrb[24].mxu1 %vm372_vm0, %v10506_v11 }
 0x153   : > { %8872 = vmatmul.mubr.msk.f32.gmra.mrb[56].mxu0 %vm372_vm0, %v10350_v47  ;;  %8434 = vmatprep.mubr.msk.f32.mxu1 %vm372_vm0, %v10510_v12  ;;  %v5284_v47 = vld [vmem:[#allocation2 + $0x81] sm:$0xff] }
 0x154   : > { %8874 = vmatprep.mubr.msk.f32.mxu0 %vm372_vm0, %v10358_v48  ;;  %v10605_v48 = vld [vmem:[#allocation2 + $0x162] sm:$0xff] }
 0x156   : > { %8435 = vmatmul.mubr.msk.f32.gmra.mrb[26].mxu1 %vm372_vm0, %v10518_v13 }
 0x157   : > { %8875 = vmatmul.mubr.msk.f32.gmra.mrb[58].mxu0 %vm372_vm0, %v4625_v14  ;;  %8437 = vmatprep.mubr.msk.f32.mxu1 %vm372_vm0, %v10522_v15  ;;  %v10622_v14 = vld [vmem:[#allocation2 + $0x17a] sm:$0xff] }
 0x158   : > { %8877 = vmatprep.mubr.msk.f32.mxu0 %vm372_vm0, %v4626_v16  ;;  %v5288_v16 = vld [vmem:[#allocation2 + $0xa1] sm:$0xff] }
 0x15a   : > { %8438 = vmatmul.mubr.msk.f32.gmra.mrb[28].mxu1 %vm372_vm0, %v10530_v19 }
 0x15b   : > { %8878 = vmatmul.mubr.msk.f32.gmra.mrb[60].mxu0 %vm372_vm0, %v4627_v21  ;;  %8440 = vmatprep.mubr.msk.f32.mxu1 %vm372_vm0, %v10534_v35  ;;  %v5289_v21 = vld [vmem:[#allocation2 + $0xa9] sm:$0xff] }
 0x15c   : > { %8880 = vmatprep.mubr.msk.f32.mxu0 %vm372_vm0, %v4628_v22  ;;  %v10632_v22 = vld [vmem:[#allocation2 + $0x18a] sm:$0xff] }
 0x15e   : > { %8441 = vmatmul.mubr.msk.f32.gmra.mrb[30].mxu1 %vm372_vm0, %v10541_v28 }
 0x15f   : > { %8881 = vmatmul.mubr.msk.f32.gmra.mrb[62].mxu0 %vm372_vm0, %v4629_v2  ;;  %8443 = vmatprep.mubr.msk.f32.mxu1 %vm372_vm0, %v10544_v23  ;;  %v5290_v2 = vld [vmem:[#allocation2 + $0xb1] sm:$0xff] }
 0x160   : > { %8885 = vmatprep.mubr.msk.f32.mxu0 %vm372_vm0, %v5273_v24  ;;  %v10635_v24 = vld [vmem:[#allocation2 + $0x192] sm:$0xff] }
 0x162   : > { %8444 = vmatmul.mubr.msk.f32.gmra.mrb[32].mxu1 %vm372_vm0, %v10551_v25 }
 0x163   : > { %8886 = vmatmul.mubr.msk.f32.vlgmr.msra.gmra.mrb[0].mxu0 %vm372_vm0, %v5274_v26  ;;  %8446 = vmatprep.mubr.msk.f32.mxu1 %vm372_vm0, %v10554_v27  ;;  %v5291_v26 = vld [vmem:[#allocation2 + $0xb9] sm:$0xff] }
 0x164   : > { %8982 = vmatpush3.msra.mxu0 %v10182_v20  ;;  %8888 = vmatprep.mubr.msk.f32.mxu0 %vm372_vm0, %v5275_v29  ;;  %v10575_v20 = vld [vmem:[#allocation2 + $0x132] sm:$0xff]  ;;  %v10642_v29 = vld [vmem:[#allocation2 + $0x19a] sm:$0xff] }
 0x166   : > { %8447 = vmatmul.mubr.msk.f32.gmra.mrb[34].mxu1 %vm372_vm0, %v10561_v30 }
 0x167   : > { %8889 = vmatmul.mubr.msk.f32.gmra.mrb[2].mxu0 %vm372_vm0, %v5276_v31  ;;  %8449 = vmatprep.mubr.msk.f32.mxu1 %vm372_vm0, %v10565_v32  ;;  %v5292_v31 = vld [vmem:[#allocation2 + $0xc1] sm:$0xff] }
 0x168   : > { %8891 = vmatprep.mubr.msk.f32.mxu0 %vm372_vm0, %v5277_v33  ;;  %v10645_v33 = vld [vmem:[#allocation2 + $0x1a2] sm:$0xff] }
 0x16a   : > { %8450 = vmatmul.mubr.msk.f32.gmra.mrb[36].mxu1 %vm372_vm0, %v10572_v34 }
 0x16b   : > { %8892 = vmatmul.mubr.msk.f32.gmra.mrb[4].mxu0 %vm372_vm0, %v5278_v36  ;;  %8452 = vmatprep.mubr.msk.f32.mxu1 %vm372_vm0, %v10575_v20  ;;  %v5293_v36 = vld [vmem:[#allocation2 + $0xc9] sm:$0xff] }
 0x16c   : > { %8894 = vmatprep.mubr.msk.f32.mxu0 %vm372_vm0, %v5279_v37  ;;  %v10652_v37 = vld [vmem:[#allocation2 + $0x1aa] sm:$0xff] }
 0x16e   : > { %8453 = vmatmul.mubr.msk.f32.gmra.mrb[38].mxu1 %vm372_vm0, %v10582_v38 }
 0x16f   : > { %8895 = vmatmul.mubr.msk.f32.gmra.mrb[6].mxu0 %vm372_vm0, %v5280_v39  ;;  %8455 = vmatprep.mubr.msk.f32.mxu1 %vm372_vm0, %v10585_v40  ;;  %v5294_v39 = vld [vmem:[#allocation2 + $0xd1] sm:$0xff] }
 0x170   : > { %8897 = vmatprep.mubr.msk.f32.mxu0 %vm372_vm0, %v5281_v41  ;;  %v10655_v41 = vld [vmem:[#allocation2 + $0x1b2] sm:$0xff] }
 0x172   : > { %8456 = vmatmul.mubr.msk.f32.gmra.mrb[40].mxu1 %vm372_vm0, %v10592_v42 }
 0x173   : > { %8898 = vmatmul.mubr.msk.f32.gmra.mrb[8].mxu0 %vm372_vm0, %v5282_v43  ;;  %8458 = vmatprep.mubr.msk.f32.mxu1 %vm372_vm0, %v10595_v44  ;;  %v5295_v43 = vld [vmem:[#allocation2 + $0xd9] sm:$0xff] }
 0x174   : > { %8900 = vmatprep.mubr.msk.f32.mxu0 %vm372_vm0, %v5283_v45  ;;  %v10662_v45 = vld [vmem:[#allocation2 + $0x1ba] sm:$0xff] }
 0x176   : > { %8459 = vmatmul.mubr.msk.f32.gmra.mrb[42].mxu1 %vm372_vm0, %v10602_v46 }
 0x177   : > { %8901 = vmatmul.mubr.msk.f32.gmra.mrb[10].mxu0 %vm372_vm0, %v5284_v47  ;;  %8461 = vmatprep.mubr.msk.f32.mxu1 %vm372_vm0, %v10605_v48  ;;  %v5296_v47 = vld [vmem:[#allocation2 + $0xe1] sm:$0xff] }
 0x178   : > { %8903 = vmatprep.mubr.msk.f32.mxu0 %vm372_vm0, %v5285_v49  ;;  %v10665_v49 = vld [vmem:[#allocation2 + $0x1c2] sm:$0xff] }
 0x17a   : > { %8462 = vmatmul.mubr.msk.f32.gmra.mrb[44].mxu1 %vm372_vm0, %v10612_v50 }
 0x17b   : > { %8904 = vmatmul.mubr.msk.f32.gmra.mrb[12].mxu0 %vm372_vm0, %v5286_v51  ;;  %8464 = vmatprep.mubr.msk.f32.mxu1 %vm372_vm0, %v10615_v52  ;;  %v5297_v51 = vld [vmem:[#allocation2 + $0xe9] sm:$0xff] }
 0x17c   : > { %8906 = vmatprep.mubr.msk.f32.mxu0 %vm372_vm0, %v5287_v53  ;;  %v10672_v53 = vld [vmem:[#allocation2 + $0x1ca] sm:$0xff] }
 0x17e   : > { %8465 = vmatmul.mubr.msk.f32.gmra.mrb[46].mxu1 %vm372_vm0, %v10622_v14 }
 0x17f   : > { %8907 = vmatmul.mubr.msk.f32.gmra.mrb[14].mxu0 %vm372_vm0, %v5288_v16  ;;  %8467 = vmatprep.mubr.msk.f32.mxu1 %vm372_vm0, %v10625_v17  ;;  %v5298_v16 = vld [vmem:[#allocation2 + $0xf1] sm:$0xff] }
 0x180   : > { %8909 = vmatprep.mubr.msk.f32.mxu0 %vm372_vm0, %v5289_v21  ;;  %v10675_v21 = vld [vmem:[#allocation2 + $0x1d2] sm:$0xff] }
 0x182   : > { %8468 = vmatmul.mubr.msk.f32.gmra.mrb[48].mxu1 %vm372_vm0, %v10632_v22 }
 0x183   : > { %8910 = vmatmul.mubr.msk.f32.gmra.mrb[16].mxu0 %vm372_vm0, %v5290_v2  ;;  %8470 = vmatprep.mubr.msk.f32.mxu1 %vm372_vm0, %v10635_v24  ;;  %v5299_v2 = vld [vmem:[#allocation2 + $0xf9] sm:$0xff] }
 0x184   : > { %8912 = vmatprep.mubr.msk.f32.mxu0 %vm372_vm0, %v5291_v26  ;;  %v10682_v26 = vld [vmem:[#allocation2 + $0x1da] sm:$0xff] }
 0x185   : > { %11192 = vst [vmem:[#allocation3_spill] sm:$0xff] %v10682_v26 }
 0x186   : > { %8471 = vmatmul.mubr.msk.f32.gmra.mrb[50].mxu1 %vm372_vm0, %v10642_v29 }
 0x187   : > { %8913 = vmatmul.mubr.msk.f32.gmra.mrb[18].mxu0 %vm372_vm0, %v5292_v31  ;;  %8473 = vmatprep.mubr.msk.f32.mxu1 %vm372_vm0, %v10645_v33  ;;  %v5300_v31 = vld [vmem:[#allocation2 + $0x101] sm:$0xff] }
 0x188   : > { %8915 = vmatprep.mubr.msk.f32.mxu0 %vm372_vm0, %v5293_v36  ;;  %v10685_v36 = vld [vmem:[#allocation2 + $0x1e2] sm:$0xff] }
 0x189   : > { %11193 = vst [vmem:[#allocation4_spill] sm:$0xff] %v10685_v36 }
 0x18a   : > { %8474 = vmatmul.mubr.msk.f32.gmra.mrb[52].mxu1 %vm372_vm0, %v10652_v37 }
 0x18b   : > { %8916 = vmatmul.mubr.msk.f32.gmra.mrb[20].mxu0 %vm372_vm0, %v5294_v39  ;;  %8476 = vmatprep.mubr.msk.f32.mxu1 %vm372_vm0, %v10655_v41  ;;  %v5301_v39 = vld [vmem:[#allocation2 + $0x109] sm:$0xff] }
 0x18c   : > { %8918 = vmatprep.mubr.msk.f32.mxu0 %vm372_vm0, %v5295_v43  ;;  %v10692_v43 = vld [vmem:[#allocation2 + $0x1ea] sm:$0xff] }
 0x18d   : > { %11194 = vst [vmem:[#allocation5_spill] sm:$0xff] %v10692_v43 }
 0x18e   : > { %8477 = vmatmul.mubr.msk.f32.gmra.mrb[54].mxu1 %vm372_vm0, %v10662_v45 }
 0x18f   : > { %8919 = vmatmul.mubr.msk.f32.gmra.mrb[22].mxu0 %vm372_vm0, %v5296_v47  ;;  %8479 = vmatprep.mubr.msk.f32.mxu1 %vm372_vm0, %v10665_v49  ;;  %v5302_v47 = vld [vmem:[#allocation2 + $0x111] sm:$0xff] }
 0x190   : > { %8921 = vmatprep.mubr.msk.f32.mxu0 %vm372_vm0, %v5297_v51  ;;  %v10695_v51 = vld [vmem:[#allocation2 + $0x1f2] sm:$0xff] }
 0x191   : > { %11195 = vst [vmem:[#allocation6_spill] sm:$0xff] %v10695_v51 }
 0x192   : > { %8480 = vmatmul.mubr.msk.f32.gmra.mrb[56].mxu1 %vm372_vm0, %v10672_v53 }
 0x193   : > { %8922 = vmatmul.mubr.msk.f32.gmra.mrb[24].mxu0 %vm372_vm0, %v5298_v16  ;;  %8482 = vmatprep.mubr.msk.f32.mxu1 %vm372_vm0, %v10675_v21  ;;  %v5303_v16 = vld [vmem:[#allocation2 + $0x119] sm:$0xff] }
 0x194   : > { %8924 = vmatprep.mubr.msk.f32.mxu0 %vm372_vm0, %v5299_v2  ;;  %v10702_v2 = vld [vmem:[#allocation2 + $0x1fa] sm:$0xff] }
 0x195   : > { %11196 = vst [vmem:[#allocation7_spill] sm:$0xff] %v10702_v2 }
 0x196   : > { %8483 = vmatmul.mubr.msk.f32.gmra.mrb[58].mxu1 %vm372_vm0, %v10682_v26  ;;  %v5305_v26 = vld [vmem:[#allocation2 + $0x129] sm:$0xff] }
 0x197   : > { %8925 = vmatmul.mubr.msk.f32.gmra.mrb[26].mxu0 %vm372_vm0, %v5300_v31  ;;  %8485 = vmatprep.mubr.msk.f32.mxu1 %vm372_vm0, %v10685_v36  ;;  %v5304_v31 = vld [vmem:[#allocation2 + $0x121] sm:$0xff]  ;;  %v2445_v36 = vld [vmem:[#allocation2 + $0x14] sm:$0xff] }
 0x198   : > { %8927 = vmatprep.mubr.msk.f32.mxu0 %vm372_vm0, %v5301_v39  ;;  %v2446_v39 = vld [vmem:[#allocation2 + $0x1c] sm:$0xff] }
 0x19a   : > { %8486 = vmatmul.mubr.msk.f32.gmra.mrb[60].mxu1 %vm372_vm0, %v10692_v43  ;;  %v2447_v43 = vld [vmem:[#allocation2 + $0x24] sm:$0xff] }
 0x19b   : > { %8928 = vmatmul.mubr.msk.f32.gmra.mrb[28].mxu0 %vm372_vm0, %v5302_v47  ;;  %8488 = vmatprep.mubr.msk.f32.mxu1 %vm372_vm0, %v10695_v51  ;;  %v5306_v47 = vld [vmem:[#allocation2 + $0x131] sm:$0xff]  ;;  %v5307_v51 = vld [vmem:[#allocation2 + $0x139] sm:$0xff] }
 0x19c   : > { %8930 = vmatprep.mubr.msk.f32.mxu0 %vm372_vm0, %v5303_v16  ;;  %v2448_v16 = vld [vmem:[#allocation2 + $0x2c] sm:$0xff] }
 0x19e   : > { %8489 = vmatmul.mubr.msk.f32.gmra.mrb[62].mxu1 %vm372_vm0, %v10702_v2  ;;  %v2449_v2 = vld [vmem:[#allocation2 + $0x34] sm:$0xff] }
 0x19f   : > { %8931 = vmatmul.mubr.msk.f32.gmra.mrb[30].mxu0 %vm372_vm0, %v5304_v31  ;;  %8493 = vmatprep.mubr.msk.f32.mxu1 %vm372_vm0, %v2445_v36  ;;  %v5308_v31 = vld [vmem:[#allocation2 + $0x141] sm:$0xff]  ;;  %v5309_v36 = vld [vmem:[#allocation2 + $0x149] sm:$0xff] }
 0x1a0   : > { %8933 = vmatprep.mubr.msk.f32.mxu0 %vm372_vm0, %v5305_v26  ;;  %v2450_v26 = vld [vmem:[#allocation2 + $0x3c] sm:$0xff] }
 0x1a2   : > { %8494 = vmatmul.mubr.msk.f32.vlgmr.msra.gmra.mrb[0].mxu1 %vm372_vm0, %v2446_v39  ;;  %v2451_v39 = vld [vmem:[#allocation2 + $0x44] sm:$0xff] }
 0x1a3   : > { %9080 = vmatpush3.msra.mxu1 %v10379_v54  ;;  %8934 = vmatmul.mubr.msk.f32.gmra.mrb[32].mxu0 %vm372_vm0, %v5306_v47  ;;  %v5310_v54 = vld [vmem:[#allocation2 + $0x151] sm:$0xff]  ;;  %v5311_v47 = vld [vmem:[#allocation2 + $0x159] sm:$0xff] }
 0x1a4   : > { %8496 = vmatprep.mubr.msk.f32.mxu1 %vm372_vm0, %v2447_v43  ;;  %8936 = vmatprep.mubr.msk.f32.mxu0 %vm372_vm0, %v5307_v51  ;;  %v2452_v43 = vld [vmem:[#allocation2 + $0x4c] sm:$0xff]  ;;  %v5312_v51 = vld [vmem:[#allocation2 + $0x161] sm:$0xff] }
 0x1a6   : > { %8497 = vmatmul.mubr.msk.f32.gmra.mrb[2].mxu1 %vm372_vm0, %v2448_v16  ;;  %v2453_v16 = vld [vmem:[#allocation2 + $0x54] sm:$0xff] }
 0x1a7   : > { %8937 = vmatmul.mubr.msk.f32.gmra.mrb[34].mxu0 %vm372_vm0, %v5308_v31  ;;  %8499 = vmatprep.mubr.msk.f32.mxu1 %vm372_vm0, %v2449_v2  ;;  %v5313_v31 = vld [vmem:[#allocation2 + $0x169] sm:$0xff]  ;;  %v2454_v2 = vld [vmem:[#allocation2 + $0x5c] sm:$0xff] }
 0x1a8   : > { %8939 = vmatprep.mubr.msk.f32.mxu0 %vm372_vm0, %v5309_v36  ;;  %v5314_v36 = vld [vmem:[#allocation2 + $0x171] sm:$0xff] }
 0x1aa   : > { %8500 = vmatmul.mubr.msk.f32.gmra.mrb[4].mxu1 %vm372_vm0, %v2450_v26  ;;  %v2455_v26 = vld [vmem:[#allocation2 + $0x64] sm:$0xff] }
 0x1ab   : > { %8940 = vmatmul.mubr.msk.f32.gmra.mrb[36].mxu0 %vm372_vm0, %v5310_v54  ;;  %8502 = vmatprep.mubr.msk.f32.mxu1 %vm372_vm0, %v2451_v39  ;;  %v5315_v54 = vld [vmem:[#allocation2 + $0x179] sm:$0xff]  ;;  %v2456_v39 = vld [vmem:[#allocation2 + $0x6c] sm:$0xff] }
 0x1ac   : > { %8942 = vmatprep.mubr.msk.f32.mxu0 %vm372_vm0, %v5311_v47  ;;  %v5316_v47 = vld [vmem:[#allocation2 + $0x181] sm:$0xff] }
 0x1ae   : > { %8503 = vmatmul.mubr.msk.f32.gmra.mrb[6].mxu1 %vm372_vm0, %v2452_v43  ;;  %v2457_v43 = vld [vmem:[#allocation2 + $0x74] sm:$0xff] }
 0x1af   : > { %8943 = vmatmul.mubr.msk.f32.gmra.mrb[38].mxu0 %vm372_vm0, %v5312_v51  ;;  %8505 = vmatprep.mubr.msk.f32.mxu1 %vm372_vm0, %v2453_v16  ;;  %v5317_v51 = vld [vmem:[#allocation2 + $0x189] sm:$0xff]  ;;  %v2458_v16 = vld [vmem:[#allocation2 + $0x7c] sm:$0xff] }
 0x1b0   : > { %8945 = vmatprep.mubr.msk.f32.mxu0 %vm372_vm0, %v5313_v31  ;;  %v5318_v31 = vld [vmem:[#allocation2 + $0x191] sm:$0xff] }
 0x1b2   : > { %8506 = vmatmul.mubr.msk.f32.gmra.mrb[8].mxu1 %vm372_vm0, %v2454_v2  ;;  %v2459_v2 = vld [vmem:[#allocation2 + $0x84] sm:$0xff] }
 0x1b3   : > { %8946 = vmatmul.mubr.msk.f32.gmra.mrb[40].mxu0 %vm372_vm0, %v5314_v36  ;;  %8508 = vmatprep.mubr.msk.f32.mxu1 %vm372_vm0, %v2455_v26  ;;  %v5319_v36 = vld [vmem:[#allocation2 + $0x199] sm:$0xff]  ;;  %v2460_v26 = vld [vmem:[#allocation2 + $0x8c] sm:$0xff] }
 0x1b4   : > { %8948 = vmatprep.mubr.msk.f32.mxu0 %vm372_vm0, %v5315_v54  ;;  %v5320_v54 = vld [vmem:[#allocation2 + $0x1a1] sm:$0xff] }
 0x1b6   : > { %8509 = vmatmul.mubr.msk.f32.gmra.mrb[10].mxu1 %vm372_vm0, %v2456_v39  ;;  %v2461_v39 = vld [vmem:[#allocation2 + $0x94] sm:$0xff] }
 0x1b7   : > { %8949 = vmatmul.mubr.msk.f32.gmra.mrb[42].mxu0 %vm372_vm0, %v5316_v47  ;;  %8511 = vmatprep.mubr.msk.f32.mxu1 %vm372_vm0, %v2457_v43  ;;  %v5321_v47 = vld [vmem:[#allocation2 + $0x1a9] sm:$0xff]  ;;  %v2462_v43 = vld [vmem:[#allocation2 + $0x9c] sm:$0xff] }
 0x1b8   : > { %8951 = vmatprep.mubr.msk.f32.mxu0 %vm372_vm0, %v5317_v51  ;;  %v5322_v51 = vld [vmem:[#allocation2 + $0x1b1] sm:$0xff] }
 0x1ba   : > { %8512 = vmatmul.mubr.msk.f32.gmra.mrb[12].mxu1 %vm372_vm0, %v2458_v16  ;;  %v2463_v16 = vld [vmem:[#allocation2 + $0xa4] sm:$0xff] }
 0x1bb   : > { %8952 = vmatmul.mubr.msk.f32.gmra.mrb[44].mxu0 %vm372_vm0, %v5318_v31  ;;  %8514 = vmatprep.mubr.msk.f32.mxu1 %vm372_vm0, %v2459_v2  ;;  %v5323_v31 = vld [vmem:[#allocation2 + $0x1b9] sm:$0xff]  ;;  %v2464_v2 = vld [vmem:[#allocation2 + $0xac] sm:$0xff] }
 0x1bc   : > { %8954 = vmatprep.mubr.msk.f32.mxu0 %vm372_vm0, %v5319_v36  ;;  %v5324_v36 = vld [vmem:[#allocation2 + $0x1c1] sm:$0xff] }
 0x1be   : > { %8515 = vmatmul.mubr.msk.f32.gmra.mrb[14].mxu1 %vm372_vm0, %v2460_v26  ;;  %v2465_v26 = vld [vmem:[#allocation2 + $0xb4] sm:$0xff] }
 0x1bf   : > { %8955 = vmatmul.mubr.msk.f32.gmra.mrb[46].mxu0 %vm372_vm0, %v5320_v54  ;;  %8517 = vmatprep.mubr.msk.f32.mxu1 %vm372_vm0, %v2461_v39  ;;  %v5325_v54 = vld [vmem:[#allocation2 + $0x1c9] sm:$0xff]  ;;  %v2466_v39 = vld [vmem:[#allocation2 + $0xbc] sm:$0xff] }
 0x1c0   : > { %8957 = vmatprep.mubr.msk.f32.mxu0 %vm372_vm0, %v5321_v47  ;;  %v5326_v47 = vld [vmem:[#allocation2 + $0x1d1] sm:$0xff] }
 0x1c2   : > { %8518 = vmatmul.mubr.msk.f32.gmra.mrb[16].mxu1 %vm372_vm0, %v2462_v43  ;;  %v2467_v43 = vld [vmem:[#allocation2 + $0xc4] sm:$0xff] }
 0x1c3   : > { %8958 = vmatmul.mubr.msk.f32.gmra.mrb[48].mxu0 %vm372_vm0, %v5322_v51  ;;  %8520 = vmatprep.mubr.msk.f32.mxu1 %vm372_vm0, %v2463_v16  ;;  %v5327_v51 = vld [vmem:[#allocation2 + $0x1d9] sm:$0xff]  ;;  %v2468_v16 = vld [vmem:[#allocation2 + $0xcc] sm:$0xff] }
 0x1c4   : > { %8960 = vmatprep.mubr.msk.f32.mxu0 %vm372_vm0, %v5323_v31  ;;  %v5328_v31 = vld [vmem:[#allocation2 + $0x1e1] sm:$0xff] }
 0x1c6   : > { %8521 = vmatmul.mubr.msk.f32.gmra.mrb[18].mxu1 %vm372_vm0, %v2464_v2  ;;  %v2469_v2 = vld [vmem:[#allocation2 + $0xd4] sm:$0xff] }
 0x1c7   : > { %8961 = vmatmul.mubr.msk.f32.gmra.mrb[50].mxu0 %vm372_vm0, %v5324_v36  ;;  %8523 = vmatprep.mubr.msk.f32.mxu1 %vm372_vm0, %v2465_v26  ;;  %v5329_v36 = vld [vmem:[#allocation2 + $0x1e9] sm:$0xff]  ;;  %v2470_v26 = vld [vmem:[#allocation2 + $0xdc] sm:$0xff] }
 0x1c8   : > { %8963 = vmatprep.mubr.msk.f32.mxu0 %vm372_vm0, %v5325_v54  ;;  %v5330_v54 = vld [vmem:[#allocation2 + $0x1f1] sm:$0xff] }
 0x1ca   : > { %8524 = vmatmul.mubr.msk.f32.gmra.mrb[20].mxu1 %vm372_vm0, %v2466_v39  ;;  %v2471_v39 = vld [vmem:[#allocation2 + $0xe4] sm:$0xff] }
 0x1cb   : > { %8964 = vmatmul.mubr.msk.f32.gmra.mrb[52].mxu0 %vm372_vm0, %v5326_v47  ;;  %8526 = vmatprep.mubr.msk.f32.mxu1 %vm372_vm0, %v2467_v43  ;;  %v5331_v47 = vld [vmem:[#allocation2 + $0x1f9] sm:$0xff]  ;;  %v2472_v43 = vld [vmem:[#allocation2 + $0xec] sm:$0xff] }
 0x1cc   : > { %8966 = vmatprep.mubr.msk.f32.mxu0 %vm372_vm0, %v5327_v51  ;;  %v5332_v51 = vld [vmem:[#allocation2 + $0x201] sm:$0xff] }
 0x1ce   : > { %8527 = vmatmul.mubr.msk.f32.gmra.mrb[22].mxu1 %vm372_vm0, %v2468_v16  ;;  %v2473_v16 = vld [vmem:[#allocation2 + $0xf4] sm:$0xff] }
 0x1cf   : > { %8967 = vmatmul.mubr.msk.f32.gmra.mrb[54].mxu0 %vm372_vm0, %v5328_v31  ;;  %8529 = vmatprep.mubr.msk.f32.mxu1 %vm372_vm0, %v2469_v2  ;;  %v5333_v31 = vld [vmem:[#allocation2 + $0x209] sm:$0xff]  ;;  %v2474_v2 = vld [vmem:[#allocation2 + $0xfc] sm:$0xff] }
 0x1d0   : > { %8969 = vmatprep.mubr.msk.f32.mxu0 %vm372_vm0, %v5329_v36  ;;  %v5334_v36 = vld [vmem:[#allocation2 + $0x211] sm:$0xff] }
 0x1d2   : > { %8530 = vmatmul.mubr.msk.f32.gmra.mrb[24].mxu1 %vm372_vm0, %v2470_v26  ;;  %v2475_v26 = vld [vmem:[#allocation2 + $0x104] sm:$0xff] }
 0x1d3   : > { %8970 = vmatmul.mubr.msk.f32.gmra.mrb[56].mxu0 %vm372_vm0, %v5330_v54  ;;  %8532 = vmatprep.mubr.msk.f32.mxu1 %vm372_vm0, %v2471_v39  ;;  %v5335_v54 = vld [vmem:[#allocation2 + $0x219] sm:$0xff]  ;;  %v2476_v39 = vld [vmem:[#allocation2 + $0x10c] sm:$0xff] }
 0x1d4   : > { %8972 = vmatprep.mubr.msk.f32.mxu0 %vm372_vm0, %v5331_v47  ;;  %v5336_v47 = vld [vmem:[#allocation2 + $0x221] sm:$0xff] }
 0x1d6   : > { %8533 = vmatmul.mubr.msk.f32.gmra.mrb[26].mxu1 %vm372_vm0, %v2472_v43  ;;  %v2477_v43 = vld [vmem:[#allocation2 + $0x114] sm:$0xff] }
 0x1d7   : > { %8973 = vmatmul.mubr.msk.f32.gmra.mrb[58].mxu0 %vm372_vm0, %v5332_v51  ;;  %8535 = vmatprep.mubr.msk.f32.mxu1 %vm372_vm0, %v2473_v16  ;;  %v2478_v51 = vld [vmem:[#allocation2 + $0x11c] sm:$0xff]  ;;  %v2479_v16 = vld [vmem:[#allocation2 + $0x124] sm:$0xff] }
 0x1d8   : > { %8975 = vmatprep.mubr.msk.f32.mxu0 %vm372_vm0, %v5333_v31  ;;  %v2480_v31 = vld [vmem:[#allocation2 + $0x12c] sm:$0xff] }
 0x1da   : > { %8536 = vmatmul.mubr.msk.f32.gmra.mrb[28].mxu1 %vm372_vm0, %v2474_v2  ;;  %v2481_v2 = vld [vmem:[#allocation2 + $0x134] sm:$0xff] }
 0x1db   : > { %8976 = vmatmul.mubr.msk.f32.gmra.mrb[60].mxu0 %vm372_vm0, %v5334_v36  ;;  %8538 = vmatprep.mubr.msk.f32.mxu1 %vm372_vm0, %v2475_v26  ;;  %v2483_v36 = vld [vmem:[#allocation2 + $0x144] sm:$0xff]  ;;  %v3208_v26 = vld [vmem:[#allocation2 + $0x1d5] sm:$0xff] }
 0x1dc   : > { %8978 = vmatprep.mubr.msk.f32.mxu0 %vm372_vm0, %v5335_v54  ;;  %v11199_v54 = vld [vmem:[#allocation5_spill] sm:$0xff] }
 0x1de   : > { %8539 = vmatmul.mubr.msk.f32.gmra.mrb[30].mxu1 %vm372_vm0, %v2476_v39  ;;  %v3210_v39 = vld [vmem:[#allocation2 + $0x1e5] sm:$0xff] }
 0x1df   : > { %8979 = vmatmul.mubr.msk.f32.gmra.mrb[62].mxu0 %vm372_vm0, %v5336_v47  ;;  %8541 = vmatprep.mubr.msk.f32.mxu1 %vm372_vm0, %v2477_v43  ;;  %v3211_v47 = vld [vmem:[#allocation2 + $0x1ed] sm:$0xff]  ;;  %v11201_v43 = vld [vmem:[#allocation7_spill] sm:$0xff] }
 0x1e0   : > { %8983 = vmatprep.mubr.msk.f32.mxu0 %vm372_vm0, %v10386_v18  ;;  %v2482_v18 = vld [vmem:[#allocation2 + $0x13c] sm:$0xff] }
 0x1e2   : > { %8542 = vmatmul.mubr.msk.f32.gmra.mrb[32].mxu1 %vm372_vm0, %v2478_v51  ;;  %v6039_v51 = vld [vmem:[#allocation2 + $0x202] sm:$0xff] }
 0x1e3   : > { %8984 = vmatmul.mubr.msk.f32.vlgmr.msra.gmra.mrb[0].mxu0 %vm372_vm0, %v10390_v55  ;;  %8544 = vmatprep.mubr.msk.f32.mxu1 %vm372_vm0, %v2479_v16  ;;  %v2484_v55 = vld [vmem:[#allocation2 + $0x14c] sm:$0xff]  ;;  %v3212_v16 = vld [vmem:[#allocation2 + $0x1f5] sm:$0xff] }
 0x1e4   : > { %8986 = vmatprep.mubr.msk.f32.mxu0 %vm372_vm0, %v10398_v56  ;;  %v2485_v56 = vld [vmem:[#allocation2 + $0x154] sm:$0xff] }
 0x1e6   : > { %8545 = vmatmul.mubr.msk.f32.gmra.mrb[34].mxu1 %vm372_vm0, %v2480_v31  ;;  %v6040_v31 = vld [vmem:[#allocation2 + $0x20a] sm:$0xff] }
 0x1e7   : > { %8987 = vmatmul.mubr.msk.f32.gmra.mrb[2].mxu0 %vm372_vm0, %v10402_v57  ;;  %8547 = vmatprep.mubr.msk.f32.mxu1 %vm372_vm0, %v2481_v2  ;;  %v2486_v57 = vld [vmem:[#allocation2 + $0x15c] sm:$0xff] }
 0x1e8   : > { %8989 = vmatprep.mubr.msk.f32.mxu0 %vm372_vm0, %v10410_v58  ;;  %v2487_v58 = vld [vmem:[#allocation2 + $0x164] sm:$0xff] }
 0x1e9   : > { %v3213_v2 = vld [vmem:[#allocation2 + $0x1fd] sm:$0xff] }
 0x1ea   : > { %8548 = vmatmul.mubr.msk.f32.gmra.mrb[36].mxu1 %vm372_vm0, %v2482_v18  ;;  %v6041_v18 = vld [vmem:[#allocation2 + $0x212] sm:$0xff] }
 0x1eb   : > { %8990 = vmatmul.mubr.msk.f32.gmra.mrb[4].mxu0 %vm372_vm0, %v10414_v59  ;;  %8550 = vmatprep.mubr.msk.f32.mxu1 %vm372_vm0, %v2483_v36  ;;  %v2488_v59 = vld [vmem:[#allocation2 + $0x16c] sm:$0xff] }
 0x1ec   : > { %8992 = vmatprep.mubr.msk.f32.mxu0 %vm372_vm0, %v10422_v60  ;;  %v2489_v60 = vld [vmem:[#allocation2 + $0x174] sm:$0xff]  ;;  %v3214_v36 = vld [vmem:[#allocation2 + $0x205] sm:$0xff] }
 0x1ee   : > { %8551 = vmatmul.mubr.msk.f32.gmra.mrb[38].mxu1 %vm372_vm0, %v2484_v55  ;;  %v6042_v55 = vld [vmem:[#allocation2 + $0x21a] sm:$0xff] }
 0x1ef   : > { %8993 = vmatmul.mubr.msk.f32.gmra.mrb[6].mxu0 %vm372_vm0, %v10426_v61  ;;  %8553 = vmatprep.mubr.msk.f32.mxu1 %vm372_vm0, %v2485_v56  ;;  %v2490_v61 = vld [vmem:[#allocation2 + $0x17c] sm:$0xff]  ;;  %v3215_v56 = vld [vmem:[#allocation2 + $0x20d] sm:$0xff] }
 0x1f0   : > { %8995 = vmatprep.mubr.msk.f32.mxu0 %vm372_vm0, %v10434_v62  ;;  %v2491_v62 = vld [vmem:[#allocation2 + $0x184] sm:$0xff] }
 0x1f2   : > { %8554 = vmatmul.mubr.msk.f32.gmra.mrb[40].mxu1 %vm372_vm0, %v2486_v57  ;;  %v6043_v57 = vld [vmem:[#allocation2 + $0x222] sm:$0xff] }
 0x1f3   : > { %8996 = vmatmul.mubr.msk.f32.gmra.mrb[8].mxu0 %vm372_vm0, %v10438_v63  ;;  %8556 = vmatprep.mubr.msk.f32.mxu1 %vm372_vm0, %v2487_v58  ;;  %v2492_v63 = vld [vmem:[#allocation2 + $0x18c] sm:$0xff] }
 0x1f4   : > { %8998 = vmatprep.mubr.msk.f32.mxu0 %vm372_vm0, %v10446_v0  ;;  %v2493_v0 = vld [vmem:[#allocation2 + $0x194] sm:$0xff] }
 0x1f6   : > { %8557 = vmatmul.mubr.msk.f32.gmra.mrb[42].mxu1 %vm372_vm0, %v2488_v59 }
 0x1f7   : > { %8999 = vmatmul.mubr.msk.f32.gmra.mrb[10].mxu0 %vm372_vm0, %v10450_v1  ;;  %8559 = vmatprep.mubr.msk.f32.mxu1 %vm372_vm0, %v2489_v60  ;;  %v2494_v1 = vld [vmem:[#allocation2 + $0x19c] sm:$0xff] }
 0x1f8   : > { %9001 = vmatprep.mubr.msk.f32.mxu0 %vm372_vm0, %v10458_v3  ;;  %v2495_v3 = vld [vmem:[#allocation2 + $0x1a4] sm:$0xff] }
 0x1fa   : > { %8560 = vmatmul.mubr.msk.f32.gmra.mrb[44].mxu1 %vm372_vm0, %v2490_v61 }
 0x1fb   : > { %9002 = vmatmul.mubr.msk.f32.gmra.mrb[12].mxu0 %vm372_vm0, %v10462_v4  ;;  %8562 = vmatprep.mubr.msk.f32.mxu1 %vm372_vm0, %v2491_v62  ;;  %v2496_v4 = vld [vmem:[#allocation2 + $0x1ac] sm:$0xff] }
 0x1fc   : > { %9004 = vmatprep.mubr.msk.f32.mxu0 %vm372_vm0, %v10470_v5  ;;  %v2497_v5 = vld [vmem:[#allocation2 + $0x1b4] sm:$0xff] }
 0x1fe   : > { %8563 = vmatmul.mubr.msk.f32.gmra.mrb[46].mxu1 %vm372_vm0, %v2492_v63 }
 0x1ff   : > { %9005 = vmatmul.mubr.msk.f32.gmra.mrb[14].mxu0 %vm372_vm0, %v10474_v6  ;;  %8565 = vmatprep.mubr.msk.f32.mxu1 %vm372_vm0, %v2493_v0  ;;  %v2498_v6 = vld [vmem:[#allocation2 + $0x1bc] sm:$0xff] }
 0x200   : > { %9007 = vmatprep.mubr.msk.f32.mxu0 %vm372_vm0, %v10482_v7  ;;  %v2499_v7 = vld [vmem:[#allocation2 + $0x1c4] sm:$0xff] }
 0x202   : > { %8566 = vmatmul.mubr.msk.f32.gmra.mrb[48].mxu1 %vm372_vm0, %v2494_v1 }
 0x203   : > { %9008 = vmatmul.mubr.msk.f32.gmra.mrb[16].mxu0 %vm372_vm0, %v10486_v8  ;;  %8568 = vmatprep.mubr.msk.f32.mxu1 %vm372_vm0, %v2495_v3  ;;  %v2500_v8 = vld [vmem:[#allocation2 + $0x1cc] sm:$0xff] }
 0x204   : > { %9010 = vmatprep.mubr.msk.f32.mxu0 %vm372_vm0, %v10494_v9  ;;  %v2501_v9 = vld [vmem:[#allocation2 + $0x1d4] sm:$0xff] }
 0x206   : > { %8569 = vmatmul.mubr.msk.f32.gmra.mrb[50].mxu1 %vm372_vm0, %v2496_v4 }
 0x207   : > { %9011 = vmatmul.mubr.msk.f32.gmra.mrb[18].mxu0 %vm372_vm0, %v10498_v10  ;;  %8571 = vmatprep.mubr.msk.f32.mxu1 %vm372_vm0, %v2497_v5  ;;  %v2502_v10 = vld [vmem:[#allocation2 + $0x1dc] sm:$0xff] }
 0x208   : > { %9013 = vmatprep.mubr.msk.f32.mxu0 %vm372_vm0, %v10506_v11  ;;  %v2503_v11 = vld [vmem:[#allocation2 + $0x1e4] sm:$0xff] }
 0x20a   : > { %8572 = vmatmul.mubr.msk.f32.gmra.mrb[52].mxu1 %vm372_vm0, %v2498_v6 }
 0x20b   : > { %9014 = vmatmul.mubr.msk.f32.gmra.mrb[20].mxu0 %vm372_vm0, %v10510_v12  ;;  %8574 = vmatprep.mubr.msk.f32.mxu1 %vm372_vm0, %v2499_v7  ;;  %v2504_v12 = vld [vmem:[#allocation2 + $0x1ec] sm:$0xff] }
 0x20c   : > { %9016 = vmatprep.mubr.msk.f32.mxu0 %vm372_vm0, %v10518_v13  ;;  %v2505_v13 = vld [vmem:[#allocation2 + $0x1f4] sm:$0xff] }
 0x20e   : > { %8575 = vmatmul.mubr.msk.f32.gmra.mrb[54].mxu1 %vm372_vm0, %v2500_v8 }
 0x20f   : > { %9017 = vmatmul.mubr.msk.f32.gmra.mrb[22].mxu0 %vm372_vm0, %v10522_v15  ;;  %8577 = vmatprep.mubr.msk.f32.mxu1 %vm372_vm0, %v2501_v9  ;;  %v2506_v15 = vld [vmem:[#allocation2 + $0x1fc] sm:$0xff] }
 0x210   : > { %9019 = vmatprep.mubr.msk.f32.mxu0 %vm372_vm0, %v10530_v19  ;;  %v2507_v19 = vld [vmem:[#allocation2 + $0x204] sm:$0xff] }
 0x212   : > { %8578 = vmatmul.mubr.msk.f32.gmra.mrb[56].mxu1 %vm372_vm0, %v2502_v10 }
 0x213   : > { %9020 = vmatmul.mubr.msk.f32.gmra.mrb[24].mxu0 %vm372_vm0, %v10534_v35  ;;  %8580 = vmatprep.mubr.msk.f32.mxu1 %vm372_vm0, %v2503_v11  ;;  %v2508_v35 = vld [vmem:[#allocation2 + $0x20c] sm:$0xff] }
 0x214   : > { %9022 = vmatprep.mubr.msk.f32.mxu0 %vm372_vm0, %v10541_v28  ;;  %v3184_v28 = vld [vmem:[#allocation2 + $0x115] sm:$0xff] }
 0x216   : > { %8581 = vmatmul.mubr.msk.f32.gmra.mrb[58].mxu1 %vm372_vm0, %v2504_v12 }
 0x217   : > { %9023 = vmatmul.mubr.msk.f32.gmra.mrb[26].mxu0 %vm372_vm0, %v10544_v23  ;;  %8583 = vmatprep.mubr.msk.f32.mxu1 %vm372_vm0, %v2505_v13  ;;  %v3185_v23 = vld [vmem:[#allocation2 + $0x11d] sm:$0xff] }
 0x218   : > { %9025 = vmatprep.mubr.msk.f32.mxu0 %vm372_vm0, %v10551_v25  ;;  %v3186_v25 = vld [vmem:[#allocation2 + $0x125] sm:$0xff] }
 0x21a   : > { %8584 = vmatmul.mubr.msk.f32.gmra.mrb[60].mxu1 %vm372_vm0, %v2506_v15 }
 0x21b   : > { %9026 = vmatmul.mubr.msk.f32.gmra.mrb[28].mxu0 %vm372_vm0, %v10554_v27  ;;  %8586 = vmatprep.mubr.msk.f32.mxu1 %vm372_vm0, %v2507_v19  ;;  %v3187_v27 = vld [vmem:[#allocation2 + $0x12d] sm:$0xff] }
 0x21c   : > { %9028 = vmatprep.mubr.msk.f32.mxu0 %vm372_vm0, %v10561_v30  ;;  %v3188_v30 = vld [vmem:[#allocation2 + $0x135] sm:$0xff] }
 0x21e   : > { %8587 = vmatmul.mubr.msk.f32.gmra.mrb[62].mxu1 %vm372_vm0, %v2508_v35 }
 0x21f   : > { %9029 = vmatmul.mubr.msk.f32.gmra.mrb[30].mxu0 %vm372_vm0, %v10565_v32  ;;  %8639 = vmatprep.mubr.msk.f32.mxu1 %vm372_vm0, %v3184_v28  ;;  %v3189_v32 = vld [vmem:[#allocation2 + $0x13d] sm:$0xff] }
 0x220   : > { %9031 = vmatprep.mubr.msk.f32.mxu0 %vm372_vm0, %v10572_v34  ;;  %v3190_v34 = vld [vmem:[#allocation2 + $0x145] sm:$0xff] }
 0x222   : > { %8640 = vmatmul.mubr.msk.f32.vlgmr.msra.gmra.mrb[32].mxu1 %vm372_vm0, %v3185_v23 }
 0x223   : > { %9032 = vmatmul.mubr.msk.f32.gmra.mrb[32].mxu0 %vm372_vm0, %v10575_v20  ;;  %8642 = vmatprep.mubr.msk.f32.mxu1 %vm372_vm0, %v3186_v25  ;;  %v3191_v20 = vld [vmem:[#allocation2 + $0x14d] sm:$0xff] }
 0x224   : > { %9034 = vmatprep.mubr.msk.f32.mxu0 %vm372_vm0, %v10582_v38  ;;  %v3192_v38 = vld [vmem:[#allocation2 + $0x155] sm:$0xff] }
 0x226   : > { %8643 = vmatmul.mubr.msk.f32.gmra.mrb[34].mxu1 %vm372_vm0, %v3187_v27 }
 0x227   : > { %9035 = vmatmul.mubr.msk.f32.gmra.mrb[34].mxu0 %vm372_vm0, %v10585_v40  ;;  %8645 = vmatprep.mubr.msk.f32.mxu1 %vm372_vm0, %v3188_v30  ;;  %v3193_v40 = vld [vmem:[#allocation2 + $0x15d] sm:$0xff] }
 0x228   : > { %9037 = vmatprep.mubr.msk.f32.mxu0 %vm372_vm0, %v10592_v42  ;;  %v3194_v42 = vld [vmem:[#allocation2 + $0x165] sm:$0xff] }
 0x22a   : > { %8646 = vmatmul.mubr.msk.f32.gmra.mrb[36].mxu1 %vm372_vm0, %v3189_v32 }
 0x22b   : > { %9038 = vmatmul.mubr.msk.f32.gmra.mrb[36].mxu0 %vm372_vm0, %v10595_v44  ;;  %8648 = vmatprep.mubr.msk.f32.mxu1 %vm372_vm0, %v3190_v34  ;;  %v3195_v44 = vld [vmem:[#allocation2 + $0x16d] sm:$0xff] }
 0x22c   : > { %9040 = vmatprep.mubr.msk.f32.mxu0 %vm372_vm0, %v10602_v46  ;;  %v3196_v46 = vld [vmem:[#allocation2 + $0x175] sm:$0xff] }
 0x22e   : > { %8649 = vmatmul.mubr.msk.f32.gmra.mrb[38].mxu1 %vm372_vm0, %v3191_v20 }
 0x22f   : > { %9041 = vmatmul.mubr.msk.f32.gmra.mrb[38].mxu0 %vm372_vm0, %v10605_v48  ;;  %8651 = vmatprep.mubr.msk.f32.mxu1 %vm372_vm0, %v3192_v38  ;;  %v3197_v48 = vld [vmem:[#allocation2 + $0x17d] sm:$0xff] }
 0x230   : > { %9043 = vmatprep.mubr.msk.f32.mxu0 %vm372_vm0, %v10612_v50  ;;  %v3198_v50 = vld [vmem:[#allocation2 + $0x185] sm:$0xff] }
 0x232   : > { %8652 = vmatmul.mubr.msk.f32.gmra.mrb[40].mxu1 %vm372_vm0, %v3193_v40 }
 0x233   : > { %9044 = vmatmul.mubr.msk.f32.gmra.mrb[40].mxu0 %vm372_vm0, %v10615_v52  ;;  %8654 = vmatprep.mubr.msk.f32.mxu1 %vm372_vm0, %v3194_v42  ;;  %v3199_v52 = vld [vmem:[#allocation2 + $0x18d] sm:$0xff] }
 0x234   : > { %9046 = vmatprep.mubr.msk.f32.mxu0 %vm372_vm0, %v10622_v14  ;;  %v3200_v14 = vld [vmem:[#allocation2 + $0x195] sm:$0xff] }
 0x236   : > { %8655 = vmatmul.mubr.msk.f32.gmra.mrb[42].mxu1 %vm372_vm0, %v3195_v44  ;;  %v11013_v44 = vld [vmem:[%s11184_s3] ss:$0 sm:$0xff] }
 0x237   : > { %9047 = vmatmul.mubr.msk.f32.gmra.mrb[42].mxu0 %vm372_vm0, %v10625_v17  ;;  %8657 = vmatprep.mubr.msk.f32.mxu1 %vm372_vm0, %v3196_v46  ;;  %v3201_v17 = vld [vmem:[#allocation2 + $0x19d] sm:$0xff] }
 0x238   : > { %9049 = vmatprep.mubr.msk.f32.mxu0 %vm372_vm0, %v10632_v22  ;;  %v3202_v22 = vld [vmem:[#allocation2 + $0x1a5] sm:$0xff] }
 0x23a   : > { %8658 = vmatmul.mubr.msk.f32.gmra.mrb[44].mxu1 %vm372_vm0, %v3197_v48 }
 0x23b   : > { %9050 = vmatmul.mubr.msk.f32.gmra.mrb[44].mxu0 %vm372_vm0, %v10635_v24  ;;  %8660 = vmatprep.mubr.msk.f32.mxu1 %vm372_vm0, %v3198_v50  ;;  %v3203_v24 = vld [vmem:[#allocation2 + $0x1ad] sm:$0xff] }
 0x23c   : > { %9052 = vmatprep.mubr.msk.f32.mxu0 %vm372_vm0, %v10642_v29  ;;  %v3204_v29 = vld [vmem:[#allocation2 + $0x1b5] sm:$0xff] }
 0x23e   : > { %8661 = vmatmul.mubr.msk.f32.gmra.mrb[46].mxu1 %vm372_vm0, %v3199_v52 }
 0x23f   : > { %9053 = vmatmul.mubr.msk.f32.gmra.mrb[46].mxu0 %vm372_vm0, %v10645_v33  ;;  %8663 = vmatprep.mubr.msk.f32.mxu1 %vm372_vm0, %v3200_v14  ;;  %v3205_v33 = vld [vmem:[#allocation2 + $0x1bd] sm:$0xff] }
 0x240   : > { %9055 = vmatprep.mubr.msk.f32.mxu0 %vm372_vm0, %v10652_v37  ;;  %v3206_v37 = vld [vmem:[#allocation2 + $0x1c5] sm:$0xff] }
 0x242   : > { %8664 = vmatmul.mubr.msk.f32.gmra.mrb[48].mxu1 %vm372_vm0, %v3201_v17 }
 0x243   : > { %9056 = vmatmul.mubr.msk.f32.gmra.mrb[48].mxu0 %vm372_vm0, %v10655_v41  ;;  %8666 = vmatprep.mubr.msk.f32.mxu1 %vm372_vm0, %v3202_v22  ;;  %v3207_v41 = vld [vmem:[#allocation2 + $0x1cd] sm:$0xff] }
 0x244   : > { %9058 = vmatprep.mubr.msk.f32.mxu0 %vm372_vm0, %v10662_v45  ;;  %v11197_v45 = vld [vmem:[#allocation3_spill] sm:$0xff] }
 0x246   : > { %8667 = vmatmul.mubr.msk.f32.gmra.mrb[50].mxu1 %vm372_vm0, %v3203_v24 }
 0x247   : > { %9059 = vmatmul.mubr.msk.f32.gmra.mrb[50].mxu0 %vm372_vm0, %v10665_v49  ;;  %8669 = vmatprep.mubr.msk.f32.mxu1 %vm372_vm0, %v3204_v29  ;;  %v11198_v49 = vld [vmem:[#allocation4_spill] sm:$0xff] }
 0x248   : > { %9061 = vmatprep.mubr.msk.f32.mxu0 %vm372_vm0, %v10672_v53  ;;  %v3209_v53 = vld [vmem:[#allocation2 + $0x1dd] sm:$0xff] }
 0x24a   : > { %8670 = vmatmul.mubr.msk.f32.gmra.mrb[52].mxu1 %vm372_vm0, %v3205_v33 }
 0x24b   : > { %9062 = vmatmul.mubr.msk.f32.gmra.mrb[52].mxu0 %vm372_vm0, %v10675_v21  ;;  %8672 = vmatprep.mubr.msk.f32.mxu1 %vm372_vm0, %v3206_v37  ;;  %v11200_v21 = vld [vmem:[#allocation6_spill] sm:$0xff] }
 0x24c   : > { %9064 = vmatprep.mubr.msk.f32.mxu0 %vm372_vm0, %v11197_v45 }
 0x24e   : > { %8673 = vmatmul.mubr.msk.f32.gmra.mrb[54].mxu1 %vm372_vm0, %v3207_v41 }
 0x24f   : > { %9065 = vmatmul.mubr.msk.f32.gmra.mrb[54].mxu0 %vm372_vm0, %v11198_v49  ;;  %8675 = vmatprep.mubr.msk.f32.mxu1 %vm372_vm0, %v3208_v26 }
 0x250   : > { %9067 = vmatprep.mubr.msk.f32.mxu0 %vm372_vm0, %v11199_v54 }
 0x252   : > { %8676 = vmatmul.mubr.msk.f32.gmra.mrb[56].mxu1 %vm372_vm0, %v3209_v53 }
 0x253   : > { %9068 = vmatmul.mubr.msk.f32.gmra.mrb[56].mxu0 %vm372_vm0, %v11200_v21  ;;  %8678 = vmatprep.mubr.msk.f32.mxu1 %vm372_vm0, %v3210_v39 }
 0x254   : > { %9070 = vmatprep.mubr.msk.f32.mxu0 %vm372_vm0, %v11201_v43 }
 0x256   : > { %8679 = vmatmul.mubr.msk.f32.gmra.mrb[58].mxu1 %vm372_vm0, %v3211_v47 }
 0x257   : > { %9071 = vmatmul.mubr.msk.f32.gmra.mrb[58].mxu0 %vm372_vm0, %v6039_v51  ;;  %8681 = vmatprep.mubr.msk.f32.mxu1 %vm372_vm0, %v3212_v16 }
 0x258   : > { %9073 = vmatprep.mubr.msk.f32.mxu0 %vm372_vm0, %v6040_v31 }
 0x25a   : > { %8682 = vmatmul.mubr.msk.f32.gmra.mrb[60].mxu1 %vm372_vm0, %v3213_v2 }
 0x25b   : > { %9074 = vmatmul.mubr.msk.f32.gmra.mrb[60].mxu0 %vm372_vm0, %v6041_v18  ;;  %8684 = vmatprep.mubr.msk.f32.mxu1 %vm372_vm0, %v3214_v36 }
 0x25c   : > { %9076 = vmatprep.mubr.msk.f32.mxu0 %vm372_vm0, %v6042_v55 }
 0x25e   : > { %8685 = vmatmul.mubr.msk.f32.gmra.mrb[62].mxu1 %vm372_vm0, %v3215_v56 }
 0x25f   : > { %9077 = vmatmul.mubr.msk.f32.gmra.mrb[62].mxu0 %vm372_vm0, %v6043_v57 }
 0x275   : > { %v8495_v58 = vpop.f32.mrb[0].mxu1 }
 0x276   : > { %v2769_v59 = vpop.f32.mrb[1].mxu1 }
 0x279   : > { %v8498_v60 = vpop.f32.mrb[2].mxu1 }
 0x27a   : > { %v2779_v61 = vpop.f32.mrb[3].mxu1 }
 0x27d   : > { %v8501_v62 = vpop.f32.mrb[4].mxu1 }
 0x27e   : > { %v2789_v63 = vpop.f32.mrb[5].mxu1 }
 0x281   : > { %v8504_v0 = vpop.f32.mrb[6].mxu1 }
 0x282   : > { %v2799_v1 = vpop.f32.mrb[7].mxu1 }
 0x285   : > { %v10960_v3 = vpop.f32.mrb[8].mxu1 }
 0x286   : > { %v10962_v4 = vpop.f32.mrb[9].mxu1 }
 0x289   : > { %v10964_v5 = vpop.f32.mrb[10].mxu1 }
 0x28a   : > { %v10966_v6 = vpop.f32.mrb[11].mxu1 }
 0x28d   : > { %v10968_v7 = vpop.f32.mrb[12].mxu1 }
 0x28e   : > { %v10970_v8 = vpop.f32.mrb[13].mxu1 }
 0x291   : > { %v10972_v9 = vpop.f32.mrb[14].mxu1 }
 0x292   : > { %v10974_v10 = vpop.f32.mrb[15].mxu1 }
 0x295   : > { %v10976_v11 = vpop.f32.mrb[16].mxu1 }
 0x296   : > { %v10978_v12 = vpop.f32.mrb[17].mxu1 }
 0x299   : > { %v10980_v13 = vpop.f32.mrb[18].mxu1 }
 0x29a   : > { %v10982_v15 = vpop.f32.mrb[19].mxu1 }
 0x29d   : > { %v10984_v19 = vpop.f32.mrb[20].mxu1 }
 0x29e   : > { %v10986_v35 = vpop.f32.mrb[21].mxu1 }
 0x2a1   : > { %v10988_v28 = vpop.f32.mrb[22].mxu1 }
 0x2a2   : > { %v10990_v23 = vpop.f32.mrb[23].mxu1 }
 0x2a5   : > { %v10992_v25 = vpop.f32.mrb[24].mxu1 }
 0x2a6   : > { %v10994_v27 = vpop.f32.mrb[25].mxu1 }
 0x2a9   : > { %v10996_v30 = vpop.f32.mrb[26].mxu1 }
 0x2aa   : > { %v10998_v32 = vpop.f32.mrb[27].mxu1 }
 0x2ad   : > { %v11000_v34 = vpop.f32.mrb[28].mxu1 }
 0x2ae   : > { %v11002_v20 = vpop.f32.mrb[29].mxu1 }
 0x2b1   : > { %v11005_v38 = vpop.f32.mrb[30].mxu1 }
 0x2b2   : > { %v11007_v40 = vpop.f32.mrb[31].mxu1 }
 0x2b6   : > { %v8985_v42 = vpop.f32.mrb[0].mxu0 }
 0x2b7   : > { %v9081_v46 = vadd.f32 %v8985_v42, %v8495_v58  ;;  %v6304_v48 = vpop.f32.mrb[1].mxu0 }
 0x2b8   : > { %v9082_v50 = vadd.f32 %v6304_v48, %v2769_v59 }
 0x2b9   : > { %v6695_v52 = vadd.f32 %v9081_v46, %v11013_v44 }
 0x2ba   : > { %v6694_v14 = vadd.f32 %v9082_v50, %v11013_v44  ;;  %v8988_v17 = vpop.f32.mrb[2].mxu0 }
 0x2bb   : > { %v6759_v22 = vmax.f32 %v6695_v52, 0.0  ;;  %v9083_v24 = vadd.f32 %v8988_v17, %v8498_v60  ;;  %v6314_v29 = vpop.f32.mrb[3].mxu0 }
 0x2bc   : > { %v6758_v33 = vmax.f32 %v6694_v14, 0.0  ;;  %v9084_v37 = vadd.f32 %v6314_v29, %v2779_v61 }
 0x2bd   : > { %6823 = vst [vmem:[%s11019_s8 + $0x8] sm:$0xff] %v6759_v22  ;;  %v6697_v41 = vadd.f32 %v9083_v24, %v11013_v44 }
 0x2be   : > { %6822 = vst [vmem:[%s11019_s8] sm:$0xff] %v6758_v33  ;;  %v6696_v45 = vadd.f32 %v9084_v37, %v11013_v44  ;;  %v8991_v26 = vpop.f32.mrb[4].mxu0 }
 0x2bf   : > { %v6761_v49 = vmax.f32 %v6697_v41, 0.0  ;;  %v9085_v53 = vadd.f32 %v8991_v26, %v8501_v62  ;;  %v6324_v54 = vpop.f32.mrb[5].mxu0 }
 0x2c0   : > { %v6760_v39 = vmax.f32 %v6696_v45, 0.0  ;;  %v9086_v21 = vadd.f32 %v6324_v54, %v2789_v63 }
 0x2c1   : > { %6825 = vst [vmem:[%s11019_s8 + $0x18] sm:$0xff] %v6761_v49  ;;  %v6699_v47 = vadd.f32 %v9085_v53, %v11013_v44 }
 0x2c2   : > { %6824 = vst [vmem:[%s11019_s8 + $0x10] sm:$0xff] %v6760_v39  ;;  %v6698_v43 = vadd.f32 %v9086_v21, %v11013_v44  ;;  %v8994_v51 = vpop.f32.mrb[6].mxu0 }
 0x2c3   : > { %v6763_v16 = vmax.f32 %v6699_v47, 0.0  ;;  %v9087_v31 = vadd.f32 %v8994_v51, %v8504_v0  ;;  %v6334_v2 = vpop.f32.mrb[7].mxu0 }
 0x2c4   : > { %v6762_v18 = vmax.f32 %v6698_v43, 0.0  ;;  %v9088_v36 = vadd.f32 %v6334_v2, %v2799_v1 }
 0x2c5   : > { %6827 = vst [vmem:[%s11019_s8 + $0x28] sm:$0xff] %v6763_v16  ;;  %v6701_v55 = vadd.f32 %v9087_v31, %v11013_v44 }
 0x2c6   : > { %6826 = vst [vmem:[%s11019_s8 + $0x20] sm:$0xff] %v6762_v18  ;;  %v6700_v56 = vadd.f32 %v9088_v36, %v11013_v44  ;;  %v8997_v57 = vpop.f32.mrb[8].mxu0 }
 0x2c7   : > { %v6765_v58 = vmax.f32 %v6701_v55, 0.0  ;;  %v9089_v59 = vadd.f32 %v8997_v57, %v10960_v3  ;;  %v6344_v60 = vpop.f32.mrb[9].mxu0 }
 0x2c8   : > { %v6764_v61 = vmax.f32 %v6700_v56, 0.0  ;;  %v9090_v62 = vadd.f32 %v6344_v60, %v10962_v4 }
 0x2c9   : > { %6829 = vst [vmem:[%s11019_s8 + $0x38] sm:$0xff] %v6765_v58  ;;  %v6703_v63 = vadd.f32 %v9089_v59, %v11013_v44 }
 0x2ca   : > { %6828 = vst [vmem:[%s11019_s8 + $0x30] sm:$0xff] %v6764_v61  ;;  %v6702_v0 = vadd.f32 %v9090_v62, %v11013_v44  ;;  %v9000_v1 = vpop.f32.mrb[10].mxu0 }
 0x2cb   : > { %v6767_v42 = vmax.f32 %v6703_v63, 0.0  ;;  %v9091_v46 = vadd.f32 %v9000_v1, %v10964_v5  ;;  %v6354_v48 = vpop.f32.mrb[11].mxu0 }
 0x2cc   : > { %v6766_v50 = vmax.f32 %v6702_v0, 0.0  ;;  %v9092_v3 = vadd.f32 %v6354_v48, %v10966_v6 }
 0x2cd   : > { %6831 = vst [vmem:[%s11019_s8 + $0x48] sm:$0xff] %v6767_v42  ;;  %v6705_v52 = vadd.f32 %v9091_v46, %v11013_v44 }
 0x2ce   : > { %6830 = vst [vmem:[%s11019_s8 + $0x40] sm:$0xff] %v6766_v50  ;;  %v6704_v4 = vadd.f32 %v9092_v3, %v11013_v44  ;;  %v9003_v14 = vpop.f32.mrb[12].mxu0 }
 0x2cf   : > { %v6769_v17 = vmax.f32 %v6705_v52, 0.0  ;;  %v9093_v22 = vadd.f32 %v9003_v14, %v10968_v7  ;;  %v6364_v24 = vpop.f32.mrb[13].mxu0 }
 0x2d0   : > { %v6768_v29 = vmax.f32 %v6704_v4, 0.0  ;;  %v9094_v5 = vadd.f32 %v6364_v24, %v10970_v8 }
 0x2d1   : > { %6833 = vst [vmem:[%s11019_s8 + $0x58] sm:$0xff] %v6769_v17  ;;  %v6707_v33 = vadd.f32 %v9093_v22, %v11013_v44 }
 0x2d2   : > { %6832 = vst [vmem:[%s11019_s8 + $0x50] sm:$0xff] %v6768_v29  ;;  %v6706_v6 = vadd.f32 %v9094_v5, %v11013_v44  ;;  %v9006_v37 = vpop.f32.mrb[14].mxu0 }
 0x2d3   : > { %v6771_v41 = vmax.f32 %v6707_v33, 0.0  ;;  %v9095_v45 = vadd.f32 %v9006_v37, %v10972_v9  ;;  %v6374_v26 = vpop.f32.mrb[15].mxu0 }
 0x2d4   : > { %v6770_v49 = vmax.f32 %v6706_v6, 0.0  ;;  %v9096_v7 = vadd.f32 %v6374_v26, %v10974_v10 }
 0x2d5   : > { %6835 = vst [vmem:[%s11019_s8 + $0x68] sm:$0xff] %v6771_v41  ;;  %v6709_v53 = vadd.f32 %v9095_v45, %v11013_v44 }
 0x2d6   : > { %6834 = vst [vmem:[%s11019_s8 + $0x60] sm:$0xff] %v6770_v49  ;;  %v6708_v8 = vadd.f32 %v9096_v7, %v11013_v44  ;;  %v9009_v54 = vpop.f32.mrb[16].mxu0 }
 0x2d7   : > { %v6773_v39 = vmax.f32 %v6709_v53, 0.0  ;;  %v9097_v21 = vadd.f32 %v9009_v54, %v10976_v11  ;;  %v6384_v47 = vpop.f32.mrb[17].mxu0 }
 0x2d8   : > { %v6772_v43 = vmax.f32 %v6708_v8, 0.0  ;;  %v9098_v9 = vadd.f32 %v6384_v47, %v10978_v12 }
 0x2d9   : > { %6837 = vst [vmem:[%s11019_s8 + $0x78] sm:$0xff] %v6773_v39  ;;  %v6711_v51 = vadd.f32 %v9097_v21, %v11013_v44 }
 0x2da   : > { %6836 = vst [vmem:[%s11019_s8 + $0x70] sm:$0xff] %v6772_v43  ;;  %v6710_v10 = vadd.f32 %v9098_v9, %v11013_v44  ;;  %v9012_v16 = vpop.f32.mrb[18].mxu0 }
 0x2db   : > { %v6775_v31 = vmax.f32 %v6711_v51, 0.0  ;;  %v9099_v2 = vadd.f32 %v9012_v16, %v10980_v13  ;;  %v6394_v18 = vpop.f32.mrb[19].mxu0 }
 0x2dc   : > { %v6774_v36 = vmax.f32 %v6710_v10, 0.0  ;;  %v9100_v11 = vadd.f32 %v6394_v18, %v10982_v15 }
 0x2dd   : > { %6839 = vst [vmem:[%s11019_s8 + $0x88] sm:$0xff] %v6775_v31  ;;  %v6713_v55 = vadd.f32 %v9099_v2, %v11013_v44 }
 0x2de   : > { %6838 = vst [vmem:[%s11019_s8 + $0x80] sm:$0xff] %v6774_v36  ;;  %v6712_v12 = vadd.f32 %v9100_v11, %v11013_v44  ;;  %v9015_v56 = vpop.f32.mrb[20].mxu0 }
 0x2df   : > { %v6777_v57 = vmax.f32 %v6713_v55, 0.0  ;;  %v9101_v58 = vadd.f32 %v9015_v56, %v10984_v19  ;;  %v6404_v59 = vpop.f32.mrb[21].mxu0 }
 0x2e0   : > { %v6776_v60 = vmax.f32 %v6712_v12, 0.0  ;;  %v9102_v13 = vadd.f32 %v6404_v59, %v10986_v35 }
 0x2e1   : > { %6841 = vst [vmem:[%s11019_s8 + $0x98] sm:$0xff] %v6777_v57  ;;  %v6715_v61 = vadd.f32 %v9101_v58, %v11013_v44 }
 0x2e2   : > { %6840 = vst [vmem:[%s11019_s8 + $0x90] sm:$0xff] %v6776_v60  ;;  %v6714_v15 = vadd.f32 %v9102_v13, %v11013_v44  ;;  %v9018_v62 = vpop.f32.mrb[22].mxu0 }
 0x2e3   : > { %v6779_v63 = vmax.f32 %v6715_v61, 0.0  ;;  %v9103_v0 = vadd.f32 %v9018_v62, %v10988_v28  ;;  %v6414_v1 = vpop.f32.mrb[23].mxu0 }
 0x2e4   : > { %v6778_v42 = vmax.f32 %v6714_v15, 0.0  ;;  %v9104_v19 = vadd.f32 %v6414_v1, %v10990_v23 }
 0x2e5   : > { %6843 = vst [vmem:[%s11019_s8 + $0xa8] sm:$0xff] %v6779_v63  ;;  %v6717_v46 = vadd.f32 %v9103_v0, %v11013_v44 }
 0x2e6   : > { %6842 = vst [vmem:[%s11019_s8 + $0xa0] sm:$0xff] %v6778_v42  ;;  %v6716_v35 = vadd.f32 %v9104_v19, %v11013_v44  ;;  %v9021_v48 = vpop.f32.mrb[24].mxu0 }
 0x2e7   : > { %v6781_v50 = vmax.f32 %v6717_v46, 0.0  ;;  %v9105_v3 = vadd.f32 %v9021_v48, %v10992_v25  ;;  %v6424_v52 = vpop.f32.mrb[25].mxu0 }
 0x2e8   : > { %v6780_v4 = vmax.f32 %v6716_v35, 0.0  ;;  %v9106_v28 = vadd.f32 %v6424_v52, %v10994_v27 }
 0x2e9   : > { %6845 = vst [vmem:[%s11019_s8 + $0xb8] sm:$0xff] %v6781_v50  ;;  %v6719_v14 = vadd.f32 %v9105_v3, %v11013_v44 }
 0x2ea   : > { %6844 = vst [vmem:[%s11019_s8 + $0xb0] sm:$0xff] %v6780_v4  ;;  %v6718_v23 = vadd.f32 %v9106_v28, %v11013_v44  ;;  %v9024_v17 = vpop.f32.mrb[26].mxu0 }
 0x2eb   : > { %v6783_v22 = vmax.f32 %v6719_v14, 0.0  ;;  %v9107_v24 = vadd.f32 %v9024_v17, %v10996_v30  ;;  %v6434_v29 = vpop.f32.mrb[27].mxu0 }
 0x2ec   : > { %v6782_v5 = vmax.f32 %v6718_v23, 0.0  ;;  %v9108_v25 = vadd.f32 %v6434_v29, %v10998_v32 }
 0x2ed   : > { %6847 = vst [vmem:[%s11019_s8 + $0xc8] sm:$0xff] %v6783_v22  ;;  %v6721_v33 = vadd.f32 %v9107_v24, %v11013_v44 }
 0x2ee   : > { %6846 = vst [vmem:[%s11019_s8 + $0xc0] sm:$0xff] %v6782_v5  ;;  %v6720_v27 = vadd.f32 %v9108_v25, %v11013_v44  ;;  %v9027_v6 = vpop.f32.mrb[28].mxu0 }
 0x2ef   : > { %v6785_v37 = vmax.f32 %v6721_v33, 0.0  ;;  %v9109_v41 = vadd.f32 %v9027_v6, %v11000_v34  ;;  %v6444_v45 = vpop.f32.mrb[29].mxu0 }
 0x2f0   : > { %v6784_v26 = vmax.f32 %v6720_v27, 0.0  ;;  %v9110_v30 = vadd.f32 %v6444_v45, %v11002_v20 }
 0x2f1   : > { %6849 = vst [vmem:[%s11019_s8 + $0xd8] sm:$0xff] %v6785_v37  ;;  %v6723_v49 = vadd.f32 %v9109_v41, %v11013_v44 }
 0x2f2   : > { %6848 = vst [vmem:[%s11019_s8 + $0xd0] sm:$0xff] %v6784_v26  ;;  %v6722_v32 = vadd.f32 %v9110_v30, %v11013_v44  ;;  %v9030_v7 = vpop.f32.mrb[30].mxu0 }
 0x2f3   : > { %v6787_v53 = vmax.f32 %v6723_v49, 0.0  ;;  %v9111_v8 = vadd.f32 %v9030_v7, %v11005_v38  ;;  %v6454_v54 = vpop.f32.mrb[31].mxu0 }
 0x2f4   : > { %v6786_v39 = vmax.f32 %v6722_v32, 0.0  ;;  %v9112_v34 = vadd.f32 %v6454_v54, %v11007_v40 }
 0x2f5   : > { %6851 = vst [vmem:[%s11019_s8 + $0xe8] sm:$0xff] %v6787_v53  ;;  %v6725_v21 = vadd.f32 %v9111_v8, %v11013_v44  ;;  %v8641_v20 = vpop.f32.mrb[32].mxu1 }
 0x2f6   : > { %6850 = vst [vmem:[%s11019_s8 + $0xe0] sm:$0xff] %v6786_v39  ;;  %v6724_v47 = vadd.f32 %v9112_v34, %v11013_v44  ;;  %v9033_v43 = vpop.f32.mrb[32].mxu0  ;;  %v3636_v9 = vpop.f32.mrb[33].mxu1 }
 0x2f7   : > { %v6789_v51 = vmax.f32 %v6725_v21, 0.0  ;;  %v9113_v10 = vadd.f32 %v9033_v43, %v8641_v20  ;;  %v6464_v16 = vpop.f32.mrb[33].mxu0 }
 0x2f8   : > { %v6788_v38 = vmax.f32 %v6724_v47, 0.0  ;;  %v9114_v31 = vadd.f32 %v6464_v16, %v3636_v9 }
 0x2f9   : > { %6853 = vst [vmem:[%s11019_s8 + $0xf8] sm:$0xff] %v6789_v51  ;;  %v6727_v40 = vadd.f32 %v9113_v10, %v11013_v44  ;;  %v8644_v2 = vpop.f32.mrb[34].mxu1 }
 0x2fa   : > { %6852 = vst [vmem:[%s11019_s8 + $0xf0] sm:$0xff] %v6788_v38  ;;  %v6726_v18 = vadd.f32 %v9114_v31, %v11013_v44  ;;  %v9036_v36 = vpop.f32.mrb[34].mxu0  ;;  %v3646_v11 = vpop.f32.mrb[35].mxu1 }
 0x2fb   : > { %v6791_v55 = vmax.f32 %v6727_v40, 0.0  ;;  %v9115_v12 = vadd.f32 %v9036_v36, %v8644_v2  ;;  %v6474_v56 = vpop.f32.mrb[35].mxu0 }
 0x2fc   : > { %v6790_v57 = vmax.f32 %v6726_v18, 0.0  ;;  %v9116_v58 = vadd.f32 %v6474_v56, %v3646_v11 }
 0x2fd   : > { %6855 = vst [vmem:[%s11019_s8 + $0x108] sm:$0xff] %v6791_v55  ;;  %v6729_v59 = vadd.f32 %v9115_v12, %v11013_v44  ;;  %v8647_v60 = vpop.f32.mrb[36].mxu1 }
 0x2fe   : > { %6854 = vst [vmem:[%s11019_s8 + $0x100] sm:$0xff] %v6790_v57  ;;  %v6728_v13 = vadd.f32 %v9116_v58, %v11013_v44  ;;  %v9039_v61 = vpop.f32.mrb[36].mxu0  ;;  %v3656_v15 = vpop.f32.mrb[37].mxu1 }
 0x2ff   : > { %v6793_v62 = vmax.f32 %v6729_v59, 0.0  ;;  %v9117_v63 = vadd.f32 %v9039_v61, %v8647_v60  ;;  %v6484_v0 = vpop.f32.mrb[37].mxu0 }
 0x300   : > { %v6792_v1 = vmax.f32 %v6728_v13, 0.0  ;;  %v9118_v42 = vadd.f32 %v6484_v0, %v3656_v15 }
 0x301   : > { %6857 = vst [vmem:[%s11019_s8 + $0x118] sm:$0xff] %v6793_v62  ;;  %v6731_v19 = vadd.f32 %v9117_v63, %v11013_v44  ;;  %v8650_v46 = vpop.f32.mrb[38].mxu1 }
 0x302   : > { %6856 = vst [vmem:[%s11019_s8 + $0x110] sm:$0xff] %v6792_v1  ;;  %v6730_v35 = vadd.f32 %v9118_v42, %v11013_v44  ;;  %v9042_v48 = vpop.f32.mrb[38].mxu0  ;;  %v3666_v50 = vpop.f32.mrb[39].mxu1 }
 0x303   : > { %v6795_v3 = vmax.f32 %v6731_v19, 0.0  ;;  %v9119_v52 = vadd.f32 %v9042_v48, %v8650_v46  ;;  %v6494_v4 = vpop.f32.mrb[39].mxu0 }
 0x304   : > { %v6794_v28 = vmax.f32 %v6730_v35, 0.0  ;;  %v9120_v14 = vadd.f32 %v6494_v4, %v3666_v50 }
 0x305   : > { %6859 = vst [vmem:[%s11019_s8 + $0x128] sm:$0xff] %v6795_v3  ;;  %v6733_v23 = vadd.f32 %v9119_v52, %v11013_v44  ;;  %v8653_v17 = vpop.f32.mrb[40].mxu1 }
 0x306   : > { %6858 = vst [vmem:[%s11019_s8 + $0x120] sm:$0xff] %v6794_v28  ;;  %v6732_v22 = vadd.f32 %v9120_v14, %v11013_v44  ;;  %v9045_v24 = vpop.f32.mrb[40].mxu0  ;;  %v3676_v29 = vpop.f32.mrb[41].mxu1 }
 0x307   : > { %v6797_v5 = vmax.f32 %v6733_v23, 0.0  ;;  %v9121_v25 = vadd.f32 %v9045_v24, %v8653_v17  ;;  %v6504_v33 = vpop.f32.mrb[41].mxu0 }
 0x308   : > { %v6796_v27 = vmax.f32 %v6732_v22, 0.0  ;;  %v9122_v6 = vadd.f32 %v6504_v33, %v3676_v29 }
 0x309   : > { %6861 = vst [vmem:[%s11019_s8 + $0x138] sm:$0xff] %v6797_v5  ;;  %v6735_v37 = vadd.f32 %v9121_v25, %v11013_v44  ;;  %v8656_v41 = vpop.f32.mrb[42].mxu1 }
 0x30a   : > { %6860 = vst [vmem:[%s11019_s8 + $0x130] sm:$0xff] %v6796_v27  ;;  %v6734_v45 = vadd.f32 %v9122_v6, %v11013_v44  ;;  %v9048_v26 = vpop.f32.mrb[42].mxu0  ;;  %v3686_v30 = vpop.f32.mrb[43].mxu1 }
 0x30b   : > { %v6799_v49 = vmax.f32 %v6735_v37, 0.0  ;;  %v9123_v32 = vadd.f32 %v9048_v26, %v8656_v41  ;;  %v6514_v7 = vpop.f32.mrb[43].mxu0 }
 0x30c   : > { %v6798_v53 = vmax.f32 %v6734_v45, 0.0  ;;  %v9124_v8 = vadd.f32 %v6514_v7, %v3686_v30 }
 0x30d   : > { %6863 = vst [vmem:[%s11019_s8 + $0x148] sm:$0xff] %v6799_v49  ;;  %v6737_v54 = vadd.f32 %v9123_v32, %v11013_v44  ;;  %v8659_v39 = vpop.f32.mrb[44].mxu1 }
 0x30e   : > { %6862 = vst [vmem:[%s11019_s8 + $0x140] sm:$0xff] %v6798_v53  ;;  %v6736_v34 = vadd.f32 %v9124_v8, %v11013_v44  ;;  %v9051_v21 = vpop.f32.mrb[44].mxu0  ;;  %v3696_v20 = vpop.f32.mrb[45].mxu1 }
 0x30f   : > { %v6801_v47 = vmax.f32 %v6737_v54, 0.0  ;;  %v9125_v43 = vadd.f32 %v9051_v21, %v8659_v39  ;;  %v6524_v9 = vpop.f32.mrb[45].mxu0 }
 0x310   : > { %v6800_v51 = vmax.f32 %v6736_v34, 0.0  ;;  %v9126_v10 = vadd.f32 %v6524_v9, %v3696_v20 }
 0x311   : > { %6865 = vst [vmem:[%s11019_s8 + $0x158] sm:$0xff] %v6801_v47  ;;  %v6739_v16 = vadd.f32 %v9125_v43, %v11013_v44  ;;  %v8662_v38 = vpop.f32.mrb[46].mxu1 }
 0x312   : > { %6864 = vst [vmem:[%s11019_s8 + $0x150] sm:$0xff] %v6800_v51  ;;  %v6738_v31 = vadd.f32 %v9126_v10, %v11013_v44  ;;  %v9054_v40 = vpop.f32.mrb[46].mxu0  ;;  %v3706_v2 = vpop.f32.mrb[47].mxu1 }
 0x313   : > { %v6803_v18 = vmax.f32 %v6739_v16, 0.0  ;;  %v9127_v36 = vadd.f32 %v9054_v40, %v8662_v38  ;;  %v6534_v11 = vpop.f32.mrb[47].mxu0 }
 0x314   : > { %v6802_v55 = vmax.f32 %v6738_v31, 0.0  ;;  %v9128_v12 = vadd.f32 %v6534_v11, %v3706_v2 }
 0x315   : > { %6867 = vst [vmem:[%s11019_s8 + $0x168] sm:$0xff] %v6803_v18  ;;  %v6741_v56 = vadd.f32 %v9127_v36, %v11013_v44  ;;  %v8665_v57 = vpop.f32.mrb[48].mxu1 }
 0x316   : > { %6866 = vst [vmem:[%s11019_s8 + $0x160] sm:$0xff] %v6802_v55  ;;  %v6740_v58 = vadd.f32 %v9128_v12, %v11013_v44  ;;  %v9057_v59 = vpop.f32.mrb[48].mxu0  ;;  %v3716_v60 = vpop.f32.mrb[49].mxu1 }
 0x317   : > { %v6805_v13 = vmax.f32 %v6741_v56, 0.0  ;;  %v9129_v61 = vadd.f32 %v9057_v59, %v8665_v57  ;;  %v6544_v15 = vpop.f32.mrb[49].mxu0 }
 0x318   : > { %v6804_v62 = vmax.f32 %v6740_v58, 0.0  ;;  %v9130_v63 = vadd.f32 %v6544_v15, %v3716_v60 }
 0x319   : > { %6869 = vst [vmem:[%s11019_s8 + $0x178] sm:$0xff] %v6805_v13  ;;  %v6743_v0 = vadd.f32 %v9129_v61, %v11013_v44  ;;  %v8668_v1 = vpop.f32.mrb[50].mxu1 }
 0x31a   : > { %6868 = vst [vmem:[%s11019_s8 + $0x170] sm:$0xff] %v6804_v62  ;;  %v6742_v42 = vadd.f32 %v9130_v63, %v11013_v44  ;;  %v9060_v19 = vpop.f32.mrb[50].mxu0  ;;  %v3726_v46 = vpop.f32.mrb[51].mxu1 }
 0x31b   : > { %v6807_v35 = vmax.f32 %v6743_v0, 0.0  ;;  %v9131_v48 = vadd.f32 %v9060_v19, %v8668_v1  ;;  %v6554_v50 = vpop.f32.mrb[51].mxu0 }
 0x31c   : > { %v6806_v3 = vmax.f32 %v6742_v42, 0.0  ;;  %v9132_v52 = vadd.f32 %v6554_v50, %v3726_v46 }
 0x31d   : > { %6871 = vst [vmem:[%s11019_s8 + $0x188] sm:$0xff] %v6807_v35  ;;  %v6745_v4 = vadd.f32 %v9131_v48, %v11013_v44  ;;  %v8671_v28 = vpop.f32.mrb[52].mxu1 }
 0x31e   : > { %6870 = vst [vmem:[%s11019_s8 + $0x180] sm:$0xff] %v6806_v3  ;;  %v6744_v14 = vadd.f32 %v9132_v52, %v11013_v44  ;;  %v9063_v23 = vpop.f32.mrb[52].mxu0  ;;  %v3736_v17 = vpop.f32.mrb[53].mxu1 }
 0x31f   : > { %v6809_v22 = vmax.f32 %v6745_v4, 0.0  ;;  %v9133_v24 = vadd.f32 %v9063_v23, %v8671_v28  ;;  %v6564_v29 = vpop.f32.mrb[53].mxu0 }
 0x320   : > { %v6808_v5 = vmax.f32 %v6744_v14, 0.0  ;;  %v9134_v25 = vadd.f32 %v6564_v29, %v3736_v17 }
 0x321   : > { %6873 = vst [vmem:[%s11019_s8 + $0x198] sm:$0xff] %v6809_v22  ;;  %v6747_v33 = vadd.f32 %v9133_v24, %v11013_v44  ;;  %v8674_v27 = vpop.f32.mrb[54].mxu1 }
 0x322   : > { %6872 = vst [vmem:[%s11019_s8 + $0x190] sm:$0xff] %v6808_v5  ;;  %v6746_v6 = vadd.f32 %v9134_v25, %v11013_v44  ;;  %v9066_v37 = vpop.f32.mrb[54].mxu0  ;;  %v3746_v41 = vpop.f32.mrb[55].mxu1 }
 0x323   : > { %v6811_v45 = vmax.f32 %v6747_v33, 0.0  ;;  %v9135_v26 = vadd.f32 %v9066_v37, %v8674_v27  ;;  %v6574_v30 = vpop.f32.mrb[55].mxu0 }
 0x324   : > { %v6810_v49 = vmax.f32 %v6746_v6, 0.0  ;;  %v9136_v32 = vadd.f32 %v6574_v30, %v3746_v41 }
 0x325   : > { %6875 = vst [vmem:[%s11019_s8 + $0x1a8] sm:$0xff] %v6811_v45  ;;  %v6749_v7 = vadd.f32 %v9135_v26, %v11013_v44  ;;  %v8677_v53 = vpop.f32.mrb[56].mxu1 }
 0x326   : > { %6874 = vst [vmem:[%s11019_s8 + $0x1a0] sm:$0xff] %v6810_v49  ;;  %v6748_v8 = vadd.f32 %v9136_v32, %v11013_v44  ;;  %v9069_v54 = vpop.f32.mrb[56].mxu0  ;;  %v3756_v39 = vpop.f32.mrb[57].mxu1 }
 0x327   : > { %v6813_v34 = vmax.f32 %v6749_v7, 0.0  ;;  %v9137_v21 = vadd.f32 %v9069_v54, %v8677_v53  ;;  %v6584_v20 = vpop.f32.mrb[57].mxu0 }
 0x328   : > { %v6812_v47 = vmax.f32 %v6748_v8, 0.0  ;;  %v9138_v43 = vadd.f32 %v6584_v20, %v3756_v39 }
 0x329   : > { %6877 = vst [vmem:[%s11019_s8 + $0x1b8] sm:$0xff] %v6813_v34  ;;  %v6751_v9 = vadd.f32 %v9137_v21, %v11013_v44  ;;  %v8680_v51 = vpop.f32.mrb[58].mxu1 }
 0x32a   : > { %6876 = vst [vmem:[%s11019_s8 + $0x1b0] sm:$0xff] %v6812_v47  ;;  %v6750_v10 = vadd.f32 %v9138_v43, %v11013_v44  ;;  %v9072_v16 = vpop.f32.mrb[58].mxu0  ;;  %v3766_v38 = vpop.f32.mrb[59].mxu1 }
 0x32b   : > { %v6815_v31 = vmax.f32 %v6751_v9, 0.0  ;;  %v9139_v40 = vadd.f32 %v9072_v16, %v8680_v51  ;;  %v6594_v2 = vpop.f32.mrb[59].mxu0 }
 0x32c   : > { %v6814_v18 = vmax.f32 %v6750_v10, 0.0  ;;  %v9140_v36 = vadd.f32 %v6594_v2, %v3766_v38 }
 0x32d   : > { %6879 = vst [vmem:[%s11019_s8 + $0x1c8] sm:$0xff] %v6815_v31  ;;  %v6753_v11 = vadd.f32 %v9139_v40, %v11013_v44  ;;  %v8683_v55 = vpop.f32.mrb[60].mxu1 }
 0x32e   : > { %6878 = vst [vmem:[%s11019_s8 + $0x1c0] sm:$0xff] %v6814_v18  ;;  %v6752_v12 = vadd.f32 %v9140_v36, %v11013_v44  ;;  %v9075_v56 = vpop.f32.mrb[60].mxu0  ;;  %v3776_v57 = vpop.f32.mrb[61].mxu1 }
 0x32f   : > { %v6817_v58 = vmax.f32 %v6753_v11, 0.0  ;;  %v9141_v59 = vadd.f32 %v9075_v56, %v8683_v55  ;;  %v6604_v60 = vpop.f32.mrb[61].mxu0 }
 0x330   : > { %v6816_v13 = vmax.f32 %v6752_v12, 0.0  ;;  %v9142_v61 = vadd.f32 %v6604_v60, %v3776_v57 }
 0x331   : > { %6881 = vst [vmem:[%s11019_s8 + $0x1d8] sm:$0xff] %v6817_v58  ;;  %v6755_v15 = vadd.f32 %v9141_v59, %v11013_v44  ;;  %v8686_v62 = vpop.f32.mrb[62].mxu1 }
 0x332   : > { %6880 = vst [vmem:[%s11019_s8 + $0x1d0] sm:$0xff] %v6816_v13  ;;  %v6754_v63 = vadd.f32 %v9142_v61, %v11013_v44  ;;  %v9078_v0 = vpop.f32.mrb[62].mxu0  ;;  %v3786_v1 = vpop.f32.mrb[63].mxu1 }
 0x333   : > { %v6819_v42 = vmax.f32 %v6755_v15, 0.0  ;;  %v9143_v19 = vadd.f32 %v9078_v0, %v8686_v62  ;;  %v6614_v46 = vpop.f32.mrb[63].mxu0 }
 0x334   : > { %v6818_v35 = vmax.f32 %v6754_v63, 0.0  ;;  %v9144_v48 = vadd.f32 %v6614_v46, %v3786_v1 }
 0x335   : > { %6883 = vst [vmem:[%s11019_s8 + $0x1e8] sm:$0xff] %v6819_v42  ;;  %v6757_v50 = vadd.f32 %v9143_v19, %v11013_v44 }
 0x336   : > { %6882 = vst [vmem:[%s11019_s8 + $0x1e0] sm:$0xff] %v6818_v35  ;;  %v6756_v3 = vadd.f32 %v9144_v48, %v11013_v44 }
 0x337   : > { %v6821_v52 = vmax.f32 %v6757_v50, 0.0 }
 0x338   : > { %v6820_v4 = vmax.f32 %v6756_v3, 0.0 }
 0x339   : > { %6885 = vst [vmem:[%s11019_s8 + $0x1f8] sm:$0xff] %v6821_v52 }
 0x33a   : > { %6884 = vst [vmem:[%s11019_s8 + $0x1f0] sm:$0xff] %v6820_v4 }
 0x33b PF: > { %s14_s17 = sadd.s32 1, %s9640_s17   ;;  %s11202_s15 = smov %s9636_s16 }
 0x33c   : > { %p11_p7 = scmp.ge.s32.totalorder %s14_s17, 4   ;;  %s11203_s16 = smov %s11205_s18 }
 0x33e   :  { %13 = sbr.rel (!%p11_p7) target bundleno = 2 (0x2), region = 83 }

</bundles_post_ra>
